<compile_context>
chip_gen: v7x
topology: tpu7x:2x2x1
jax: 0.10.0
libtpu: 0.0.40
codegen_flags: <defaults>
</compile_context>

<pallas_src>
import functools

import jax
import jax.numpy as jnp
from jax.experimental import pallas as pl
from jax.experimental.pallas import tpu as pltpu


_VMEM_LIMIT = 48 * 1024 * 1024   # below v7x's 64 MiB physical VMEM, above defaults
_BN_EPS = 1e-5


def _pick_tile(dim, cap, align):
    """Largest tile <= cap that divides dim and respects `align`; full dim if small."""
    if dim <= cap:
        return dim
    for d in range(cap, 0, -1):
        if dim % d == 0 and d % align == 0:
            return d
    return dim


def _cparams(sem):
    return pltpu.CompilerParams(dimension_semantics=sem,
                                vmem_limit_bytes=_VMEM_LIMIT)


# ----------------------------- Pallas kernels ------------------------------

def _conv3x3_s1_kernel(x_ref, w_ref, b_ref, *rest, hw, wdim, pre, post, res):
    """Fused stride-1 3x3 conv on the flat-padded layout.

    grid = (batch, cout_tiles, cin_tiles); cin accumulates into a (H*W, tcout)
    f32 VMEM scratch.  Optional fusions:
      pre  = per-input-channel scale/shift + ReLU (BN of the input, applied per
             tap with masks so the zero padding still contributes zero),
      post = per-output-channel scale/shift + ReLU (BN of the output),
      res  = residual add of a flat-padded tensor.
    """
    idx = 0
    if pre:
        ps_ref, pt_ref = rest[0], rest[1]
        idx = 2
    if post:
        qs_ref, qt_ref = rest[idx], rest[idx + 1]
        idx += 2
    if res:
        r_ref = rest[idx]
        idx += 1
    o_ref, acc_ref = rest[idx], rest[idx + 1]

    kc = pl.program_id(2)

    @pl.when(kc == 0)
    def _init():
        acc_ref[...] = jnp.zeros_like(acc_ref)

    p_idx = jax.lax.broadcasted_iota(jnp.int32, (hw, 1), 0)
    col = p_idx % wdim

    for dy in range(3):
        for dx in range(3):
            off = dy * wdim + dx
            xv = x_ref[pl.ds(off, hw), :]                       # (hw, tcin)
            if pre:
                xv = jnp.maximum(
                    xv.astype(jnp.float32) * ps_ref[...] + pt_ref[...], 0.0)
            # W-edge taps wrap into the neighbouring row of the flat layout and
            # must always be zeroed; H-edge taps read the zero pad strips and
            # only need masking when the prologue affine made them non-zero.
            mask = None
            if dx == 0:
                mask = col > 0
            elif dx == 2:
                mask = col < (wdim - 1)
            if pre:
                if dy == 0:
                    m = p_idx >= wdim
                    mask = m if mask is None else (mask & m)
                elif dy == 2:
                    m = p_idx < (hw - wdim)
                    mask = m if mask is None else (mask & m)
            if mask is not None:
                xv = jnp.where(mask, xv, 0.0)
            acc_ref[...] += jnp.dot(
                xv.astype(w_ref.dtype), w_ref[dy, dx],
                preferred_element_type=jnp.float32)

    @pl.when(kc == pl.num_programs(2) - 1)
    def _finalize():
        y = acc_ref[...] + b_ref[...]
        if res:
            y = y + r_ref[pl.ds(wdim + 1, hw), :].astype(jnp.float32)
        if post:
            y = jnp.maximum(y * qs_ref[...] + qt_ref[...], 0.0)
        o_ref[...] = jnp.zeros(o_ref.shape, o_ref.dtype)        # zero pad strips
        o_ref[pl.ds(wdim + 1, hw), :] = y.astype(o_ref.dtype)


def _matmul_kernel(x_ref, w_ref, b_ref, *rest, pre, res):
    """M/N/K-tiled matmul with f32 accumulator and fused epilogue.

    grid = (M_tiles, N_tiles, K_tiles).  Optional `pre` = per-K-channel
    scale/shift + ReLU on the x tile (BN of the 1x1-shortcut input), optional
    `res` = residual add before the store.
    """
    idx = 0
    if pre:
        ps_ref, pt_ref = rest[0], rest[1]
        idx = 2
    if res:
        r_ref = rest[idx]
        idx += 1
    o_ref, acc_ref = rest[idx], rest[idx + 1]

    kk = pl.program_id(2)

    @pl.when(kk == 0)
    def _init():
        acc_ref[...] = jnp.zeros_like(acc_ref)

    xv = x_ref[...]
    if pre:
        xv = jnp.maximum(xv.astype(jnp.float32) * ps_ref[...] + pt_ref[...], 0.0)
    acc_ref[...] += jnp.dot(
        xv.astype(w_ref.dtype), w_ref[...], preferred_element_type=jnp.float32)

    @pl.when(kk == pl.num_programs(2) - 1)
    def _finalize():
        y = acc_ref[...] + b_ref[...]
        if res:
            y = y + r_ref[...].astype(jnp.float32)
        o_ref[...] = y.astype(o_ref.dtype)


def _mplc_kernel(x_ref, *rest, hw, wdim, k, pre):
    """Grouped channel max over k consecutive channels (flat-padded input),
    optional fused scale/shift+ReLU prologue (the network's final BN).
    The group reduction uses k selection matmuls + elementwise max so the
    activation is read from HBM exactly once and no lane-strided gathers or
    lane reshapes are needed."""
    # TODO(synk): HomogeneousChannelsMaxPool is not defined in the provided
    # source; assumed semantics = max over groups of k consecutive channels.
    if pre:
        s_ref, t_ref, o_ref = rest[0], rest[1], rest[2]
    else:
        o_ref = rest[0]
    x = x_ref[pl.ds(wdim + 1, hw), :].astype(jnp.float32)       # (hw, C)
    if pre:
        x = jnp.maximum(x * s_ref[...] + t_ref[...], 0.0)
    c = x.shape[-1]
    cg = c // k
    ci = jax.lax.broadcasted_iota(jnp.int32, (c, cg), 0)
    gi = jax.lax.broadcasted_iota(jnp.int32, (c, cg), 1)
    out = None
    for j in range(k):
        sel = (ci == gi * k + j).astype(jnp.float32)
        yj = jnp.dot(x, sel, preferred_element_type=jnp.float32)
        out = yj if out is None else jnp.maximum(out, yj)
    o_ref[...] = out.astype(o_ref.dtype)


def _avgpool_kernel(x_ref, o_ref):
    o_ref[...] = jnp.mean(x_ref[...].astype(jnp.float32), axis=1)


# ----------------------------- kernel wrappers ------------------------------

def conv3x3_s1(xf, h, w, wgt, bias, *, pre=None, post=None, res=None,
               out_dtype=jnp.bfloat16):
    """Fused stride-1 3x3 conv.  xf / res are (N, H*W + 2*W + 2, C) flat-padded."""
    n, l, cin = xf.shape
    cout = wgt.shape[-1]
    hw = h * w
    tcin = _pick_tile(cin, 512, 128)
    tcout = _pick_tile(cout, 512, 128)
    grid = (n, cout // tcout, cin // tcin)

    in_specs = [
        pl.BlockSpec((None, l, tcin), lambda b, j, kc: (b, 0, kc)),
        pl.BlockSpec((3, 3, tcin, tcout), lambda b, j, kc: (0, 0, kc, j)),
        pl.BlockSpec((1, tcout), lambda b, j, kc: (0, j)),
    ]
    args = [xf, wgt, bias.reshape(1, -1).astype(jnp.float32)]
    if pre is not None:
        in_specs += [pl.BlockSpec((1, tcin), lambda b, j, kc: (0, kc))] * 2
        args += [pre[0].reshape(1, -1), pre[1].reshape(1, -1)]
    if post is not None:
        in_specs += [pl.BlockSpec((1, tcout), lambda b, j, kc: (0, j))] * 2
        args += [post[0].reshape(1, -1), post[1].reshape(1, -1)]
    if res is not None:
        in_specs.append(pl.BlockSpec((None, l, tcout), lambda b, j, kc: (b, 0, j)))
        args.append(res)

    kern = functools.partial(_conv3x3_s1_kernel, hw=hw, wdim=w,
                             pre=pre is not None, post=post is not None,
                             res=res is not None)
    return pl.pallas_call(
        kern,
        grid=grid,
        in_specs=in_specs,
        out_specs=pl.BlockSpec((None, l, tcout), lambda b, j, kc: (b, 0, j)),
        out_shape=jax.ShapeDtypeStruct((n, l, cout), out_dtype),
        scratch_shapes=[pltpu.VMEM((hw, tcout), jnp.float32)],
        compiler_params=_cparams(("parallel", "parallel", "arbitrary")),
    )(*args)


def matmul_fused(x2, w2, bias, *, pre=None, residual=None, out_dtype=jnp.float32):
    m, kdim = x2.shape
    ndim = w2.shape[1]
    # Larger M tiles (up to 1024) and K/N tiling so the weight never has to be
    # resident as a single (K, N) block.
    tm = _pick_tile(m, 1024, 8)
    tk = _pick_tile(kdim, 2048, 128)
    tn = _pick_tile(ndim, 512, 128)
    grid = (m // tm, ndim // tn, kdim // tk)

    in_specs = [
        pl.BlockSpec((tm, tk), lambda i, j, kk: (i, kk)),
        pl.BlockSpec((tk, tn), lambda i, j, kk: (kk, j)),
        pl.BlockSpec((1, tn), lambda i, j, kk: (0, j)),
    ]
    args = [x2, w2, bias.reshape(1, -1).astype(jnp.float32)]
    if pre is not None:
        in_specs += [pl.BlockSpec((1, tk), lambda i, j, kk: (0, kk))] * 2
        args += [pre[0].reshape(1, -1), pre[1].reshape(1, -1)]
    if residual is not None:
        in_specs.append(pl.BlockSpec((tm, tn), lambda i, j, kk: (i, j)))
        args.append(residual)

    kern = functools.partial(_matmul_kernel, pre=pre is not None,
                             res=residual is not None)
    return pl.pallas_call(
        kern,
        grid=grid,
        in_specs=in_specs,
        out_specs=pl.BlockSpec((tm, tn), lambda i, j, kk: (i, j)),
        out_shape=jax.ShapeDtypeStruct((m, ndim), out_dtype),
        scratch_shapes=[pltpu.VMEM((tm, tn), jnp.float32)],
        compiler_params=_cparams(("parallel", "parallel", "arbitrary")),
    )(*args)


def channels_maxpool(xf, h, w, k, *, pre=None):
    n, l, c = xf.shape
    hw = h * w
    cg = c // k
    in_specs = [pl.BlockSpec((None, l, c), lambda b: (b, 0, 0))]
    args = [xf]
    if pre is not None:
        in_specs += [pl.BlockSpec((1, c), lambda b: (0, 0))] * 2
        args += [pre[0].reshape(1, -1), pre[1].reshape(1, -1)]
    kern = functools.partial(_mplc_kernel, hw=hw, wdim=w, k=k, pre=pre is not None)
    return pl.pallas_call(
        kern,
        grid=(n,),
        in_specs=in_specs,
        out_specs=pl.BlockSpec((None, hw, cg), lambda b: (b, 0, 0)),
        out_shape=jax.ShapeDtypeStruct((n, hw, cg), jnp.float32),
        compiler_params=_cparams(("parallel",)),
    )(*args)


def global_avgpool(x3):
    n, hw, c = x3.shape
    return pl.pallas_call(
        _avgpool_kernel,
        grid=(1,),
        in_specs=[pl.BlockSpec((n, hw, c), lambda i: (0, 0, 0))],
        out_specs=pl.BlockSpec((n, c), lambda i: (0, 0)),
        out_shape=jax.ShapeDtypeStruct((n, c), jnp.float32),
        compiler_params=_cparams(("arbitrary",)),
    )(x3)


# ----------------------------- layout / glue --------------------------------

def _to_flat(x_nhwc):
    n, h, w, c = x_nhwc.shape
    z = jnp.zeros((n, w + 1, c), x_nhwc.dtype)
    return jnp.concatenate([z, x_nhwc.reshape(n, h * w, c), z], axis=1)


def _from_flat(xf, h, w):
    n, _, c = xf.shape
    return xf[:, w + 1:w + 1 + h * w, :].reshape(n, h, w, c)


def _im2col(x_nhwc, stride):
    # Only used for the three stride-2 3x3 convs (reduced spatial extents).
    # TODO(synk): these could be fused like the stride-1 path via a phase-split
    # layout; kept as plain-JAX glue (2.25x, not 9x, expansion) for simplicity.
    n, h, w, c = x_nhwc.shape
    ho = (h + 2 - 3) // stride + 1
    wo = (w + 2 - 3) // stride + 1
    xp = jnp.pad(x_nhwc, ((0, 0), (1, 1), (1, 1), (0, 0)))
    taps = []
    for dy in range(3):
        for dx in range(3):
            taps.append(xp[:, dy:dy + (ho - 1) * stride + 1:stride,
                            dx:dx + (wo - 1) * stride + 1:stride, :])
    pat = jnp.stack(taps, axis=3).reshape(n * ho * wo, 9 * c)
    return pat, ho, wo


# ----------------------------- parameter init -------------------------------

def _fold_bn(key, c):
    # Random inference-mode BatchNorm statistics folded to per-channel
    # scale/shift.
    # TODO(synk): torch's default .train() BN would use batch statistics; this
    # implements the standard inference-mode (running-stats) BN.
    ks = jax.random.split(key, 4)
    gamma = 1.0 + 0.1 * jax.random.normal(ks[0], (c,), jnp.float32)
    beta = 0.1 * jax.random.normal(ks[1], (c,), jnp.float32)
    mean = 0.1 * jax.random.normal(ks[2], (c,), jnp.float32)
    var = 1.0 + 0.1 * jnp.abs(jax.random.normal(ks[3], (c,), jnp.float32))
    scale = gamma / jnp.sqrt(var + _BN_EPS)
    shift = beta - mean * scale
    return scale.astype(jnp.float32), shift.astype(jnp.float32)


def _conv_init(key, kh, kw, ci, co, dtype=jnp.bfloat16):
    k1, k2 = jax.random.split(key)
    fan_in = kh * kw * ci
    wgt = (jax.random.normal(k1, (kh, kw, ci, co), jnp.float32)
           / jnp.sqrt(fan_in)).astype(dtype)
    b = 0.01 * jax.random.normal(k2, (co,), jnp.float32)
    return wgt, b


def _make_block(key, in_planes, inner_planes, out_planes, stride):
    ks = jax.random.split(key, 5)
    p = {"stride": stride}
    p["bn1"] = _fold_bn(ks[0], in_planes)
    p["conv1_w"], p["conv1_b"] = _conv_init(ks[1], 3, 3, in_planes, inner_planes)
    p["bn2"] = _fold_bn(ks[2], inner_planes)
    p["conv2_w"], p["conv2_b"] = _conv_init(ks[3], 3, 3, inner_planes, out_planes)
    if stride != 1 or in_planes != out_planes:
        wgt, b = _conv_init(ks[4], 1, 1, in_planes, out_planes)
        p["sc_w"], p["sc_b"] = wgt.reshape(in_planes, out_planes), b
    else:
        p["sc_w"], p["sc_b"] = None, None
    return p


def _make_layer(key, in_planes, planes, num_blocks, stride):
    strides = [stride] + [1] * (num_blocks - 1)
    ks = jax.random.split(key, num_blocks)
    blocks = []
    for k_, s in zip(ks, strides):
        blocks.append(_make_block(k_, in_planes, planes, planes, s))
        in_planes = planes
    return blocks, in_planes


def init_resnet18_params(key, num_classes, mplc_kernel_size=4, width_override=None):
    # torch __init__ derives c1 from mplc_kernel_size (4 -> 136, 8 -> 192)
    if width_override is not None:
        c1 = width_override
    elif mplc_kernel_size == 4:
        c1 = 34 * 4
    elif mplc_kernel_size == 8:
        c1 = 24 * 8
    else:
        raise ValueError("unsupported mplc_kernel_size")
    n_stages = [c1, c1, 2 * c1, 4 * c1, 8 * c1]
    ks = jax.random.split(key, 8)
    params = {"mplc_k": mplc_kernel_size, "nStages": n_stages}
    params["conv1_w"], params["conv1_b"] = _conv_init(ks[0], 3, 3, 3, n_stages[0])
    in_planes = n_stages[0]
    params["layer1"], in_planes = _make_layer(ks[1], in_planes, n_stages[1], 2, 1)
    params["layer2"], in_planes = _make_layer(ks[2], in_planes, n_stages[2], 2, 2)
    params["layer3"], in_planes = _make_layer(ks[3], in_planes, n_stages[3], 2, 2)
    params["layer4"], in_planes = _make_layer(ks[4], in_planes, n_stages[4], 2, 2)
    params["bn_final"] = _fold_bn(ks[5], n_stages[4])
    out_size = n_stages[4] // mplc_kernel_size
    params["linear_w"] = (jax.random.normal(ks[6], (out_size, num_classes),
                                            jnp.float32) / jnp.sqrt(out_size))
    params["linear_b"] = 0.01 * jax.random.normal(ks[7], (num_classes,), jnp.float32)
    return params


# ----------------------------- forward pass ---------------------------------

def wide_basic_fwd(p, xf, h, w):
    stride = p["stride"]
    inner = p["conv1_w"].shape[-1]
    cout = p["conv2_w"].shape[-1]
    # h1 = relu(bn2(conv1(relu(bn1(x))))):  bn1+relu fused as masked prologue,
    # bias + bn2 + relu fused as epilogue of the same conv kernel.
    h1f = conv3x3_s1(xf, h, w, p["conv1_w"], p["conv1_b"],
                     pre=p["bn1"], post=p["bn2"])
    if p["sc_w"] is None:
        # identity skip: out = conv2(h1) + b2 + x, residual add fused in-kernel
        outf = conv3x3_s1(h1f, h, w, p["conv2_w"], p["conv2_b"], res=xf)
        return outf, h, w
    # stride-2 block: 1x1 shortcut on relu(bn1(x)) (prologue fused into the
    # matmul), then stride-2 conv2 via im2col + tiled matmul with the residual
    # (shortcut output) fused into its epilogue.
    n = xf.shape[0]
    ho = (h - 1) // stride + 1
    wo = (w - 1) // stride + 1
    x_dense = _from_flat(xf, h, w)
    xs = x_dense[:, ::stride, ::stride, :].reshape(n * ho * wo, -1)
    sc = matmul_fused(xs, p["sc_w"], p["sc_b"], pre=p["bn1"],
                      out_dtype=jnp.float32)
    pat, _, _ = _im2col(_from_flat(h1f, h, w), stride)
    out2 = matmul_fused(pat, p["conv2_w"].reshape(9 * inner, cout),
                        p["conv2_b"], residual=sc, out_dtype=jnp.bfloat16)
    out_dense = out2.reshape(n, ho, wo, cout)
    return _to_flat(out_dense), ho, wo


def resnet18_forward(params, x_nchw):
    k = params["mplc_k"]
    x = jnp.transpose(x_nchw, (0, 2, 3, 1)).astype(jnp.bfloat16)   # NCHW -> NHWC
    n, h, w, _ = x.shape

    out = conv3x3_s1(_to_flat(x), h, w, params["conv1_w"], params["conv1_b"])

    feats = []
    for blk in params["layer1"]:
        out, h, w = wide_basic_fwd(blk, out, h, w)
    feats.append((channels_maxpool(out, h, w, k), h, w))
    for blk in params["layer2"]:
        out, h, w = wide_basic_fwd(blk, out, h, w)
    feats.append((channels_maxpool(out, h, w, k), h, w))
    for blk in params["layer3"]:
        out, h, w = wide_basic_fwd(blk, out, h, w)
    feats.append((channels_maxpool(out, h, w, k), h, w))
    for blk in params["layer4"]:
        out, h, w = wide_basic_fwd(blk, out, h, w)

    # final relu(bn(out)) fused as a prologue of the last channel max-pool
    out4 = channels_maxpool(out, h, w, k, pre=params["bn_final"])
    feats.append((out4, h, w))

    pooled = global_avgpool(out4)                                  # (N, C4 // k)
    logits = matmul_fused(pooled, params["linear_w"], params["linear_b"],
                          out_dtype=jnp.float32)

    outs = []
    for f, hh, ww in feats:
        nn, _, cc = f.shape
        outs.append(jnp.transpose(f.reshape(nn, hh, ww, cc),
                                  (0, 3, 1, 2)).astype(jnp.float32))
    return logits, outs


# ----------------------------- demo ------------------------------------------

if __name__ == "__main__":
    key = jax.random.PRNGKey(0)
    kp, kx = jax.random.split(key)
    num_classes = 10
    mplc_k = 4
    # NOTE: the torch __init__ would give c1 = 34*4 = 136 for mplc_kernel_size=4;
    # we keep the exact topology/dataflow but use a reduced width (c1=16) so the
    # synthetic test stays small and fast -- real widths only enlarge the
    # channel / K / N tile grids of the same kernels.
    params = init_resnet18_params(kp, num_classes, mplc_kernel_size=mplc_k,
                                  width_override=16)
    x = jax.random.normal(kx, (2, 3, 16, 16), jnp.float32)   # NCHW, like torch

    logits, feats = resnet18_forward(params, x)
    jax.block_until_ready(logits)
    jax.block_until_ready(feats)

    assert logits.shape == (2, num_classes)
    assert feats[0].shape == (2, 16 // mplc_k, 16, 16)
    assert feats[1].shape == (2, 32 // mplc_k, 8, 8)
    assert feats[2].shape == (2, 64 // mplc_k, 4, 4)
    assert feats[3].shape == (2, 128 // mplc_k, 2, 2)
    assert bool(jnp.all(jnp.isfinite(logits)))
    print("KERNEL_OK")
</pallas_src>

<mosaic_0001>
module attributes {stable_mosaic.version = 11 : i64} {
  func.func @_conv3x3_s1_kernel(%arg0: i32, %arg1: i32, %arg2: i32, %arg3: memref<1x290x3xbf16, #tpu.memory_space<vmem>>, %arg4: memref<3x3x3x16xbf16, #tpu.memory_space<vmem>>, %arg5: memref<1x16xf32, #tpu.memory_space<vmem>>, %arg6: memref<1x290x16xbf16, #tpu.memory_space<vmem>>, %arg7: memref<256x16xf32, #tpu.memory_space<vmem>>) attributes {dimension_semantics = [#tpu.dimension_semantics<parallel>, #tpu.dimension_semantics<parallel>, #tpu.dimension_semantics<arbitrary>], iteration_bounds = array<i64: 2, 1, 1>, scalar_prefetch = 0 : i64, scratch_operands = 1 : i64, tpu.core_type = #tpu.core_type<tc>, window_params = [{transform_indices = @transform_0, window_bounds = array<i64: 1, 290, 3>}, {transform_indices = @transform_1, window_bounds = array<i64: 3, 3, 3, 16>}, {transform_indices = @transform_2, window_bounds = array<i64: 1, 16>}, {transform_indices = @transform_3, window_bounds = array<i64: 1, 290, 16>}]} {
    %c0_i32 = arith.constant 0 : i32
    %0 = arith.cmpi eq, %arg2, %c0_i32 : i32
    %1 = arith.extui %0 : i1 to i32
    %c0_i32_0 = arith.constant 0 : i32
    %2 = arith.cmpi ne, %1, %c0_i32_0 : i32
    scf.if %2 {
      %cst_116 = arith.constant 0.000000e+00 : f32
      %137 = vector.broadcast %cst_116 : f32 to vector<256x16xf32>
      %c0_117 = arith.constant 0 : index
      %c0_118 = arith.constant 0 : index
      %138 = vector.load %arg7[%c0_117, %c0_118] : memref<256x16xf32, #tpu.memory_space<vmem>>, vector<256x16xf32>
      tpu.vector_store %arg7[%c0_117, %c0_118], %137 {strides = array<i32>} : memref<256x16xf32, #tpu.memory_space<vmem>>, vector<256x16xf32>,
    } else {
    }
    %3 = tpu.iota {dimensions = array<i32: 0>} : vector<256x1xi32>
    %c16_i32 = arith.constant 16 : i32
    %c0_i32_1 = arith.constant 0 : i32
    %4 = arith.cmpi eq, %c16_i32, %c0_i32_1 : i32
    %c1_i32 = arith.constant 1 : i32
    %5 = arith.select %4, %c1_i32, %c16_i32 : i32
    %6 = vector.broadcast %5 : i32 to vector<256x1xi32>
    %7 = arith.remsi %3, %6 : vector<256x1xi32>
    %c0_i32_2 = arith.constant 0 : i32
    %8 = vector.broadcast %c0_i32_2 : i32 to vector<256x1xi32>
    %9 = arith.cmpi ne, %7, %8 : vector<256x1xi32>
    %c0_i32_3 = arith.constant 0 : i32
    %10 = vector.broadcast %c0_i32_3 : i32 to vector<256x1xi32>
    %11 = arith.cmpi slt, %7, %10 : vector<256x1xi32>
    %c0_i32_4 = arith.constant 0 : i32
    %12 = arith.cmpi slt, %5, %c0_i32_4 : i32
    %13 = vector.broadcast %12 : i1 to vector<256x1xi1>
    %14 = vector.broadcast %13 : vector<256x1xi1> to vector<256x1xi1>
    %15 = arith.xori %11, %14 : vector<256x1xi1>
    %16 = arith.andi %15, %9 : vector<256x1xi1>
    %17 = vector.broadcast %5 : i32 to vector<256x1xi32>
    %18 = arith.addi %7, %17 : vector<256x1xi32>
    %19 = arith.select %16, %18, %7 : vector<256x1xi1>, vector<256x1xi32>
    %c0 = arith.constant 0 : index
    %c0_5 = arith.constant 0 : index
    %c0_6 = arith.constant 0 : index
    %20 = vector.load %arg3[%c0, %c0_5, %c0_6] : memref<1x290x3xbf16, #tpu.memory_space<vmem>>, vector<1x256x3xbf16>
    %21 = vector.shape_cast %20 : vector<1x256x3xbf16> to vector<256x3xbf16>
    %c0_i32_7 = arith.constant 0 : i32
    %22 = vector.broadcast %c0_i32_7 : i32 to vector<256x1xi32>
    %23 = arith.cmpi sgt, %19, %22 : vector<256x1xi32>
    %cst = arith.constant 0.000000e+00 : f32
    %24 = arith.truncf %cst : f32 to bf16
    %25 = vector.shape_cast %23 : vector<256x1xi1> to vector<256x1xi1>
    %26 = vector.broadcast %25 : vector<256x1xi1> to vector<256x3xi1>
    %27 = vector.broadcast %24 : bf16 to vector<256x3xbf16>
    %28 = arith.select %26, %21, %27 : vector<256x3xi1>, vector<256x3xbf16>
    %c0_8 = arith.constant 0 : index
    %c0_9 = arith.constant 0 : index
    %29 = vector.load %arg7[%c0_8, %c0_9] : memref<256x16xf32, #tpu.memory_space<vmem>>, vector<256x16xf32>
    %c0_10 = arith.constant 0 : index
    %c0_11 = arith.constant 0 : index
    %c0_12 = arith.constant 0 : index
    %c0_13 = arith.constant 0 : index
    %30 = vector.load %arg4[%c0_10, %c0_11, %c0_12, %c0_13] : memref<3x3x3x16xbf16, #tpu.memory_space<vmem>>, vector<1x1x3x16xbf16>
    %31 = vector.shape_cast %30 : vector<1x1x3x16xbf16> to vector<3x16xbf16>
    %cst_14 = arith.constant dense<0.000000e+00> : vector<256x16xf32>
    %32 = tpu.matmul %28, %31, %cst_14 {dimension_numbers = #tpu.dot_dimension_numbers<[1], [0], [0], [1], [0, 0, 1, 1], [], []>} : vector<256x3xbf16>, vector<3x16xbf16>, vector<256x16xf32> -> vector<256x16xf32>
    %33 = arith.addf %29, %32 : vector<256x16xf32>
    %c0_15 = arith.constant 0 : index
    %c0_16 = arith.constant 0 : index
    %34 = vector.load %arg7[%c0_15, %c0_16] : memref<256x16xf32, #tpu.memory_space<vmem>>, vector<256x16xf32>
    tpu.vector_store %arg7[%c0_15, %c0_16], %33 {strides = array<i32>} : memref<256x16xf32, #tpu.memory_space<vmem>>, vector<256x16xf32>,
    %c0_17 = arith.constant 0 : index
    %c1 = arith.constant 1 : index
    %c0_18 = arith.constant 0 : index
    %35 = vector.load %arg3[%c0_17, %c1, %c0_18] : memref<1x290x3xbf16, #tpu.memory_space<vmem>>, vector<1x256x3xbf16>
    %36 = vector.shape_cast %35 : vector<1x256x3xbf16> to vector<256x3xbf16>
    %c0_19 = arith.constant 0 : index
    %c0_20 = arith.constant 0 : index
    %37 = vector.load %arg7[%c0_19, %c0_20] : memref<256x16xf32, #tpu.memory_space<vmem>>, vector<256x16xf32>
    %c0_21 = arith.constant 0 : index
    %c1_22 = arith.constant 1 : index
    %c0_23 = arith.constant 0 : index
    %c0_24 = arith.constant 0 : index
    %38 = vector.load %arg4[%c0_21, %c1_22, %c0_23, %c0_24] : memref<3x3x3x16xbf16, #tpu.memory_space<vmem>>, vector<1x1x3x16xbf16>
    %39 = vector.shape_cast %38 : vector<1x1x3x16xbf16> to vector<3x16xbf16>
    %cst_25 = arith.constant dense<0.000000e+00> : vector<256x16xf32>
    %40 = tpu.matmul %36, %39, %cst_25 {dimension_numbers = #tpu.dot_dimension_numbers<[1], [0], [0], [1], [0, 0, 1, 1], [], []>} : vector<256x3xbf16>, vector<3x16xbf16>, vector<256x16xf32> -> vector<256x16xf32>
    %41 = arith.addf %37, %40 : vector<256x16xf32>
    %c0_26 = arith.constant 0 : index
    %c0_27 = arith.constant 0 : index
    %42 = vector.load %arg7[%c0_26, %c0_27] : memref<256x16xf32, #tpu.memory_space<vmem>>, vector<256x16xf32>
    tpu.vector_store %arg7[%c0_26, %c0_27], %41 {strides = array<i32>} : memref<256x16xf32, #tpu.memory_space<vmem>>, vector<256x16xf32>,
    %c0_28 = arith.constant 0 : index
    %c2 = arith.constant 2 : index
    %c0_29 = arith.constant 0 : index
    %43 = vector.load %arg3[%c0_28, %c2, %c0_29] : memref<1x290x3xbf16, #tpu.memory_space<vmem>>, vector<1x256x3xbf16>
    %44 = vector.shape_cast %43 : vector<1x256x3xbf16> to vector<256x3xbf16>
    %c15_i32 = arith.constant 15 : i32
    %45 = vector.broadcast %c15_i32 : i32 to vector<256x1xi32>
    %46 = arith.cmpi slt, %19, %45 : vector<256x1xi32>
    %cst_30 = arith.constant 0.000000e+00 : f32
    %47 = arith.truncf %cst_30 : f32 to bf16
    %48 = vector.shape_cast %46 : vector<256x1xi1> to vector<256x1xi1>
    %49 = vector.broadcast %48 : vector<256x1xi1> to vector<256x3xi1>
    %50 = vector.broadcast %47 : bf16 to vector<256x3xbf16>
    %51 = arith.select %49, %44, %50 : vector<256x3xi1>, vector<256x3xbf16>
    %c0_31 = arith.constant 0 : index
    %c0_32 = arith.constant 0 : index
    %52 = vector.load %arg7[%c0_31, %c0_32] : memref<256x16xf32, #tpu.memory_space<vmem>>, vector<256x16xf32>
    %c0_33 = arith.constant 0 : index
    %c2_34 = arith.constant 2 : index
    %c0_35 = arith.constant 0 : index
    %c0_36 = arith.constant 0 : index
    %53 = vector.load %arg4[%c0_33, %c2_34, %c0_35, %c0_36] : memref<3x3x3x16xbf16, #tpu.memory_space<vmem>>, vector<1x1x3x16xbf16>
    %54 = vector.shape_cast %53 : vector<1x1x3x16xbf16> to vector<3x16xbf16>
    %cst_37 = arith.constant dense<0.000000e+00> : vector<256x16xf32>
    %55 = tpu.matmul %51, %54, %cst_37 {dimension_numbers = #tpu.dot_dimension_numbers<[1], [0], [0], [1], [0, 0, 1, 1], [], []>} : vector<256x3xbf16>, vector<3x16xbf16>, vector<256x16xf32> -> vector<256x16xf32>
    %56 = arith.addf %52, %55 : vector<256x16xf32>
    %c0_38 = arith.constant 0 : index
    %c0_39 = arith.constant 0 : index
    %57 = vector.load %arg7[%c0_38, %c0_39] : memref<256x16xf32, #tpu.memory_space<vmem>>, vector<256x16xf32>
    tpu.vector_store %arg7[%c0_38, %c0_39], %56 {strides = array<i32>} : memref<256x16xf32, #tpu.memory_space<vmem>>, vector<256x16xf32>,
    %c0_40 = arith.constant 0 : index
    %c16 = arith.constant 16 : index
    %c0_41 = arith.constant 0 : index
    %58 = vector.load %arg3[%c0_40, %c16, %c0_41] : memref<1x290x3xbf16, #tpu.memory_space<vmem>>, vector<1x256x3xbf16>
    %59 = vector.shape_cast %58 : vector<1x256x3xbf16> to vector<256x3xbf16>
    %c0_i32_42 = arith.constant 0 : i32
    %60 = vector.broadcast %c0_i32_42 : i32 to vector<256x1xi32>
    %61 = arith.cmpi sgt, %19, %60 : vector<256x1xi32>
    %cst_43 = arith.constant 0.000000e+00 : f32
    %62 = arith.truncf %cst_43 : f32 to bf16
    %63 = vector.shape_cast %61 : vector<256x1xi1> to vector<256x1xi1>
    %64 = vector.broadcast %63 : vector<256x1xi1> to vector<256x3xi1>
    %65 = vector.broadcast %62 : bf16 to vector<256x3xbf16>
    %66 = arith.select %64, %59, %65 : vector<256x3xi1>, vector<256x3xbf16>
    %c0_44 = arith.constant 0 : index
    %c0_45 = arith.constant 0 : index
    %67 = vector.load %arg7[%c0_44, %c0_45] : memref<256x16xf32, #tpu.memory_space<vmem>>, vector<256x16xf32>
    %c1_46 = arith.constant 1 : index
    %c0_47 = arith.constant 0 : index
    %c0_48 = arith.constant 0 : index
    %c0_49 = arith.constant 0 : index
    %68 = vector.load %arg4[%c1_46, %c0_47, %c0_48, %c0_49] : memref<3x3x3x16xbf16, #tpu.memory_space<vmem>>, vector<1x1x3x16xbf16>
    %69 = vector.shape_cast %68 : vector<1x1x3x16xbf16> to vector<3x16xbf16>
    %cst_50 = arith.constant dense<0.000000e+00> : vector<256x16xf32>
    %70 = tpu.matmul %66, %69, %cst_50 {dimension_numbers = #tpu.dot_dimension_numbers<[1], [0], [0], [1], [0, 0, 1, 1], [], []>} : vector<256x3xbf16>, vector<3x16xbf16>, vector<256x16xf32> -> vector<256x16xf32>
    %71 = arith.addf %67, %70 : vector<256x16xf32>
    %c0_51 = arith.constant 0 : index
    %c0_52 = arith.constant 0 : index
    %72 = vector.load %arg7[%c0_51, %c0_52] : memref<256x16xf32, #tpu.memory_space<vmem>>, vector<256x16xf32>
    tpu.vector_store %arg7[%c0_51, %c0_52], %71 {strides = array<i32>} : memref<256x16xf32, #tpu.memory_space<vmem>>, vector<256x16xf32>,
    %c0_53 = arith.constant 0 : index
    %c17 = arith.constant 17 : index
    %c0_54 = arith.constant 0 : index
    %73 = vector.load %arg3[%c0_53, %c17, %c0_54] : memref<1x290x3xbf16, #tpu.memory_space<vmem>>, vector<1x256x3xbf16>
    %74 = vector.shape_cast %73 : vector<1x256x3xbf16> to vector<256x3xbf16>
    %c0_55 = arith.constant 0 : index
    %c0_56 = arith.constant 0 : index
    %75 = vector.load %arg7[%c0_55, %c0_56] : memref<256x16xf32, #tpu.memory_space<vmem>>, vector<256x16xf32>
    %c1_57 = arith.constant 1 : index
    %c1_58 = arith.constant 1 : index
    %c0_59 = arith.constant 0 : index
    %c0_60 = arith.constant 0 : index
    %76 = vector.load %arg4[%c1_57, %c1_58, %c0_59, %c0_60] : memref<3x3x3x16xbf16, #tpu.memory_space<vmem>>, vector<1x1x3x16xbf16>
    %77 = vector.shape_cast %76 : vector<1x1x3x16xbf16> to vector<3x16xbf16>
    %cst_61 = arith.constant dense<0.000000e+00> : vector<256x16xf32>
    %78 = tpu.matmul %74, %77, %cst_61 {dimension_numbers = #tpu.dot_dimension_numbers<[1], [0], [0], [1], [0, 0, 1, 1], [], []>} : vector<256x3xbf16>, vector<3x16xbf16>, vector<256x16xf32> -> vector<256x16xf32>
    %79 = arith.addf %75, %78 : vector<256x16xf32>
    %c0_62 = arith.constant 0 : index
    %c0_63 = arith.constant 0 : index
    %80 = vector.load %arg7[%c0_62, %c0_63] : memref<256x16xf32, #tpu.memory_space<vmem>>, vector<256x16xf32>
    tpu.vector_store %arg7[%c0_62, %c0_63], %79 {strides = array<i32>} : memref<256x16xf32, #tpu.memory_space<vmem>>, vector<256x16xf32>,
    %c0_64 = arith.constant 0 : index
    %c18 = arith.constant 18 : index
    %c0_65 = arith.constant 0 : index
    %81 = vector.load %arg3[%c0_64, %c18, %c0_65] : memref<1x290x3xbf16, #tpu.memory_space<vmem>>, vector<1x256x3xbf16>
    %82 = vector.shape_cast %81 : vector<1x256x3xbf16> to vector<256x3xbf16>
    %c15_i32_66 = arith.constant 15 : i32
    %83 = vector.broadcast %c15_i32_66 : i32 to vector<256x1xi32>
    %84 = arith.cmpi slt, %19, %83 : vector<256x1xi32>
    %cst_67 = arith.constant 0.000000e+00 : f32
    %85 = arith.truncf %cst_67 : f32 to bf16
    %86 = vector.shape_cast %84 : vector<256x1xi1> to vector<256x1xi1>
    %87 = vector.broadcast %86 : vector<256x1xi1> to vector<256x3xi1>
    %88 = vector.broadcast %85 : bf16 to vector<256x3xbf16>
    %89 = arith.select %87, %82, %88 : vector<256x3xi1>, vector<256x3xbf16>
    %c0_68 = arith.constant 0 : index
    %c0_69 = arith.constant 0 : index
    %90 = vector.load %arg7[%c0_68, %c0_69] : memref<256x16xf32, #tpu.memory_space<vmem>>, vector<256x16xf32>
    %c1_70 = arith.constant 1 : index
    %c2_71 = arith.constant 2 : index
    %c0_72 = arith.constant 0 : index
    %c0_73 = arith.constant 0 : index
    %91 = vector.load %arg4[%c1_70, %c2_71, %c0_72, %c0_73] : memref<3x3x3x16xbf16, #tpu.memory_space<vmem>>, vector<1x1x3x16xbf16>
    %92 = vector.shape_cast %91 : vector<1x1x3x16xbf16> to vector<3x16xbf16>
    %cst_74 = arith.constant dense<0.000000e+00> : vector<256x16xf32>
    %93 = tpu.matmul %89, %92, %cst_74 {dimension_numbers = #tpu.dot_dimension_numbers<[1], [0], [0], [1], [0, 0, 1, 1], [], []>} : vector<256x3xbf16>, vector<3x16xbf16>, vector<256x16xf32> -> vector<256x16xf32>
    %94 = arith.addf %90, %93 : vector<256x16xf32>
    %c0_75 = arith.constant 0 : index
    %c0_76 = arith.constant 0 : index
    %95 = vector.load %arg7[%c0_75, %c0_76] : memref<256x16xf32, #tpu.memory_space<vmem>>, vector<256x16xf32>
    tpu.vector_store %arg7[%c0_75, %c0_76], %94 {strides = array<i32>} : memref<256x16xf32, #tpu.memory_space<vmem>>, vector<256x16xf32>,
    %c0_77 = arith.constant 0 : index
    %c32 = arith.constant 32 : index
    %c0_78 = arith.constant 0 : index
    %96 = vector.load %arg3[%c0_77, %c32, %c0_78] : memref<1x290x3xbf16, #tpu.memory_space<vmem>>, vector<1x256x3xbf16>
    %97 = vector.shape_cast %96 : vector<1x256x3xbf16> to vector<256x3xbf16>
    %c0_i32_79 = arith.constant 0 : i32
    %98 = vector.broadcast %c0_i32_79 : i32 to vector<256x1xi32>
    %99 = arith.cmpi sgt, %19, %98 : vector<256x1xi32>
    %cst_80 = arith.constant 0.000000e+00 : f32
    %100 = arith.truncf %cst_80 : f32 to bf16
    %101 = vector.shape_cast %99 : vector<256x1xi1> to vector<256x1xi1>
    %102 = vector.broadcast %101 : vector<256x1xi1> to vector<256x3xi1>
    %103 = vector.broadcast %100 : bf16 to vector<256x3xbf16>
    %104 = arith.select %102, %97, %103 : vector<256x3xi1>, vector<256x3xbf16>
    %c0_81 = arith.constant 0 : index
    %c0_82 = arith.constant 0 : index
    %105 = vector.load %arg7[%c0_81, %c0_82] : memref<256x16xf32, #tpu.memory_space<vmem>>, vector<256x16xf32>
    %c2_83 = arith.constant 2 : index
    %c0_84 = arith.constant 0 : index
    %c0_85 = arith.constant 0 : index
    %c0_86 = arith.constant 0 : index
    %106 = vector.load %arg4[%c2_83, %c0_84, %c0_85, %c0_86] : memref<3x3x3x16xbf16, #tpu.memory_space<vmem>>, vector<1x1x3x16xbf16>
    %107 = vector.shape_cast %106 : vector<1x1x3x16xbf16> to vector<3x16xbf16>
    %cst_87 = arith.constant dense<0.000000e+00> : vector<256x16xf32>
    %108 = tpu.matmul %104, %107, %cst_87 {dimension_numbers = #tpu.dot_dimension_numbers<[1], [0], [0], [1], [0, 0, 1, 1], [], []>} : vector<256x3xbf16>, vector<3x16xbf16>, vector<256x16xf32> -> vector<256x16xf32>
    %109 = arith.addf %105, %108 : vector<256x16xf32>
    %c0_88 = arith.constant 0 : index
    %c0_89 = arith.constant 0 : index
    %110 = vector.load %arg7[%c0_88, %c0_89] : memref<256x16xf32, #tpu.memory_space<vmem>>, vector<256x16xf32>
    tpu.vector_store %arg7[%c0_88, %c0_89], %109 {strides = array<i32>} : memref<256x16xf32, #tpu.memory_space<vmem>>, vector<256x16xf32>,
    %c0_90 = arith.constant 0 : index
    %c33 = arith.constant 33 : index
    %c0_91 = arith.constant 0 : index
    %111 = vector.load %arg3[%c0_90, %c33, %c0_91] : memref<1x290x3xbf16, #tpu.memory_space<vmem>>, vector<1x256x3xbf16>
    %112 = vector.shape_cast %111 : vector<1x256x3xbf16> to vector<256x3xbf16>
    %c0_92 = arith.constant 0 : index
    %c0_93 = arith.constant 0 : index
    %113 = vector.load %arg7[%c0_92, %c0_93] : memref<256x16xf32, #tpu.memory_space<vmem>>, vector<256x16xf32>
    %c2_94 = arith.constant 2 : index
    %c1_95 = arith.constant 1 : index
    %c0_96 = arith.constant 0 : index
    %c0_97 = arith.constant 0 : index
    %114 = vector.load %arg4[%c2_94, %c1_95, %c0_96, %c0_97] : memref<3x3x3x16xbf16, #tpu.memory_space<vmem>>, vector<1x1x3x16xbf16>
    %115 = vector.shape_cast %114 : vector<1x1x3x16xbf16> to vector<3x16xbf16>
    %cst_98 = arith.constant dense<0.000000e+00> : vector<256x16xf32>
    %116 = tpu.matmul %112, %115, %cst_98 {dimension_numbers = #tpu.dot_dimension_numbers<[1], [0], [0], [1], [0, 0, 1, 1], [], []>} : vector<256x3xbf16>, vector<3x16xbf16>, vector<256x16xf32> -> vector<256x16xf32>
    %117 = arith.addf %113, %116 : vector<256x16xf32>
    %c0_99 = arith.constant 0 : index
    %c0_100 = arith.constant 0 : index
    %118 = vector.load %arg7[%c0_99, %c0_100] : memref<256x16xf32, #tpu.memory_space<vmem>>, vector<256x16xf32>
    tpu.vector_store %arg7[%c0_99, %c0_100], %117 {strides = array<i32>} : memref<256x16xf32, #tpu.memory_space<vmem>>, vector<256x16xf32>,
    %c0_101 = arith.constant 0 : index
    %c34 = arith.constant 34 : index
    %c0_102 = arith.constant 0 : index
    %119 = vector.load %arg3[%c0_101, %c34, %c0_102] : memref<1x290x3xbf16, #tpu.memory_space<vmem>>, vector<1x256x3xbf16>
    %120 = vector.shape_cast %119 : vector<1x256x3xbf16> to vector<256x3xbf16>
    %c15_i32_103 = arith.constant 15 : i32
    %121 = vector.broadcast %c15_i32_103 : i32 to vector<256x1xi32>
    %122 = arith.cmpi slt, %19, %121 : vector<256x1xi32>
    %cst_104 = arith.constant 0.000000e+00 : f32
    %123 = arith.truncf %cst_104 : f32 to bf16
    %124 = vector.shape_cast %122 : vector<256x1xi1> to vector<256x1xi1>
    %125 = vector.broadcast %124 : vector<256x1xi1> to vector<256x3xi1>
    %126 = vector.broadcast %123 : bf16 to vector<256x3xbf16>
    %127 = arith.select %125, %120, %126 : vector<256x3xi1>, vector<256x3xbf16>
    %c0_105 = arith.constant 0 : index
    %c0_106 = arith.constant 0 : index
    %128 = vector.load %arg7[%c0_105, %c0_106] : memref<256x16xf32, #tpu.memory_space<vmem>>, vector<256x16xf32>
    %c2_107 = arith.constant 2 : index
    %c2_108 = arith.constant 2 : index
    %c0_109 = arith.constant 0 : index
    %c0_110 = arith.constant 0 : index
    %129 = vector.load %arg4[%c2_107, %c2_108, %c0_109, %c0_110] : memref<3x3x3x16xbf16, #tpu.memory_space<vmem>>, vector<1x1x3x16xbf16>
    %130 = vector.shape_cast %129 : vector<1x1x3x16xbf16> to vector<3x16xbf16>
    %cst_111 = arith.constant dense<0.000000e+00> : vector<256x16xf32>
    %131 = tpu.matmul %127, %130, %cst_111 {dimension_numbers = #tpu.dot_dimension_numbers<[1], [0], [0], [1], [0, 0, 1, 1], [], []>} : vector<256x3xbf16>, vector<3x16xbf16>, vector<256x16xf32> -> vector<256x16xf32>
    %132 = arith.addf %128, %131 : vector<256x16xf32>
    %c0_112 = arith.constant 0 : index
    %c0_113 = arith.constant 0 : index
    %133 = vector.load %arg7[%c0_112, %c0_113] : memref<256x16xf32, #tpu.memory_space<vmem>>, vector<256x16xf32>
    tpu.vector_store %arg7[%c0_112, %c0_113], %132 {strides = array<i32>} : memref<256x16xf32, #tpu.memory_space<vmem>>, vector<256x16xf32>,
    %c0_i32_114 = arith.constant 0 : i32
    %134 = arith.cmpi eq, %arg2, %c0_i32_114 : i32
    %135 = arith.extui %134 : i1 to i32
    %c0_i32_115 = arith.constant 0 : i32
    %136 = arith.cmpi ne, %135, %c0_i32_115 : i32
    scf.if %136 {
      %c0_116 = arith.constant 0 : index
      %c0_117 = arith.constant 0 : index
      %137 = vector.load %arg7[%c0_116, %c0_117] : memref<256x16xf32, #tpu.memory_space<vmem>>, vector<256x16xf32>
      %c0_118 = arith.constant 0 : index
      %c0_119 = arith.constant 0 : index
      %138 = vector.load %arg5[%c0_118, %c0_119] : memref<1x16xf32, #tpu.memory_space<vmem>>, vector<1x16xf32>
      %139 = vector.broadcast %138 : vector<1x16xf32> to vector<256x16xf32>
      %140 = arith.addf %137, %139 : vector<256x16xf32>
      %cst_120 = arith.constant 0.000000e+00 : bf16
      %141 = vector.broadcast %cst_120 : bf16 to vector<290x16xbf16>
      %c0_121 = arith.constant 0 : index
      %c0_122 = arith.constant 0 : index
      %c0_123 = arith.constant 0 : index
      %142 = vector.load %arg6[%c0_121, %c0_122, %c0_123] : memref<1x290x16xbf16, #tpu.memory_space<vmem>>, vector<1x290x16xbf16>
      %143 = vector.shape_cast %142 : vector<1x290x16xbf16> to vector<290x16xbf16>
      %144 = vector.shape_cast %141 : vector<290x16xbf16> to vector<1x290x16xbf16>
      tpu.vector_store %arg6[%c0_121, %c0_122, %c0_123], %144 {strides = array<i32>} : memref<1x290x16xbf16, #tpu.memory_space<vmem>>, vector<1x290x16xbf16>,
      %145 = arith.truncf %140 : vector<256x16xf32> to vector<256x16xbf16>
      %c0_124 = arith.constant 0 : index
      %c17_125 = arith.constant 17 : index
      %c0_126 = arith.constant 0 : index
      %146 = vector.load %arg6[%c0_124, %c17_125, %c0_126] : memref<1x290x16xbf16, #tpu.memory_space<vmem>>, vector<1x256x16xbf16>
      %147 = vector.shape_cast %146 : vector<1x256x16xbf16> to vector<256x16xbf16>
      %148 = vector.shape_cast %145 : vector<256x16xbf16> to vector<1x256x16xbf16>
      tpu.vector_store %arg6[%c0_124, %c17_125, %c0_126], %148 {strides = array<i32>} : memref<1x290x16xbf16, #tpu.memory_space<vmem>>, vector<1x256x16xbf16>,
    } else {
    }
    return
  }
  func.func @transform_0(%arg0: i32, %arg1: i32, %arg2: i32) -> (i32, i32, i32) {
    %c0_i32 = arith.constant 0 : i32
    %c0_i32_0 = arith.constant 0 : i32
    return %arg0, %c0_i32, %arg2 : i32, i32, i32
  }
  func.func @transform_1(%arg0: i32, %arg1: i32, %arg2: i32) -> (i32, i32, i32, i32) {
    %c0_i32 = arith.constant 0 : i32
    %c0_i32_0 = arith.constant 0 : i32
    %c0_i32_1 = arith.constant 0 : i32
    return %c0_i32, %c0_i32_0, %arg2, %arg1 : i32, i32, i32, i32
  }
  func.func @transform_2(%arg0: i32, %arg1: i32, %arg2: i32) -> (i32, i32) {
    %c0_i32 = arith.constant 0 : i32
    %c0_i32_0 = arith.constant 0 : i32
    return %c0_i32, %arg1 : i32, i32
  }
  func.func @transform_3(%arg0: i32, %arg1: i32, %arg2: i32) -> (i32, i32, i32) {
    %c0_i32 = arith.constant 0 : i32
    %c0_i32_0 = arith.constant 0 : i32
    return %arg0, %c0_i32, %arg1 : i32, i32, i32
  }
}

</mosaic_0001>

<bundles_post_ra>
// kernel: tpu_custom_call.1
= control target key start
LH: loop header
LB: loop body
LE: loop exit
PB: predicated region body
PF: predicated region fallthrough
CT: control target
= control target key end

     0   :  { %s7304_s12 = smov 0   ;;  %s7306_s13 = smov 0   ;;  %s9561_s0 = inlined_call_operand.vmem [shape: bf16[2,290,3], index: 0, kind: input, shape index: {}]   ;;  %s9562_s1 = inlined_call_operand.vmem [shape: bf16[3,3,3,16], index: 1, kind: input, shape index: {}]   ;;  %s9563_s2 = inlined_call_operand.vmem [shape: f32[1,16], index: 2, kind: input, shape index: {}]   ;;  %s9564_s3 = inlined_call_operand.vmem [shape: bf16[2,290,16], index: 3, kind: output, shape index: {}]  }
   0x1   :  { %s7308_s14 = smov 0  }
   0x2 LB: > { %s32_s15 = sadd.s32 1, %s7274_s13  ;;  %p6343_p0 = scmp.ge.s32.totalorder %s7278_s14, 1  ;;  %s7278_s14 = sphi %s7308_s14, %s13_s14   ;;  %s7274_s13 = sphi %s7306_s13, %s10331_s13   ;;  %s7270_s12 = sphi %s7304_s12, %s10330_s12  }
   0x3   : > { %p34_p1 = scmp.ge.s32.totalorder %s32_s15, 2  ;;  %p185_p2 = scmp.lt.s32.totalorder %s7278_s14, 3 }
   0x5   : > { %s10333_s15 = smov (%p34_p1, %s32_s15), 0  ;;  %p186_p3 = pnand %p6343_p0, %p185_p2 }
   0x7   : > { %189 = sbr.rel (%p186_p3) target bundleno = 665 (0x299), region = 32 }
   0xe   : > { %v932_v0 = vld [vmem:[%s9562_s1] sm:$0x3]  ;;  %vm9565_vm0 = vcmask 1040384   ;;  %vm1063_vm1 = vcmask 1041408   ;;  %v7280_v1 = vmov 65535   ;;  %p225_p4 = scmp.lt.s32.totalorder %s7270_s12, 1  ;;  %v291_v3 = vlaneseq }
   0xf   : > { %v1064_v2 = vsel %vm9565_vm0, 4294967295, %v7280_v1  ;;  %v6378_v4 = vld [vmem:[%s9562_s1 + $0x2] sm:$0x3]  ;;  %v6412_v6 = vld [vmem:[%s9562_s1 + $0x4] sm:$0x3]  ;;  %vm7281_vm2 = vmmov 1  }
  0x10   : > { %v7329_v5 = vsel %vm1063_vm1, %v1064_v2, 0  ;;  %s10335_s12 = smov (!%p225_p4, %s7270_s12), 1  ;;  %v7337_v8 = vshrl.u32 %v291_v3, 7  ;;  %vm7348_vm3 = vmpackc.low %vm7281_vm2, %vm7281_vm2  ;;  %v6446_v21 = vld [vmem:[%s9562_s1 + $0x6] sm:$0x3]  ;;  %v9674_v26 = vmov 0 }
  0x11   : > { %v1067_v7 = vand.u32 %v7329_v5, %v932_v0  ;;  %v1627_v9 = vand.u32 %v6378_v4, %v7329_v5  ;;  %v7341_v10 = vand.u32 %v6412_v6, %v7329_v5  ;;  %s7176_s22 = smul.u32 148, %s10335_s12  ;;  %vm9566_vm10 = vcmask 23552   ;;  %v6479_v44 = vld [vmem:[%s9562_s1 + $0x8] sm:$0x3] }
  0x12   : > { %v308_v11 = vadd.s32 128, %v7337_v8  ;;  %v310_v12 = vadd.s32 144, %v7337_v8  ;;  %v328_v13 = vand.u32 15, %v7337_v8  ;;  %v294_v14 = vadd.s32 16, %v7337_v8 }
  0x13   : > { %7174 = vmatprep.subr.bf16.mxu1 %v1067_v7  ;;  %6868 = vmatprep.subr.bf16.mxu0 %v1067_v7  ;;  %s7357_s25 = scalar_lea.vmem %s9561_s0, %s7176_s22  ;;  %v312_v25 = vadd.s32 160, %v7337_v8  ;;  %v9676_v30 = vmov 0  ;;  %v7389_v33 = vand.u32 %v6446_v21, %v7329_v5  ;;  %v314_v43 = vadd.s32 176, %v7337_v8  ;;  %s8996_s17 = scalar_lea.vmem %s9564_s3, %s7176_s22 }
  0x14   : > { %7175 = vmatpush3.bf16.msra.mxu1 %v1067_v7  ;;  %6869 = vmatpush3.bf16.msra.mxu0 %v1067_v7  ;;  %v440_v16 = vand.u32 15, %v308_v11  ;;  %v454_v17 = vand.u32 15, %v310_v12  ;;  %vm740_vm4 = vcmp.gt.s32.totalorder %v328_v13, 0  ;;  %v342_v18 = vand.u32 15, %v294_v14  ;;  %v724_v19 = vld [vmem:[%s7357_s25 + $0x40] sm:$0xf] }
  0x15   : > { %6902 = vmatprep.subr.bf16.mxu1 %v1627_v9  ;;  %6936 = vmatprep.subr.bf16.mxu0 %v7341_v10  ;;  %v725_v20 = vld [vmem:[%s7357_s25 + $0x44] sm:$0xf]  ;;  %v726_v23 = vld [vmem:[%s7357_s25 + $0x48] sm:$0xf]  ;;  %vm7368_vm6 = vmpackc.low %vm740_vm4, %vm740_vm4  ;;  %v468_v42 = vand.u32 15, %v312_v25  ;;  %v296_v47 = vadd.s32 32, %v7337_v8  ;;  %v7418_v52 = vand.u32 %v6479_v44, %v7329_v5 }
  0x16   : > { %vm756_vm5 = vcmp.gt.s32.totalorder %v440_v16, 0  ;;  %v885_v22 = vsel %vm7348_vm3, %v725_v20, 0  ;;  %v727_v27 = vld [vmem:[%s7357_s25 + $0x4c] sm:$0xf]  ;;  %vm758_vm8 = vcmp.gt.s32.totalorder %v454_v17, 0  ;;  %vm742_vm9 = vcmp.gt.s32.totalorder %v342_v18, 0 }
  0x17   : > { %vm7373_vm7 = vmpackc.low %vm756_vm5, %vm756_vm5  ;;  %v708_v28 = vld [vmem:[%s7357_s25] sm:$0xf]  ;;  %v887_v31 = vsel %vm7348_vm3, %v727_v27, 0  ;;  %v709_v32 = vld [vmem:[%s7357_s25 + $0x4] sm:$0xf]  ;;  %v298_v49 = vadd.s32 48, %v7337_v8 }
  0x18   : > { %v9675_v26 = vsel %vm7373_vm7, 4294967295, %v9674_v26  ;;  %v884_v29 = vsel %vm7373_vm7, %v724_v19, 0  ;;  %vm7381_vm11 = vmpackc.low %vm758_vm8, %vm758_vm8  ;;  %v868_v36 = vsel %vm7368_vm6, %v708_v28, 0  ;;  %v869_v37 = vsel %vm7348_vm3, %v709_v32, 0  ;;  %v710_v41 = vld [vmem:[%s7357_s25 + $0x8] sm:$0xf] }
  0x19   : > { %v9677_v30 = vsel %vm7381_vm11, 4294967295, %v9676_v30  ;;  %v6354_v34 = vcombine.low %v884_v29, %v885_v22  ;;  %v886_v35 = vsel %vm7381_vm11, %v726_v23, 0  ;;  %vm7397_vm12 = vmpackc.low %vm742_vm9, %vm742_vm9  ;;  %v6346_v40 = vcombine.low %v868_v36, %v869_v37  ;;  %v711_v45 = vld [vmem:[%s7357_s25 + $0xc] sm:$0xf]  ;;  %v728_v51 = vld [vmem:[%s7357_s25 + $0x50] sm:$0xf] }
  0x1a   : > { %v6355_v39 = vcombine.low %v886_v35, %v887_v31  ;;  %v870_v46 = vsel %vm7397_vm12, %v710_v41, 0  ;;  %v871_v48 = vsel %vm7348_vm3, %v711_v45, 0  ;;  %v729_v53 = vld [vmem:[%s7357_s25 + $0x54] sm:$0xf]  ;;  %vm760_vm13 = vcmp.gt.s32.totalorder %v468_v42, 0 }
  0x1b   : > { %6886 = vmatprep.mubr.msk.bf16.mxu1 %vm9566_vm10, %v6354_v34  ;;  %6870 = vmatprep.mubr.msk.bf16.mxu0 %vm9566_vm10, %v6346_v40  ;;  %v6347_v50 = vcombine.low %v870_v46, %v871_v48  ;;  %v482_v54 = vand.u32 15, %v314_v43  ;;  %v9618_v55 = vmov 0   ;;  %vm7428_vm14 = vmpackc.low %vm760_vm13, %vm760_vm13  ;;  %v9680_v57 = vmov 0  ;;  %v730_v59 = vld [vmem:[%s7357_s25 + $0x58] sm:$0xf] }
  0x1c   : > { %6887 = vmatmul.mubr.msk.bf16.vlgmr.msra.gmra.mrb[0].mxu1 %vm9566_vm10, %v6355_v39  ;;  %v7425_v56 = vsel %vm7348_vm3, 65537, %v9618_v55  ;;  %v9681_v57 = vsel %vm7428_vm14, 4294967295, %v9680_v57  ;;  %v889_v58 = vsel %vm7348_vm3, %v729_v53, 0  ;;  %v731_v60 = vld [vmem:[%s7357_s25 + $0x5c] sm:$0xf]  ;;  %v356_v61 = vand.u32 15, %v296_v47 }
  0x1d   : > { %6903 = vmatpush3.bf16.msra.mxu1 %v1627_v9  ;;  %6871 = vmatmul.mubr.msk.bf16.vlgmr.msra.gmra.mrb[0].mxu0 %vm9566_vm10, %v6347_v50  ;;  %v888_v62 = vsel %vm7428_vm14, %v728_v51, 0  ;;  %vm762_vm15 = vcmp.gt.s32.totalorder %v482_v54, 0  ;;  %v891_v63 = vsel %vm7348_vm3, %v731_v60, 0  ;;  %v712_v0 = vld [vmem:[%s7357_s25 + $0x10] sm:$0xf]  ;;  %v370_v1 = vand.u32 15, %v298_v49 }
  0x1e   : > { %6970 = vmatprep.subr.bf16.mxu1 %v7389_v33  ;;  %6937 = vmatpush3.bf16.msra.mxu0 %v7341_v10  ;;  %v7443_v2 = vld [vmem:[%s7357_s25 + $0x8] sm:$0xf]  ;;  %v7446_v3 = vld [vmem:[%s7357_s25 + $0x10] sm:$0xf]  ;;  %v6356_v4 = vcombine.low %v888_v62, %v889_v58  ;;  %vm7448_vm1 = vmpackc.low %vm762_vm15, %vm762_vm15  ;;  %v9682_v6 = vmov 0  ;;  %vm744_vm2 = vcmp.gt.s32.totalorder %v356_v61, 0 }
  0x1f   : > { %v9683_v6 = vsel %vm7448_vm1, 4294967295, %v9682_v6  ;;  %v713_v7 = vld [vmem:[%s7357_s25 + $0x14] sm:$0xf]  ;;  %v714_v9 = vld [vmem:[%s7357_s25 + $0x18] sm:$0xf]  ;;  %v316_v11 = vadd.s32 192, %v7337_v8  ;;  %7004 = vmatprep.subr.bf16.mxu0 %v7418_v52  ;;  %vm7458_vm4 = vmpackc.low %vm744_vm2, %vm744_vm2 }
  0x20   : > { %v890_v10 = vsel %vm7448_vm1, %v730_v59, 0  ;;  %v873_v13 = vsel %vm7348_vm3, %v713_v7, 0  ;;  %v715_v14 = vld [vmem:[%s7357_s25 + $0x1c] sm:$0xf]  ;;  %vm746_vm5 = vcmp.gt.s32.totalorder %v370_v1, 0  ;;  %v318_v16 = vadd.s32 208, %v7337_v8  ;;  %6890 = vmatprep.mubr.msk.bf16.mxu1 %vm9566_vm10, %v6356_v4 }
  0x21   : > { %v6357_v17 = vcombine.low %v890_v10, %v891_v63  ;;  %v872_v18 = vsel %vm7458_vm4, %v712_v0, 0  ;;  %vm7469_vm8 = vmpackc.low %vm746_vm5, %vm746_vm5  ;;  %v875_v20 = vsel %vm7348_vm3, %v715_v14, 0  ;;  %v496_v21 = vand.u32 15, %v316_v11  ;;  %v732_v22 = vld [vmem:[%s7357_s25 + $0x60] sm:$0xf] }
  0x22   : > { %v6348_v23 = vcombine.low %v872_v18, %v873_v13  ;;  %v874_v25 = vsel %vm7469_vm8, %v714_v9, 0  ;;  %v733_v27 = vld [vmem:[%s7357_s25 + $0x64] sm:$0xf]  ;;  %v510_v28 = vand.u32 15, %v318_v16  ;;  %v734_v29 = vld [vmem:[%s7357_s25 + $0x68] sm:$0xf] }
  0x23   : > { %v6349_v31 = vcombine.low %v874_v25, %v875_v20  ;;  %vm764_vm9 = vcmp.gt.s32.totalorder %v496_v21, 0  ;;  %v893_v32 = vsel %vm7348_vm3, %v733_v27, 0  ;;  %v735_v34 = vld [vmem:[%s7357_s25 + $0x6c] sm:$0xf]  ;;  %v300_v35 = vadd.s32 64, %v7337_v8  ;;  %v7205_v10 = vld [vmem:[%s7357_s25] sm:$0xff]  }
  0x24   : > { %6891 = vmatmul.mubr.msk.bf16.gmra.mrb[4].mxu1 %vm9566_vm10, %v6357_v17  ;;  %6874 = vmatprep.mubr.msk.bf16.mxu0 %vm9566_vm10, %v6348_v23  ;;  %vm7492_vm13 = vmpackc.low %vm764_vm9, %vm764_vm9  ;;  %v9688_v39 = vmov 0  ;;  %vm766_vm15 = vcmp.gt.s32.totalorder %v510_v28, 0  ;;  %v895_v40 = vsel %vm7348_vm3, %v735_v34, 0  ;;  %v717_v41 = vld [vmem:[%s7357_s25 + $0x24] sm:$0xf]  ;;  %v9690_v43 = vmov 0 }
  0x25   : > { %v9689_v39 = vsel %vm7492_vm13, 4294967295, %v9688_v39  ;;  %6875 = vmatmul.mubr.msk.bf16.gmra.mrb[4].mxu0 %vm9566_vm10, %v6349_v31  ;;  %v892_v42 = vsel %vm7492_vm13, %v732_v22, 0  ;;  %vm7502_vm2 = vmpackc.low %vm766_vm15, %vm766_vm15  ;;  %v384_v44 = vand.u32 15, %v300_v35  ;;  %v716_v45 = vld [vmem:[%s7357_s25 + $0x20] sm:$0xf]  ;;  %v877_v46 = vsel %vm7348_vm3, %v717_v41, 0 }
  0x26   : > { %v9691_v43 = vsel %vm7502_vm2, 4294967295, %v9690_v43  ;;  %v302_v47 = vadd.s32 80, %v7337_v8  ;;  %v6358_v48 = vcombine.low %v892_v42, %v893_v32  ;;  %v894_v49 = vsel %vm7502_vm2, %v734_v29, 0  ;;  %v718_v50 = vld [vmem:[%s7357_s25 + $0x28] sm:$0xf]  ;;  %v7542_v21 = vld [vmem:[%s7357_s25 + $0x10] sm:$0xff]  }
  0x27   : > { %v719_v51 = vld [vmem:[%s7357_s25 + $0x2c] sm:$0xf]  ;;  %v320_v53 = vadd.s32 224, %v7337_v8  ;;  %v6359_v54 = vcombine.low %v894_v49, %v895_v40  ;;  %vm748_vm5 = vcmp.gt.s32.totalorder %v384_v44, 0  ;;  %v737_v60 = vld [vmem:[%s7357_s25 + $0x74] sm:$0xf] }
  0x28   : > { %v398_v58 = vand.u32 15, %v302_v47  ;;  %v879_v59 = vsel %vm7348_vm3, %v719_v51, 0  ;;  %6894 = vmatprep.mubr.msk.bf16.mxu1 %vm9566_vm10, %v6358_v48  ;;  %vm7519_vm9 = vmpackc.low %vm748_vm5, %vm748_vm5  ;;  %v736_v63 = vld [vmem:[%s7357_s25 + $0x70] sm:$0xf]  ;;  %v897_v0 = vsel %vm7348_vm3, %v737_v60, 0  ;;  %v322_v1 = vadd.s32 240, %v7337_v8 }
  0x29   : > { %v524_v62 = vand.u32 15, %v320_v53  ;;  %v304_v4 = vadd.s32 96, %v7337_v8  ;;  %v876_v7 = vsel %vm7519_vm9, %v716_v45, 0  ;;  %v738_v9 = vld [vmem:[%s7357_s25 + $0x78] sm:$0xf]  ;;  %v7206_v20 = vld [vmem:[%s7357_s25 + $0x8] sm:$0xff]  }
  0x2a   : > { %vm750_vm15 = vcmp.gt.s32.totalorder %v398_v58, 0  ;;  %v739_v11 = vld [vmem:[%s7357_s25 + $0x7c] sm:$0xf]  ;;  %v6350_v13 = vcombine.low %v876_v7, %v877_v46  ;;  %v538_v16 = vand.u32 15, %v322_v1  ;;  %v721_v18 = vld [vmem:[%s7357_s25 + $0x34] sm:$0xf] }
  0x2b   : > { %vm7533_vm0 = vmpackc.low %vm750_vm15, %vm750_vm15  ;;  %vm768_vm10 = vcmp.gt.s32.totalorder %v524_v62, 0  ;;  %v899_v17 = vsel %vm7348_vm3, %v739_v11, 0  ;;  %vm9696_vm13 = vcmask 23552   ;;  %v9697_v23 = vmov 0  ;;  %v720_v27 = vld [vmem:[%s7357_s25 + $0x30] sm:$0xf] }
  0x2c   : > { %6895 = vmatmul.mubr.msk.bf16.gmra.mrb[8].mxu1 %vm9696_vm13, %v6359_v54  ;;  %v878_v22 = vsel %vm7533_vm0, %v718_v50, 0  ;;  %vm7547_vm15 = vmpackc.low %vm768_vm10, %vm768_vm10  ;;  %v412_v25 = vand.u32 15, %v304_v4  ;;  %v881_v28 = vsel %vm7348_vm3, %v721_v18, 0  ;;  %v306_v29 = vadd.s32 112, %v7337_v8  ;;  %v722_v34 = vld [vmem:[%s7357_s25 + $0x38] sm:$0xf] }
  0x2d   : > { %v9698_v23 = vsel %vm7547_vm15, 4294967295, %v9697_v23  ;;  %vm9699_vm5 = vmmov %vm9696_vm13  ;;  %v6351_v31 = vcombine.low %v878_v22, %v879_v59  ;;  %v896_v32 = vsel %vm7547_vm15, %v736_v63, 0  ;;  %vm770_vm13 = vcmp.gt.s32.totalorder %v538_v16, 0  ;;  %v723_v35 = vld [vmem:[%s7357_s25 + $0x3c] sm:$0xf] }
  0x2e   : > { %6878 = vmatprep.mubr.msk.bf16.mxu0 %vm9699_vm5, %v6350_v13  ;;  %v7561_v40 = vld [vmem:[%s7357_s25 + $0x14] sm:$0xf]  ;;  %v6360_v41 = vcombine.low %v896_v32, %v897_v0  ;;  %vm7563_vm10 = vmpackc.low %vm770_vm13, %vm770_vm13  ;;  %v9700_v42 = vmov 0  ;;  %vm752_vm2 = vcmp.gt.s32.totalorder %v412_v25, 0  ;;  %v426_v44 = vand.u32 15, %v306_v29  ;;  %v7208_v62 = vld [vmem:[%s7357_s25 + $0x18] sm:$0xff]  }
  0x2f   : > { %v9701_v42 = vsel %vm7563_vm10, 4294967295, %v9700_v42  ;;  %v883_v45 = vsel %vm7348_vm3, %v723_v35, 0  ;;  %6879 = vmatmul.mubr.msk.bf16.gmra.mrb[8].mxu0 %vm9699_vm5, %v6351_v31  ;;  %v898_v46 = vsel %vm7563_vm10, %v738_v9, 0  ;;  %vm7572_vm15 = vmpackc.low %vm752_vm2, %vm752_vm2  ;;  %v9702_v47 = vmov 0  ;;  %v6513_v7 = vld [vmem:[%s9562_s1 + $0xa] sm:$0x3] }
  0x30   : > { %v9703_v47 = vsel %vm7572_vm15, 4294967295, %v9702_v47  ;;  %v1447_v48 = vshrl.u32 %v7205_v10, 16  ;;  %vm9704_vm13 = vmmov %vm9699_vm5  ;;  %v6361_v49 = vcombine.low %v898_v46, %v899_v17  ;;  %v880_v50 = vsel %vm7572_vm15, %v720_v27, 0  ;;  %v7602_v25 = vld [vmem:[%s7357_s25 + $0x20] sm:$0xff]   ;;  %v4153_v61 = vld [vmem:[%s7357_s25 + $0x3c] sm:$0xf] }
  0x31   : > { %6898 = vmatprep.mubr.msk.bf16.mxu1 %vm9704_vm13, %v6360_v41  ;;  %vm754_vm1 = vcmp.gt.s32.totalorder %v426_v44, 0  ;;  %v1449_v51 = vshll.u32 %v7205_v10, 16  ;;  %v6352_v53 = vcombine.low %v880_v50, %v881_v28  ;;  %v9705_v54 = vmov 0  ;;  %v1855_v50 = vld [vmem:[%s7357_s25 + $0x4] sm:$0xf] }
  0x32   : > { %vm7579_vm14 = vmpackc.low %vm754_vm1, %vm754_vm1  ;;  %v1454_v58 = vshll.u32 %v7206_v20, 16  ;;  %v1458_v59 = vshrl.u32 %v7206_v20, 16  ;;  %v1462_v60 = vshll.u32 %v7542_v21, 16  ;;  %v293_v1 = vadd.s32 8, %v7337_v8  ;;  %v1854_v20 = vld [vmem:[%s7357_s25] sm:$0xe] }
  0x33   : > { %v9706_v54 = vsel %vm7579_vm14, 4294967295, %v9705_v54  ;;  %v882_v63 = vsel %vm7579_vm14, %v722_v34, 0  ;;  %v1451_v0 = vrot.slane %v1449_v51, 1  ;;  %v295_v4 = vadd.s32 24, %v7337_v8  ;;  %vm9707_vm1 = vmmov %vm9699_vm5  ;;  %v1871_v37 = vld [vmem:[%s7357_s25 + $0x44] sm:$0xf] }
  0x34   : > { %6882 = vmatprep.mubr.msk.bf16.mxu0 %vm9707_vm1, %v6352_v53  ;;  %v6353_v11 = vcombine.low %v882_v63, %v883_v45  ;;  %v1456_v10 = vrot.slane %v1454_v58, 1  ;;  %v1464_v13 = vrot.slane %v1462_v60, 1  ;;  %vm9708_vm2 = vmmov %vm9707_vm1  ;;  %v335_v17 = vand.u32 15, %v293_v1  ;;  %v1857_v60 = vld [vmem:[%s7357_s25 + $0xc] sm:$0xf] }
  0x35   : > { %6899 = vmatmul.mubr.msk.bf16.gmra.mrb[12].mxu1 %vm9708_vm2, %v6361_v49  ;;  %v1452_v16 = vor.u32 %v1451_v0, %v1447_v48  ;;  %v349_v18 = vand.u32 15, %v295_v4  ;;  %v7599_v22 = vrot.slane %v7425_v56, 7  ;;  %v1466_v28 = vshrl.u32 %v7542_v21, 16  ;;  %v7210_v56 = vld [vmem:[%s7357_s25 + $0x28] sm:$0xff]  }
  0x36   : > { %v1460_v27 = vor.u32 %v1458_v59, %v1456_v10  ;;  %v1470_v29 = vshll.u32 %v7208_v62, 16  ;;  %v7606_v31 = vand.u32 %v6513_v7, %v7329_v5  ;;  %vm9710_vm5 = vcmask 1044484  }
  0x37   : > { %9709 = vst [vmem:[#allocation3_spill] sm:$0xff] %v7599_v22  ;;  %vm9711_vm13 = vcmask 1040384   ;;  %vm9714_vm2 = vsmask.f32 7424  ;;  %vm1888_vm10 = vcmp.lt.s32.totalorder %v335_v17, 15  ;;  %vm7615_vm11 = vcmp.lt.s32.totalorder %v349_v18, 15 }
  0x38   : > { %vm7610_vm1 = vmor %vm9711_vm13, %vm9710_vm5  ;;  %v1457_v34 = vsel %vm9714_vm2, %v1452_v16, %v1456_v10  ;;  %v7620_v21 = vrot.slane %v7599_v22, 4  ;;  %vm9717_vm7 = vcmask 23552   ;;  %vm9587_vm13 = vcmp.ne.s16.totalorder %v7599_v22, 0  ;;  %v1856_v10 = vld [vmem:[%s7357_s25 + $0x8] sm:$0xf] }
  0x39   : > { %6883 = vmatmul.mubr.msk.bf16.gmra.mrb[12].mxu0 %vm9717_vm7, %v6353_v11  ;;  %vm9718_vm14 = vmmov %vm9717_vm7  ;;  %v1468_v41 = vor.u32 %v1466_v28, %v1464_v13  ;;  %v1472_v44 = vrot.slane %v1470_v29, 1  ;;  %v2178_v46 = vsel %vm9587_vm13, %v1854_v20, 0  ;;  %v297_v48 = vadd.s32 40, %v7337_v8  ;;  %v1858_v20 = vld [vmem:[%s7357_s25 + $0x10] sm:$0xf] }
  0x3a   : > { %6904 = vmatprep.mubr.msk.bf16.mxu1 %vm9718_vm14, %v1457_v34  ;;  %vm9719_vm15 = vmmov %vm9714_vm2  ;;  %v1474_v49 = vshrl.u32 %v7208_v62, 16  ;;  %vm9597_vm7 = vcmask 1046528   ;;  %v1478_v59 = vshll.u32 %v7602_v25, 16  ;;  %v299_v4 = vadd.s32 56, %v7337_v8 }
  0x3b   : > { %v1465_v35 = vsel %vm9719_vm15, %v1460_v27, %v1464_v13  ;;  %vm1984_vm5 = vmpackc.low %vm1888_vm10, %vm1888_vm10  ;;  %v363_v0 = vand.u32 15, %v297_v48  ;;  %v9726_v28 = vmov 0  ;;  %v9758_v36 = vmov 0 }
  0x3c   : > { %vm1986_vm2 = vmpackc.low %vm7615_vm11, %vm7615_vm11  ;;  %v2016_v45 = vsel %vm1984_vm5, 65537, %v9618_v55  ;;  %v1476_v1 = vor.u32 %v1474_v49, %v1472_v44  ;;  %v1480_v11 = vrot.slane %v1478_v59, 1  ;;  %vm9722_vm11 = vcmask 23552  }
  0x3d   : > { %v2018_v51 = vsel %vm1986_vm2, 65537, %v9618_v55  ;;  %v2052_v53 = vrot.slane %v2016_v45, 7  ;;  %vm9720_vm14 = vmmov %vm9719_vm15  ;;  %6905 = vmatmul.mubr.msk.bf16.vlgmr.msra.gmra.mrb[16].mxu1 %vm9722_vm11, %v1465_v35  ;;  %vm1892_vm10 = vcmp.lt.s32.totalorder %v363_v0, 15  ;;  %v377_v48 = vand.u32 15, %v299_v4  ;;  %v7211_v4 = vld [vmem:[%s7357_s25 + $0x30] sm:$0xff]  }
  0x3e   : > { %v1473_v58 = vsel %vm9720_vm14, %v1468_v41, %v1472_v44  ;;  %v2058_v63 = vrot.slane %v2018_v51, 7  ;;  %6971 = vmatpush3.bf16.msra.mxu1 %v7389_v33  ;;  %vm9724_vm2 = vmmov %vm9722_vm11  ;;  %vm9725_vm11 = vsmask.f32 7424  ;;  %v1859_v41 = vld [vmem:[%s7357_s25 + $0x14] sm:$0xf] }
  0x3f   : > { %v7642_v62 = vsel %vm7610_vm1, %v7620_v21, %v2052_v53  ;;  %v2054_v7 = vrot.slane %v2052_v53, 4  ;;  %6908 = vmatprep.mubr.msk.bf16.mxu1 %vm9724_vm2, %v1473_v58  ;;  %vm1988_vm14 = vmpackc.low %vm1892_vm10, %vm1892_vm10  ;;  %v1481_v27 = vsel %vm9725_vm11, %v1476_v1, %v1480_v11  ;;  %7038 = vmatprep.subr.bf16.mxu1 %v7606_v31  ;;  %v1860_v51 = vld [vmem:[%s7357_s25 + $0x18] sm:$0xf]  ;;  %v1482_v53 = vshrl.u32 %v7602_v25, 16 }
  0x40   : > { %9721 = vst [vmem:[#allocation4_spill] sm:$0xff] %v7642_v62  ;;  %v7649_v13 = vsel %vm7610_vm1, %v7620_v21, %v2058_v63  ;;  %v2060_v16 = vrot.slane %v2058_v63, 4  ;;  %vm9590_vm15 = vcmp.ne.s16.totalorder %v7642_v62, 0  ;;  %v2020_v34 = vsel %vm1988_vm14, 65537, %v9618_v55 }
  0x41   : > { %9723 = vst [vmem:[#allocation5_spill] sm:$0xff] %v7649_v13  ;;  %v2056_v17 = vsel %vm7610_vm1, %v2054_v7, %v7599_v22  ;;  %vm9588_vm5 = vcmp.ne.s16.totalorder %v7649_v13, 0  ;;  %v2179_v18 = vsel %vm9590_vm15, %v1855_v50, 0  ;;  %v2064_v45 = vrot.slane %v2020_v34, 7 }
  0x42   : > { %vm7662_vm13 = vcmp.ne.s16.totalorder %v2056_v17, 0  ;;  %v2181_v33 = vsel %vm9588_vm5, %v1857_v60, 0  ;;  %v6413_v29 = vcombine.low %v2178_v46, %v2179_v18  ;;  %v2062_v44 = vsel %vm7610_vm1, %v2060_v16, %v7599_v22 }
  0x43   : > { %v9727_v28 = vsel %vm7662_vm13, 4294967295, %v9726_v28  ;;  %v2180_v35 = vsel %vm7662_vm13, %v1856_v10, 0  ;;  %vm7677_vm10 = vcmp.ne.s16.totalorder %v2062_v44, 0  ;;  %v9729_v46 = vmov 0 }
  0x44   : > { %9728 = vst [vmem:[#allocation6_spill] sm:$0xff] %v9727_v28  ;;  %v6414_v49 = vcombine.low %v2180_v35, %v2181_v33  ;;  %v2329_v50 = vrot.slane %v6413_v29, 1  ;;  %v9730_v46 = vsel %vm7677_vm10, 4294967295, %v9729_v46  ;;  %v7686_v58 = vsel %vm7610_vm1, %v7620_v21, %v2064_v45  ;;  %v8230_v28 = vld [vmem:[%s7357_s25 + $0x78] sm:$0xff]  }
  0x45   : > { %v2182_v59 = vsel %vm7677_vm10, %v1858_v20, 0  ;;  %vm1894_vm2 = vcmp.lt.s32.totalorder %v377_v48, 15  ;;  %v2066_v60 = vrot.slane %v2064_v45, 4  ;;  %vm9589_vm14 = vcmp.ne.s16.totalorder %v7686_v58, 0 }
  0x46   : > { %v2330_v63 = vrot.slane %v6414_v49, 1  ;;  %vm1990_vm11 = vmpackc.low %vm1894_vm2, %vm1894_vm2  ;;  %v1484_v0 = vor.u32 %v1482_v53, %v1480_v11  ;;  %v1486_v1 = vshll.u32 %v7210_v56, 16  ;;  %v2183_v25 = vsel %vm9589_vm14, %v1859_v41, 0  ;;  %v1861_v11 = vld [vmem:[%s7357_s25 + $0x1c] sm:$0xf] }
  0x47   : > { %v2022_v7 = vsel %vm1990_vm11, 65537, %v9618_v55  ;;  %v2068_v10 = vsel %vm7610_vm1, %v2066_v60, %v7599_v22  ;;  %v301_v16 = vadd.s32 72, %v7337_v8  ;;  %v6415_v18 = vcombine.low %v2182_v59, %v2183_v25  ;;  %v7212_v49 = vld [vmem:[%s7357_s25 + $0x38] sm:$0xff]   ;;  %v1862_v53 = vld [vmem:[%s7357_s25 + $0x20] sm:$0xf] }
  0x48   : > { %v2331_v17 = vsel %vm9597_vm7, %v2329_v50, %v2330_v63  ;;  %vm9731_vm5 = vcmask 23552   ;;  %v2070_v20 = vrot.slane %v2022_v7, 7  ;;  %vm7702_vm2 = vcmp.ne.s16.totalorder %v2068_v10, 0  ;;  %v1863_v25 = vld [vmem:[%s7357_s25 + $0x24] sm:$0xf] }
  0x49   : > { %6909 = vmatmul.mubr.msk.bf16.gmra.mrb[20].mxu1 %vm9731_vm5, %v1481_v27  ;;  %v9732_v33 = vmov 0  ;;  %vm9734_vm11 = vmmov %vm9731_vm5  ;;  %v2184_v29 = vsel %vm7702_vm2, %v1860_v51, 0  ;;  %v1488_v34 = vrot.slane %v1486_v1, 1  ;;  %v391_v35 = vand.u32 15, %v301_v16 }
  0x4a   : > { %v9733_v33 = vsel %vm7702_vm2, 4294967295, %v9732_v33  ;;  %6938 = vmatprep.mubr.msk.bf16.mxu0 %vm9734_vm11, %v2331_v17  ;;  %v1490_v41 = vshrl.u32 %v7210_v56, 16  ;;  %v2332_v44 = vrot.slane %v6415_v18, 1  ;;  %v7712_v27 = vsel %vm7610_vm1, %v7620_v21, %v2070_v20 }
  0x4b   : > { %v2072_v45 = vrot.slane %v2070_v20, 4  ;;  %v1494_v48 = vshll.u32 %v7211_v4, 16  ;;  %vm9595_vm5 = vcmp.ne.s16.totalorder %v7712_v27, 0  ;;  %vm9735_vm14 = vsmask.f32 7424  ;;  %v7213_v20 = vld [vmem:[%s7357_s25 + $0x40] sm:$0xff]  }
  0x4c   : > { %v1489_v50 = vsel %vm9735_vm14, %v1484_v0, %v1488_v34  ;;  %vm1896_vm11 = vcmp.lt.s32.totalorder %v391_v35, 15  ;;  %v1492_v51 = vor.u32 %v1490_v41, %v1488_v34  ;;  %v2333_v59 = vsel %vm9597_vm7, %v2330_v63, %v2332_v44 }
  0x4d   : > { %v2185_v56 = vsel %vm9595_vm5, %v1861_v11, 0  ;;  %vm9736_vm15 = vcmask 23552   ;;  %vm1992_vm2 = vmpackc.low %vm1896_vm11, %vm1896_vm11  ;;  %v2074_v60 = vsel %vm7610_vm1, %v2072_v45, %v7599_v22  ;;  %v1496_v1 = vrot.slane %v1494_v48, 1 }
  0x4e   : > { %6912 = vmatprep.mubr.msk.bf16.mxu1 %vm9736_vm15, %v1489_v50  ;;  %vm9737_vm10 = vmmov %vm9736_vm15  ;;  %v6416_v0 = vcombine.low %v2184_v29, %v2185_v56  ;;  %v2024_v7 = vsel %vm1992_vm2, 65537, %v9618_v55  ;;  %vm7728_vm14 = vcmp.ne.s16.totalorder %v2074_v60, 0  ;;  %v9738_v63 = vmov 0 }
  0x4f   : > { %6939 = vmatmul.mubr.msk.bf16.vlgmr.msra.gmra.mrb[16].mxu0 %vm9737_vm10, %v2333_v59  ;;  %v9739_v63 = vsel %vm7728_vm14, 4294967295, %v9738_v63  ;;  %v303_v10 = vadd.s32 88, %v7337_v8  ;;  %v2076_v16 = vrot.slane %v2024_v7, 7  ;;  %v2186_v17 = vsel %vm7728_vm14, %v1862_v53, 0 }
  0x50   : > { %7005 = vmatpush3.bf16.msra.mxu0 %v7418_v52  ;;  %vm9740_vm15 = vsmask.f32 7424  ;;  %v1498_v11 = vshrl.u32 %v7211_v4, 16  ;;  %v2334_v29 = vrot.slane %v6416_v0, 1  ;;  %v1502_v35 = vshll.u32 %v7212_v49, 16 }
  0x51   : > { %v1497_v18 = vsel %vm9740_vm15, %v1492_v51, %v1496_v1  ;;  %v405_v34 = vand.u32 15, %v303_v10  ;;  %v305_v41 = vadd.s32 104, %v7337_v8  ;;  %v7742_v45 = vsel %vm7610_vm1, %v7620_v21, %v2076_v16  ;;  %v1864_v52 = vld [vmem:[%s7357_s25 + $0x28] sm:$0xf]  ;;  %vm9741_vm15 = vmmov %vm9737_vm10 }
  0x52   : > { %6913 = vmatmul.mubr.msk.bf16.gmra.mrb[24].mxu1 %vm9737_vm10, %v1497_v18  ;;  %v2078_v48 = vrot.slane %v2076_v16, 4  ;;  %v1500_v50 = vor.u32 %v1498_v11, %v1496_v1  ;;  %v1506_v53 = vshrl.u32 %v7212_v49, 16  ;;  %v2335_v4 = vsel %vm9597_vm7, %v2332_v44, %v2334_v29  ;;  %v7755_v1 = vld [vmem:[%s7357_s25 + $0x48] sm:$0xff]  }
  0x53   : > { %vm9596_vm2 = vcmp.ne.s16.totalorder %v7742_v45, 0  ;;  %vm1898_vm11 = vcmp.lt.s32.totalorder %v405_v34, 15  ;;  %v1504_v51 = vrot.slane %v1502_v35, 1  ;;  %6942 = vmatprep.mubr.msk.bf16.mxu0 %vm9741_vm15, %v2335_v4  ;;  %v419_v60 = vand.u32 15, %v305_v41  ;;  %v1865_v44 = vld [vmem:[%s7357_s25 + $0x2c] sm:$0xf] }
  0x54   : > { %v2187_v59 = vsel %vm9596_vm2, %v1863_v25, 0  ;;  %vm1994_vm5 = vmpackc.low %vm1898_vm11, %vm1898_vm11  ;;  %v2080_v56 = vsel %vm7610_vm1, %v2078_v48, %v7599_v22  ;;  %v1510_v0 = vshll.u32 %v7213_v20, 16  ;;  %v9742_v10 = vmov 0 }
  0x55   : > { %v6417_v49 = vcombine.low %v2186_v17, %v2187_v59  ;;  %v2026_v7 = vsel %vm1994_vm5, 65537, %v9618_v55  ;;  %vm7759_vm10 = vcmp.ne.s16.totalorder %v2080_v56, 0  ;;  %vm9744_vm15 = vsmask.f32 7424 }
  0x56   : > { %v9743_v10 = vsel %vm7759_vm10, 4294967295, %v9742_v10  ;;  %v1505_v16 = vsel %vm9744_vm15, %v1500_v50, %v1504_v51  ;;  %v2082_v25 = vrot.slane %v2026_v7, 7  ;;  %v2188_v18 = vsel %vm7759_vm10, %v1864_v52, 0  ;;  %v7215_v7 = vld [vmem:[%s7357_s25 + $0x50] sm:$0xff]  }
  0x57   : > { %vm9745_vm11 = vcmask 23552   ;;  %vm1900_vm2 = vcmp.lt.s32.totalorder %v419_v60, 15  ;;  %v1508_v11 = vor.u32 %v1506_v53, %v1504_v51  ;;  %v2336_v34 = vrot.slane %v6417_v49, 1  ;;  %v1866_v51 = vld [vmem:[%s7357_s25 + $0x30] sm:$0xf] }
  0x58   : > { %6916 = vmatprep.mubr.msk.bf16.mxu1 %vm9745_vm11, %v1505_v16  ;;  %vm1996_vm7 = vmpackc.low %vm1900_vm2, %vm1900_vm2  ;;  %v1512_v17 = vrot.slane %v1510_v0, 1  ;;  %v307_v35 = vadd.s32 120, %v7337_v8  ;;  %v1514_v41 = vshrl.u32 %v7213_v20, 16  ;;  %v7771_v48 = vsel %vm7610_vm1, %v7620_v21, %v2082_v25  ;;  %v1867_v60 = vld [vmem:[%s7357_s25 + $0x34] sm:$0xf] }
  0x59   : > { %v2028_v50 = vsel %vm1996_vm7, 65537, %v9618_v55  ;;  %v2084_v52 = vrot.slane %v2082_v25, 4  ;;  %v1518_v4 = vshll.u32 %v7755_v1, 16  ;;  %vm9746_vm5 = vcmask 1046528   ;;  %vm9747_vm7 = vmmov %vm9745_vm11 }
  0x5a   : > { %v2337_v53 = vsel %vm9746_vm5, %v2334_v29, %v2336_v34  ;;  %vm9598_vm2 = vcmp.ne.s16.totalorder %v7771_v48, 0  ;;  %v2088_v59 = vrot.slane %v2028_v50, 7  ;;  %v1513_v20 = vsel %vm9744_vm15, %v1508_v11, %v1512_v17 }
  0x5b   : > { %6943 = vmatmul.mubr.msk.bf16.gmra.mrb[20].mxu0 %vm9745_vm11, %v2337_v53  ;;  %v2189_v56 = vsel %vm9598_vm2, %v1865_v44, 0  ;;  %v2086_v0 = vsel %vm7610_vm1, %v2084_v52, %v7599_v22  ;;  %6917 = vmatmul.mubr.msk.bf16.gmra.mrb[28].mxu1 %vm9747_vm7, %v1513_v20  ;;  %v433_v29 = vand.u32 15, %v307_v35  ;;  %v1516_v49 = vor.u32 %v1514_v41, %v1512_v17  ;;  %v1868_v44 = vld [vmem:[%s7357_s25 + $0x38] sm:$0xf] }
  0x5c   : > { %v6418_v16 = vcombine.low %v2188_v18, %v2189_v56  ;;  %v7791_v25 = vsel %vm7610_vm1, %v7620_v21, %v2088_v59  ;;  %vm7793_vm5 = vcmp.ne.s16.totalorder %v2086_v0, 0  ;;  %v9748_v11 = vmov 0 }
  0x5d   : > { %v9749_v11 = vsel %vm7793_vm5, 4294967295, %v9748_v11  ;;  %v2090_v50 = vrot.slane %v2088_v59, 4  ;;  %vm9603_vm15 = vcmp.ne.s16.totalorder %v7791_v25, 0  ;;  %v2190_v52 = vsel %vm7793_vm5, %v1866_v51, 0 }
  0x5e   : > { %vm1902_vm11 = vcmp.lt.s32.totalorder %v433_v29, 15  ;;  %v1520_v17 = vrot.slane %v1518_v4, 1  ;;  %v2338_v35 = vrot.slane %v6418_v16, 1  ;;  %v2191_v18 = vsel %vm9603_vm15, %v1867_v60, 0 }
  0x5f   : > { %vm1998_vm7 = vmpackc.low %vm1902_vm11, %vm1902_vm11  ;;  %v2092_v41 = vsel %vm7610_vm1, %v2090_v50, %v7599_v22  ;;  %v309_v53 = vadd.s32 136, %v7337_v8  ;;  %v6419_v59 = vcombine.low %v2190_v52, %v2191_v18  ;;  %v9750_v56 = vmov 0  ;;  %v1869_v50 = vld [vmem:[%s7357_s25 + $0x3c] sm:$0xf] }
  0x60   : > { %v2030_v20 = vsel %vm1998_vm7, 65537, %v9618_v55  ;;  %vm7808_vm2 = vcmp.ne.s16.totalorder %v2092_v41, 0  ;;  %vm9752_vm5 = vsmask.f32 7424  ;;  %vm9753_vm10 = vcmask 1046528  }
  0x61   : > { %v9751_v56 = vsel %vm7808_vm2, 4294967295, %v9750_v56  ;;  %v1521_v4 = vsel %vm9752_vm5, %v1516_v49, %v1520_v17  ;;  %v2339_v51 = vsel %vm9753_vm10, %v2336_v34, %v2338_v35  ;;  %v2094_v60 = vrot.slane %v2030_v20, 7 }
  0x62   : > { %v2192_v0 = vsel %vm7808_vm2, %v1868_v44, 0  ;;  %vm9754_vm11 = vcmask 23552   ;;  %v447_v29 = vand.u32 15, %v309_v53  ;;  %v2340_v16 = vrot.slane %v6419_v59, 1  ;;  %v7216_v44 = vld [vmem:[%s7357_s25 + $0x58] sm:$0xff]  }
  0x63   : > { %6920 = vmatprep.mubr.msk.bf16.mxu1 %vm9754_vm11, %v1521_v4  ;;  %vm9755_vm15 = vmmov %vm9754_vm11  ;;  %v1522_v52 = vshrl.u32 %v7755_v1, 16  ;;  %v1526_v18 = vshll.u32 %v7215_v7, 16  ;;  %v311_v41 = vadd.s32 152, %v7337_v8  ;;  %v7824_v34 = vsel %vm7610_vm1, %v7620_v21, %v2094_v60  ;;  %v1870_v59 = vld [vmem:[%s7357_s25 + $0x40] sm:$0xf] }
  0x64   : > { %6946 = vmatprep.mubr.msk.bf16.mxu0 %vm9755_vm15, %v2339_v51  ;;  %9756 = vst [vmem:[#allocation7_spill] sm:$0xff] %v7824_v34  ;;  %vm1904_vm10 = vcmp.lt.s32.totalorder %v447_v29, 15  ;;  %v2096_v49 = vrot.slane %v2094_v60, 4  ;;  %v1530_v20 = vshrl.u32 %v7215_v7, 16  ;;  %vm9757_vm5 = vcmask 1046528  }
  0x65   : > { %v2341_v53 = vsel %vm9757_vm5, %v2338_v35, %v2340_v16  ;;  %vm9604_vm15 = vcmp.ne.s16.totalorder %v7824_v34, 0  ;;  %vm2000_vm7 = vmpackc.low %vm1904_vm10, %vm1904_vm10  ;;  %v1524_v1 = vor.u32 %v1522_v52, %v1520_v17  ;;  %v1528_v4 = vrot.slane %v1526_v18, 1  ;;  %v1872_v52 = vld [vmem:[%s7357_s25 + $0x48] sm:$0xf] }
  0x66   : > { %6947 = vmatmul.mubr.msk.bf16.gmra.mrb[24].mxu0 %vm9754_vm11, %v2341_v53  ;;  %v2193_v51 = vsel %vm9604_vm15, %v1869_v50, 0  ;;  %v2032_v29 = vsel %vm2000_vm7, 65537, %v9618_v55  ;;  %v2098_v7 = vsel %vm7610_vm1, %v2096_v49, %v7599_v22  ;;  %v461_v60 = vand.u32 15, %v311_v41 }
  0x67   : > { %v6420_v35 = vcombine.low %v2192_v0, %v2193_v51  ;;  %v2100_v9 = vrot.slane %v2032_v29, 7  ;;  %vm7838_vm5 = vcmp.ne.s16.totalorder %v2098_v7, 0  ;;  %vm9761_vm10 = vsmask.f32 7424  ;;  %v7217_v51 = vld [vmem:[%s7357_s25 + $0x60] sm:$0xff]  }
  0x68   : > { %v9759_v36 = vsel %vm7838_vm5, 4294967295, %v9758_v36  ;;  %v1529_v17 = vsel %vm9761_vm10, %v1524_v1, %v1528_v4  ;;  %v2194_v50 = vsel %vm7838_vm5, %v1870_v59, 0  ;;  %vm1906_vm7 = vcmp.lt.s32.totalorder %v461_v60, 15 }
  0x69   : > { %9760 = vst [vmem:[#allocation8_spill] sm:$0xff] %v9759_v36  ;;  %6921 = vmatmul.mubr.msk.bf16.gmra.mrb[32].mxu1 %vm9754_vm11, %v1529_v17  ;;  %v1532_v18 = vor.u32 %v1530_v20, %v1528_v4  ;;  %v1534_v49 = vshll.u32 %v7216_v44, 16  ;;  %v2342_v41 = vrot.slane %v6420_v35, 1  ;;  %v7850_v0 = vsel %vm7610_vm1, %v7620_v21, %v2100_v9  ;;  %vm2002_vm15 = vmpackc.low %vm1906_vm7, %vm1906_vm7  ;;  %v1873_v17 = vld [vmem:[%s7357_s25 + $0x4c] sm:$0xf] }
  0x6a   : > { %9762 = vst [vmem:[#allocation9_spill] sm:$0xff] %v7850_v0  ;;  %v2102_v53 = vrot.slane %v2100_v9, 4  ;;  %v313_v1 = vadd.s32 168, %v7337_v8  ;;  %vm9609_vm10 = vcmp.ne.s16.totalorder %v7850_v0, 0  ;;  %v2034_v59 = vsel %vm2002_vm15, 65537, %v9618_v55 }
  0x6b   : > { %v1536_v29 = vrot.slane %v1534_v49, 1  ;;  %v1538_v20 = vshrl.u32 %v7216_v44, 16  ;;  %vm9763_vm11 = vcmask 1046528   ;;  %v2195_v7 = vsel %vm9609_vm10, %v1871_v37, 0  ;;  %v7218_v49 = vld [vmem:[%s7357_s25 + $0x68] sm:$0xff]  }
  0x6c   : > { %v2343_v4 = vsel %vm9763_vm11, %v2340_v16, %v2342_v41  ;;  %v2104_v60 = vsel %vm7610_vm1, %v2102_v53, %v7599_v22  ;;  %v2106_v9 = vrot.slane %v2034_v59, 7  ;;  %vm9764_vm7 = vcmask 23552  }
  0x6d   : > { %6950 = vmatprep.mubr.msk.bf16.mxu0 %vm9764_vm7, %v2343_v4  ;;  %v6421_v35 = vcombine.low %v2194_v50, %v2195_v7  ;;  %vm7864_vm5 = vcmp.ne.s16.totalorder %v2104_v60, 0  ;;  %v9765_v36 = vmov 0  ;;  %vm9768_vm15 = vsmask.f32 7424  ;;  %vm9770_vm11 = vmmov %vm9764_vm7  ;;  %v1874_v7 = vld [vmem:[%s7357_s25 + $0x50] sm:$0xf] }
  0x6e   : > { %v9766_v36 = vsel %vm7864_vm5, 4294967295, %v9765_v36  ;;  %v1537_v44 = vsel %vm9768_vm15, %v1532_v18, %v1536_v29  ;;  %v475_v16 = vand.u32 15, %v313_v1  ;;  %v7873_v37 = vsel %vm7610_vm1, %v7620_v21, %v2106_v9 }
  0x6f   : > { %9767 = vst [vmem:[#allocation10_spill] sm:$0xff] %v9766_v36  ;;  %9769 = vst [vmem:[#allocation11_spill] sm:$0xff] %v7873_v37  ;;  %v2196_v53 = vsel %vm7864_vm5, %v1872_v52, 0  ;;  %6924 = vmatprep.mubr.msk.bf16.mxu1 %vm9770_vm11, %v1537_v44  ;;  %v2108_v50 = vrot.slane %v2106_v9, 4  ;;  %v1540_v59 = vor.u32 %v1538_v20, %v1536_v29  ;;  %v2344_v4 = vrot.slane %v6421_v35, 1 }
  0x70   : > { %vm9620_vm7 = vcmp.ne.s16.totalorder %v7873_v37, 0  ;;  %vm1908_vm10 = vcmp.lt.s32.totalorder %v475_v16, 15  ;;  %v1542_v18 = vshll.u32 %v7217_v51, 16  ;;  %v315_v52 = vadd.s32 184, %v7337_v8  ;;  %v1875_v36 = vld [vmem:[%s7357_s25 + $0x54] sm:$0xf] }
  0x71   : > { %v2197_v1 = vsel %vm9620_vm7, %v1873_v17, 0  ;;  %vm2004_vm15 = vmpackc.low %vm1908_vm10, %vm1908_vm10  ;;  %v2110_v60 = vsel %vm7610_vm1, %v2108_v50, %v7599_v22  ;;  %v1546_v44 = vshrl.u32 %v7217_v51, 16  ;;  %vm9771_vm11 = vcmask 1046528  }
  0x72   : > { %v2345_v29 = vsel %vm9771_vm11, %v2342_v41, %v2344_v4  ;;  %v6422_v20 = vcombine.low %v2196_v53, %v2197_v1  ;;  %v2036_v9 = vsel %vm2004_vm15, 65537, %v9618_v55  ;;  %vm7888_vm5 = vcmp.ne.s16.totalorder %v2110_v60, 0  ;;  %v7219_v55 = vld [vmem:[%s7357_s25 + $0x70] sm:$0xff]   ;;  %vm9778_vm15 = vmmov %vm9771_vm11 }
  0x73   : > { %v9772_v35 = vmov 0  ;;  %vm9775_vm2 = vcmask 23552   ;;  %v2112_v17 = vrot.slane %v2036_v9, 7  ;;  %v2198_v16 = vsel %vm7888_vm5, %v1874_v7, 0 }
  0x74   : > { %v9773_v35 = vsel %vm7888_vm5, 4294967295, %v9772_v35  ;;  %6951 = vmatmul.mubr.msk.bf16.gmra.mrb[28].mxu0 %vm9775_vm2, %v2345_v29  ;;  %v1544_v50 = vrot.slane %v1542_v18, 1  ;;  %v489_v37 = vand.u32 15, %v315_v52  ;;  %v2346_v51 = vrot.slane %v6422_v20, 1  ;;  %v1876_v18 = vld [vmem:[%s7357_s25 + $0x58] sm:$0xf] }
  0x75   : > { %9774 = vst [vmem:[#allocation12_spill] sm:$0xff] %v9773_v35  ;;  %v1550_v41 = vshll.u32 %v7218_v49, 16  ;;  %v317_v53 = vadd.s32 200, %v7337_v8  ;;  %v1554_v1 = vshrl.u32 %v7218_v49, 16  ;;  %v7900_v60 = vsel %vm7610_vm1, %v7620_v21, %v2112_v17 }
  0x76   : > { %9776 = vst [vmem:[#allocation13_spill] sm:$0xff] %v7900_v60  ;;  %vm9777_vm10 = vsmask.f32 7424  ;;  %vm1910_vm2 = vcmp.lt.s32.totalorder %v489_v37, 15  ;;  %v2114_v9 = vrot.slane %v2112_v17, 4  ;;  %v2347_v7 = vsel %vm9778_vm15, %v2344_v4, %v2346_v51 }
  0x77   : > { %v1545_v29 = vsel %vm9777_vm10, %v1540_v59, %v1544_v50  ;;  %vm9638_vm11 = vcmp.ne.s16.totalorder %v7900_v60, 0  ;;  %vm9779_vm7 = vcmask 23552   ;;  %vm2006_vm5 = vmpackc.low %vm1910_vm2, %vm1910_vm2  ;;  %v1548_v49 = vor.u32 %v1546_v44, %v1544_v50  ;;  %v1877_v50 = vld [vmem:[%s7357_s25 + $0x5c] sm:$0xf] }
  0x78   : > { %6925 = vmatmul.mubr.msk.bf16.gmra.mrb[36].mxu1 %vm9779_vm7, %v1545_v29  ;;  %v1552_v52 = vrot.slane %v1550_v41, 1  ;;  %vm9780_vm14 = vmmov %vm9779_vm7  ;;  %v2199_v20 = vsel %vm9638_vm11, %v1875_v36, 0  ;;  %v9781_v59 = vmov 0   ;;  %v2116_v4 = vsel %vm7610_vm1, %v2114_v9, %v7599_v22 }
  0x79   : > { %6954 = vmatprep.mubr.msk.bf16.mxu0 %vm9780_vm14, %v2347_v7  ;;  %v2038_v37 = vsel %vm2006_vm5, 65537, %v9781_v59  ;;  %v503_v17 = vand.u32 15, %v317_v53  ;;  %v6423_v35 = vcombine.low %v2198_v16, %v2199_v20  ;;  %vm7915_vm7 = vcmp.ne.s16.totalorder %v2116_v4, 0  ;;  %v1878_v7 = vld [vmem:[%s7357_s25 + $0x60] sm:$0xf] }
  0x7a   : > { %v2118_v29 = vrot.slane %v2038_v37, 7  ;;  %v9782_v0 = vmov 0  ;;  %v1553_v44 = vsel %vm9777_vm10, %v1548_v49, %v1552_v52  ;;  %v2200_v36 = vsel %vm7915_vm7, %v1876_v18, 0  ;;  %v7220_v37 = vld [vmem:[%s7357_s25 + $0x78] sm:$0xff]  }
  0x7b   : > { %v9783_v0 = vsel %vm7915_vm7, 4294967295, %v9782_v0  ;;  %6928 = vmatprep.mubr.msk.bf16.mxu1 %vm9780_vm14, %v1553_v44  ;;  %vm1912_vm5 = vcmp.lt.s32.totalorder %v503_v17, 15  ;;  %v1556_v41 = vor.u32 %v1554_v1, %v1552_v52  ;;  %v1558_v9 = vshll.u32 %v7219_v55, 16  ;;  %v1879_v17 = vld [vmem:[%s7357_s25 + $0x64] sm:$0xf] }
  0x7c   : > { %9784 = vst [vmem:[#allocation14_spill] sm:$0xff] %v9783_v0  ;;  %v2348_v53 = vrot.slane %v6423_v35, 1  ;;  %v7927_v16 = vsel %vm7610_vm1, %v7620_v21, %v2118_v29  ;;  %vm2008_vm2 = vmpackc.low %vm1912_vm5, %vm1912_vm5  ;;  %v2120_v20 = vrot.slane %v2118_v29, 4  ;;  %v319_v49 = vadd.s32 216, %v7337_v8 }
  0x7d   : > { %9785 = vst [vmem:[#allocation15_spill] sm:$0xff] %v7927_v16  ;;  %vm9635_vm15 = vcmp.ne.s16.totalorder %v7927_v16, 0  ;;  %v2040_v18 = vsel %vm2008_vm2, 65537, %v9781_v59  ;;  %v1560_v1 = vrot.slane %v1558_v9, 1  ;;  %v1562_v52 = vshrl.u32 %v7219_v55, 16 }
  0x7e   : > { %vm9786_vm10 = vcmask 1046528   ;;  %v2201_v4 = vsel %vm9635_vm15, %v1877_v50, 0  ;;  %v2122_v29 = vsel %vm7610_vm1, %v2120_v20, %v7599_v22  ;;  %v2124_v44 = vrot.slane %v2040_v18, 7  ;;  %v1880_v9 = vld [vmem:[%s7357_s25 + $0x68] sm:$0xf] }
  0x7f   : > { %v2349_v35 = vsel %vm9786_vm10, %v2346_v51, %v2348_v53  ;;  %v6424_v0 = vcombine.low %v2200_v36, %v2201_v4  ;;  %vm7942_vm5 = vcmp.ne.s16.totalorder %v2122_v29, 0  ;;  %v9787_v60 = vmov 0  ;;  %v7221_v16 = vld [vmem:[%s7357_s25 + $0x80] ss:$0 sps:$4 sm:$0x11]   ;;  %vm9792_vm10 = vmmov %vm9780_vm14 }
  0x80   : > { %6955 = vmatmul.mubr.msk.bf16.gmra.mrb[32].mxu0 %vm9780_vm14, %v2349_v35  ;;  %v9788_v60 = vsel %vm7942_vm5, 4294967295, %v9787_v60  ;;  %vm9790_vm2 = vsmask.f32 7424  ;;  %v517_v51 = vand.u32 15, %v319_v49  ;;  %v7952_v50 = vsel %vm7610_vm1, %v7620_v21, %v2124_v44  ;;  %v2639_v35 = vld [vmem:[%s7357_s25 + $0xc] sm:$0xf] }
  0x81   : > { %9789 = vst [vmem:[#allocation16_spill] sm:$0xff] %v9788_v60  ;;  %v1561_v55 = vsel %vm9790_vm2, %v1556_v41, %v1560_v1  ;;  %9791 = vst [vmem:[#allocation17_spill] sm:$0xff] %v7952_v50  ;;  %v2202_v20 = vsel %vm7942_vm5, %v1878_v7, 0  ;;  %v2126_v36 = vrot.slane %v2124_v44, 4  ;;  %v1564_v18 = vor.u32 %v1562_v52, %v1560_v1  ;;  %v1881_v52 = vld [vmem:[%s7357_s25 + $0x6c] sm:$0xf] }
  0x82   : > { %6929 = vmatmul.mubr.msk.bf16.gmra.mrb[40].mxu1 %vm9792_vm10, %v1561_v55  ;;  %v2350_v4 = vrot.slane %v6424_v0, 1  ;;  %vm9645_vm14 = vcmp.ne.s16.totalorder %v7952_v50, 0  ;;  %vm1914_vm2 = vcmp.lt.s32.totalorder %v517_v51, 15  ;;  %v1566_v41 = vshll.u32 %v7220_v37, 16 }
  0x83   : > { %v2203_v49 = vsel %vm9645_vm14, %v1879_v17, 0  ;;  %vm2010_vm15 = vmpackc.low %vm1914_vm2, %vm1914_vm2  ;;  %v2128_v29 = vsel %vm7610_vm1, %v2126_v36, %v7599_v22  ;;  %v321_v7 = vadd.s32 232, %v7337_v8  ;;  %v1570_v60 = vshrl.u32 %v7220_v37, 16 }
  0x84   : > { %vm9793_vm10 = vcmask 1046528   ;;  %v6425_v1 = vcombine.low %v2202_v20, %v2203_v49  ;;  %v2042_v0 = vsel %vm2010_vm15, 65537, %v9781_v59  ;;  %vm7968_vm11 = vcmp.ne.s16.totalorder %v2128_v29, 0 }
  0x85   : > { %v2351_v44 = vsel %vm9793_vm10, %v2348_v53, %v2350_v4  ;;  %v9794_v55 = vmov 0  ;;  %vm9796_vm5 = vcmask 23552   ;;  %v2130_v17 = vrot.slane %v2042_v0, 7  ;;  %vm9798_vm2 = vmmov %vm9793_vm10 }
  0x86   : > { %v9795_v55 = vsel %vm7968_vm11, 4294967295, %v9794_v55  ;;  %6958 = vmatprep.mubr.msk.bf16.mxu0 %vm9796_vm5, %v2351_v44  ;;  %v2204_v51 = vsel %vm7968_vm11, %v1880_v9, 0  ;;  %v1568_v36 = vrot.slane %v1566_v41, 1  ;;  %v531_v50 = vand.u32 15, %v321_v7  ;;  %v7996_v44 = vld [vmem:[%s7357_s25 + $0x8] sm:$0xff]  }
  0x87   : > { %v2352_v34 = vrot.slane %v6425_v1, 1  ;;  %v1574_v37 = vshll.u32 %v7221_v16, 16  ;;  %v323_v53 = vadd.s32 248, %v7337_v8  ;;  %v2671_v20 = vsel %vm7348_vm3, %v2639_v35, 0 }
  0x88   : > { %v7981_v49 = vsel %vm7610_vm1, %v7620_v21, %v2130_v17  ;;  %vm9797_vm15 = vsmask.f32 7424  ;;  %vm1916_vm5 = vcmp.lt.s32.totalorder %v531_v50, 15  ;;  %v2132_v9 = vrot.slane %v2130_v17, 4 }
  0x89   : > { %v1569_v29 = vsel %vm9797_vm15, %v1564_v18, %v1568_v36  ;;  %v2353_v41 = vsel %vm9798_vm2, %v2350_v4, %v2352_v34  ;;  %vm9660_vm10 = vcmp.ne.s16.totalorder %v7981_v49, 0  ;;  %vm9799_vm14 = vcmask 23552   ;;  %vm2012_vm11 = vmpackc.low %vm1916_vm5, %vm1916_vm5  ;;  %v1882_v18 = vld [vmem:[%s7357_s25 + $0x70] sm:$0xf] }
  0x8a   : > { %6932 = vmatprep.mubr.msk.bf16.mxu1 %vm9799_vm14, %v1569_v29  ;;  %v1572_v8 = vor.u32 %v1570_v60, %v1568_v36  ;;  %v1576_v16 = vrot.slane %v1574_v37, 1  ;;  %vm9800_vm7 = vmmov %vm9799_vm14  ;;  %v2205_v35 = vsel %vm9660_vm10, %v1881_v52, 0  ;;  %v2044_v50 = vsel %vm2012_vm11, 65537, %v9781_v59  ;;  %v1883_v60 = vld [vmem:[%s7357_s25 + $0x74] sm:$0xf] }
  0x8b   : > { %6959 = vmatmul.mubr.msk.bf16.gmra.mrb[36].mxu0 %vm9800_vm7, %v2353_v41  ;;  %v2134_v4 = vsel %vm7610_vm1, %v2132_v9, %v7599_v22  ;;  %v545_v7 = vand.u32 15, %v323_v53  ;;  %v6426_v1 = vcombine.low %v2204_v51, %v2205_v35  ;;  %v2136_v0 = vrot.slane %v2044_v50, 7  ;;  %vm9803_vm14 = vmmov %vm9797_vm15  ;;  %v1884_v36 = vld [vmem:[%s7357_s25 + $0x78] sm:$0xf]  ;;  %v8011_v51 = vld [vmem:[%s7357_s25 + $0x10] sm:$0xff]  }
  0x8c   : > { %vm7999_vm7 = vcmp.ne.s16.totalorder %v2134_v4, 0  ;;  %v1577_v52 = vsel %vm9803_vm14, %v1572_v8, %v1576_v16  ;;  %vm9804_vm15 = vcmask 23552   ;;  %v9805_v37 = vsel %vm7368_vm6, %v7443_v2, 0  ;;  %v2642_v16 = vld [vmem:[%s7357_s25 + $0x18] sm:$0xf] }
  0x8d   : > { %6933 = vmatmul.mubr.msk.bf16.gmra.mrb[44].mxu1 %vm9804_vm15, %v1577_v52  ;;  %vm1918_vm11 = vcmp.lt.s32.totalorder %v545_v7, 15  ;;  %v6447_v53 = vcombine.low %v9805_v37, %v2671_v20  ;;  %v2354_v29 = vrot.slane %v6426_v1, 1  ;;  %v8016_v9 = vsel %vm7610_vm1, %v7620_v21, %v2136_v0  ;;  %v1885_v50 = vld [vmem:[%s7357_s25 + $0x7c] sm:$0xf]  ;;  %vm9809_vm14 = vmmov %vm9804_vm15  ;;  %v1886_v52 = vld [vmem:[%s7357_s25 + $0x80] sm:$0x1] }
  0x8e   : > { %9806 = vst [vmem:[#allocation18_spill] sm:$0xff] %v8016_v9  ;;  %v2206_v41 = vsel %vm7999_vm7, %v1882_v18, 0  ;;  %vm2014_vm5 = vmpackc.low %vm1918_vm11, %vm1918_vm11  ;;  %v2138_v8 = vrot.slane %v2136_v0, 4  ;;  %v9807_v2 = vsel %vm7348_vm3, %v7561_v40, 0  ;;  %v9808_v20 = vsel %vm7397_vm12, %v7446_v3, 0 }
  0x8f   : > { %v6448_v35 = vcombine.low %v9808_v20, %v9807_v2  ;;  %vm9657_vm2 = vcmp.ne.s16.totalorder %v8016_v9, 0  ;;  %v2046_v4 = vsel %vm2014_vm5, 65537, %v9781_v59  ;;  %6972 = vmatprep.mubr.msk.bf16.mxu1 %vm9809_vm14, %v6447_v53  ;;  %v3245_v18 = vshll.u32 %v7996_v44, 16  ;;  %v2643_v7 = vld [vmem:[%s7357_s25 + $0x1c] sm:$0xf]  ;;  %vm9811_vm11 = vmmov %vm9809_vm14 }
  0x90   : > { %vm9810_vm15 = vcmask 1046528   ;;  %v2207_v40 = vsel %vm9657_vm2, %v1883_v60, 0  ;;  %v2140_v3 = vsel %vm7610_vm1, %v2138_v8, %v7599_v22  ;;  %v2142_v0 = vrot.slane %v2046_v4, 7  ;;  %v2644_v20 = vld [vmem:[%s7357_s25 + $0x20] sm:$0xf]  ;;  %vm9822_vm2 = vmmov %vm9811_vm11 }
  0x91   : > { %v2355_v1 = vsel %vm9810_vm15, %v2352_v34, %v2354_v29  ;;  %v6427_v37 = vcombine.low %v2206_v41, %v2207_v40  ;;  %vm8043_vm5 = vcmp.ne.s16.totalorder %v2140_v3, 0  ;;  %v9812_v53 = vmov 0 }
  0x92   : > { %6962 = vmatprep.mubr.msk.bf16.mxu0 %vm9811_vm11, %v2355_v1  ;;  %v9813_v53 = vsel %vm8043_vm5, 4294967295, %v9812_v53  ;;  %v3243_v2 = vshrl.u32 %v7996_v44, 16  ;;  %v3250_v34 = vshll.u32 %v8011_v51, 16  ;;  %v8053_v60 = vsel %vm7610_vm1, %v7620_v21, %v2142_v0  ;;  %v2645_v1 = vld [vmem:[%s7357_s25 + $0x24] sm:$0xf] }
  0x93   : > { %9814 = vst [vmem:[#allocation19_spill] sm:$0xff] %v9813_v53  ;;  %9815 = vst [vmem:[#allocation20_spill] sm:$0xff] %v8053_v60  ;;  %v2208_v8 = vsel %vm8043_vm5, %v1884_v36, 0  ;;  %v8057_v4 = vrot.slane %v2142_v0, 4  ;;  %v2674_v41 = vsel %vm7458_vm4, %v2642_v16, 0  ;;  %v2356_v40 = vrot.slane %v6427_v37, 1 }
  0x94   : > { %vm9650_vm14 = vcmp.ne.s16.totalorder %v8053_v60, 0  ;;  %v3247_v32 = vrot.slane %v3245_v18, 1  ;;  %v2675_v21 = vsel %vm7348_vm3, %v2643_v7, 0  ;;  %v6547_v36 = vld [vmem:[%s9562_s1 + $0xc] sm:$0x3]  ;;  %v7224_v37 = vld [vmem:[%s7357_s25 + $0x18] sm:$0xff]  }
  0x95   : > { %9816 = vst [vmem:[#allocation21_spill] sm:$0xff] %v8057_v4  ;;  %v2209_v44 = vsel %vm9650_vm14, %v1885_v50, 0  ;;  %vm9656_vm1 = vcmp.ne.s16.totalorder %v8057_v4, 0  ;;  %v2357_v16 = vsel %vm9810_vm15, %v2354_v29, %v2356_v40  ;;  %6973 = vmatmul.mubr.msk.bf16.vlgmr.msra.gmra.mrb[48].mxu1 %vm9811_vm11, %v6448_v35  ;;  %v2646_v50 = vld [vmem:[%s7357_s25 + $0x28] sm:$0xf]  ;;  %vm9817_vm14 = vmmov %vm9811_vm11  ;;  %v6449_v7 = vcombine.low %v2674_v41, %v2675_v21  ;;  %v7225_v35 = vld [vmem:[%s7357_s25 + $0x20] sm:$0xff]  }
  0x96   : > { %v6428_v3 = vcombine.low %v2208_v8, %v2209_v44  ;;  %v2210_v0 = vsel %vm9656_vm1, %v1886_v52, 0  ;;  %6963 = vmatmul.mubr.msk.bf16.gmra.mrb[40].mxu0 %vm9817_vm14, %v2357_v16  ;;  %7039 = vmatpush3.bf16.msra.mxu1 %v7606_v31  ;;  %v2676_v59 = vsel %vm7469_vm8, %v2644_v20, 0  ;;  %v2647_v60 = vld [vmem:[%s7357_s25 + $0x2c] sm:$0xf]  ;;  %v2677_v29 = vsel %vm7348_vm3, %v2645_v1, 0  ;;  %vm9818_vm14 = vmmov %vm9811_vm11 }
  0x97   : > { %v6429_v18 = vcombine.low %v2210_v0, %v2210_v0  ;;  %v4369_v52 = vand.u32 %v6547_v36, %v7329_v5  ;;  %v3248_v44 = vor.u32 %v3247_v32, %v3243_v2  ;;  %v3252_v16 = vrot.slane %v3250_v34, 1  ;;  %6976 = vmatprep.mubr.msk.bf16.mxu1 %vm9818_vm14, %v6449_v7  ;;  %vm9819_vm1 = vmmov %vm9810_vm15  ;;  %v2648_v36 = vld [vmem:[%s7357_s25 + $0x30] sm:$0xf]  ;;  %v2655_v4 = vld [vmem:[%s7357_s25 + $0x4c] sm:$0xf] }
  0x98   : > { %v2358_v53 = vrot.slane %v6428_v3, 1  ;;  %v6450_v20 = vcombine.low %v2676_v59, %v2677_v29  ;;  %v2678_v41 = vsel %vm7519_vm9, %v2646_v50, 0  ;;  %v2679_v1 = vsel %vm7348_vm3, %v2647_v60, 0  ;;  %v2650_v50 = vld [vmem:[%s7357_s25 + $0x38] sm:$0xf] }
  0x99   : > { %v2360_v8 = vrot.slane %v6429_v18, 1  ;;  %7072 = vmatprep.subr.bf16.mxu0 %v4369_v52  ;;  %v3258_v21 = vshll.u32 %v7224_v37, 16  ;;  %v6451_v2 = vcombine.low %v2678_v41, %v2679_v1  ;;  %v3254_v32 = vshrl.u32 %v8011_v51, 16  ;;  %v2651_v18 = vld [vmem:[%s7357_s25 + $0x3c] sm:$0xf] }
  0x9a   : > { %v2359_v31 = vsel %vm9810_vm15, %v2356_v40, %v2358_v53  ;;  %v2649_v40 = vld [vmem:[%s7357_s25 + $0x34] sm:$0xf]  ;;  %vm9820_vm14 = vsmask.f32 7424  ;;  %v3262_v3 = vshrl.u32 %v7224_v37, 16  ;;  %v3266_v0 = vshll.u32 %v7225_v35, 16  ;;  %vm9821_vm15 = vmmov %vm9811_vm11 }
  0x9b   : > { %6966 = vmatprep.mubr.msk.bf16.mxu0 %vm9811_vm11, %v2359_v31  ;;  %v2361_v34 = vsel %vm9819_vm1, %v2358_v53, %v2360_v8  ;;  %v3253_v59 = vsel %vm9820_vm14, %v3248_v44, %v3252_v16  ;;  %v3260_v60 = vrot.slane %v3258_v21, 1  ;;  %vm9823_vm11 = vmmov %vm9822_vm2  ;;  %v7226_v53 = vld [vmem:[%s7357_s25 + $0x28] sm:$0xff]   ;;  %v2680_v51 = vsel %vm7533_vm0, %v2648_v36, 0 }
  0x9c   : > { %v2681_v7 = vsel %vm7348_vm3, %v2649_v40, 0  ;;  %v3256_v37 = vor.u32 %v3254_v32, %v3252_v16  ;;  %vm9824_vm1 = vmmov %vm9822_vm2  ;;  %vm9825_vm14 = vnez %v9703_v47  ;;  %v2683_v8 = vsel %vm7348_vm3, %v2651_v18, 0  ;;  %v2652_v16 = vld [vmem:[%s7357_s25 + $0x40] sm:$0xf]  ;;  %v2653_v32 = vld [vmem:[%s7357_s25 + $0x44] sm:$0xf] }
  0x9d   : > { %6977 = vmatmul.mubr.msk.bf16.gmra.mrb[52].mxu1 %vm9821_vm15, %v6450_v20  ;;  %v2682_v29 = vsel %vm9825_vm14, %v2650_v50, 0  ;;  %v3264_v44 = vor.u32 %v3262_v3, %v3260_v60  ;;  %v3268_v31 = vrot.slane %v3266_v0, 1  ;;  %v7227_v20 = vld [vmem:[%s7357_s25 + $0x30] sm:$0xff]   ;;  %v6452_v41 = vcombine.low %v2680_v51, %v2681_v7  ;;  %v2654_v36 = vld [vmem:[%s7357_s25 + $0x48] sm:$0xf]  ;;  %vm9829_vm10 = vmmov %vm9824_vm1 }
  0x9e   : > { %6967 = vmatmul.mubr.msk.bf16.gmra.mrb[44].mxu0 %vm9822_vm2, %v2361_v34  ;;  %6980 = vmatprep.mubr.msk.bf16.mxu1 %vm9823_vm11, %v6451_v2  ;;  %v3274_v1 = vshll.u32 %v7226_v53, 16  ;;  %v6453_v21 = vcombine.low %v2682_v29, %v2683_v8  ;;  %vm9826_vm2 = vsmask.f32 7424  ;;  %v3270_v34 = vshrl.u32 %v7225_v35, 16  ;;  %vm9828_vm11 = vmmov %vm9824_vm1  ;;  %v7228_v0 = vld [vmem:[%s7357_s25 + $0x38] sm:$0xff]   ;;  %v7229_v29 = vld [vmem:[%s7357_s25 + $0x40] sm:$0xff]  }
  0x9f   : > { %7006 = vmatprep.mubr.msk.bf16.mxu0 %vm9824_vm1, %v3253_v59  ;;  %v3261_v2 = vsel %vm9826_vm2, %v3256_v37, %v3260_v60  ;;  %vm9827_vm15 = vmmov %vm9826_vm2  ;;  %v3278_v59 = vshrl.u32 %v7226_v53, 16  ;;  %v3282_v50 = vshll.u32 %v7227_v20, 16  ;;  %vm9830_vm2 = vnez %v9706_v54 }
  0xa0   : > { %v3269_v40 = vsel %vm9827_vm15, %v3264_v44, %v3268_v31  ;;  %v3276_v3 = vrot.slane %v3274_v1, 1  ;;  %v2684_v35 = vsel %vm9830_vm2, %v2652_v16, 0  ;;  %v2685_v18 = vsel %vm7348_vm3, %v2653_v32, 0  ;;  %vm9832_vm5 = vmmov %vm9824_vm1 }
  0xa1   : > { %vm9831_vm15 = vnez %v9675_v26  ;;  %v3272_v53 = vor.u32 %v3270_v34, %v3268_v31  ;;  %v2687_v51 = vsel %vm7348_vm3, %v2655_v4, 0  ;;  %v3284_v37 = vrot.slane %v3282_v50, 1  ;;  %v2658_v34 = vld [vmem:[%s7357_s25 + $0x58] sm:$0xf] }
  0xa2   : > { %v2686_v60 = vsel %vm9831_vm15, %v2654_v36, 0  ;;  %v3280_v7 = vor.u32 %v3278_v59, %v3276_v3  ;;  %v6454_v8 = vcombine.low %v2684_v35, %v2685_v18  ;;  %v3290_v44 = vshll.u32 %v7228_v0, 16  ;;  %v2659_v36 = vld [vmem:[%s7357_s25 + $0x5c] sm:$0xf]  ;;  %vm9836_vm15 = vmmov %vm9824_vm1 }
  0xa3   : > { %v3294_v32 = vshrl.u32 %v7228_v0, 16  ;;  %v3298_v31 = vshll.u32 %v7229_v29, 16  ;;  %v2691_v0 = vsel %vm7348_vm3, %v2659_v36, 0  ;;  %v7232_v36 = vld [vmem:[%s7357_s25 + $0x58] sm:$0xff]  }
  0xa4   : > { %v3292_v4 = vrot.slane %v3290_v44, 1  ;;  %v2660_v44 = vld [vmem:[%s7357_s25 + $0x60] sm:$0xf] }
  0xa5   : > { %6981 = vmatmul.mubr.msk.bf16.gmra.mrb[56].mxu1 %vm9828_vm11, %v6452_v41  ;;  %v6455_v41 = vcombine.low %v2686_v60, %v2687_v51  ;;  %v3300_v18 = vrot.slane %v3298_v31, 1  ;;  %v7231_v60 = vld [vmem:[%s7357_s25 + $0x50] sm:$0xff]   ;;  %v2663_v31 = vld [vmem:[%s7357_s25 + $0x6c] sm:$0xf] }
  0xa6   : > { %7007 = vmatmul.mubr.msk.bf16.vlgmr.msra.gmra.mrb[48].mxu0 %vm9824_vm1, %v3261_v2  ;;  %6984 = vmatprep.mubr.msk.bf16.mxu1 %vm9829_vm10, %v6453_v21  ;;  %vm9833_vm10 = vsmask.f32 7424  ;;  %v3286_v21 = vshrl.u32 %v7227_v20, 16  ;;  %v2656_v2 = vld [vmem:[%s7357_s25 + $0x50] sm:$0xf]  ;;  %v3296_v35 = vor.u32 %v3294_v32, %v3292_v4  ;;  %v3314_v32 = vshll.u32 %v7231_v60, 16 }
  0xa7   : > { %7073 = vmatpush3.bf16.msra.mxu0 %v4369_v52  ;;  %7010 = vmatprep.mubr.msk.bf16.mxu0 %vm9832_vm5, %v3269_v40  ;;  %v3277_v1 = vsel %vm9833_vm10, %v3272_v53, %v3276_v3  ;;  %v2657_v52 = vld [vmem:[%s7357_s25 + $0x54] sm:$0xf]  ;;  %vm9834_vm11 = vmmov %vm9833_vm10  ;;  %v7230_v40 = vld [vmem:[%s7357_s25 + $0x48] sm:$0xff]   ;;  %vm9837_vm10 = vnez %v9677_v30 }
  0xa8   : > { %v3285_v16 = vsel %vm9834_vm11, %v3280_v7, %v3284_v37  ;;  %vm9835_vm5 = vmmov %vm9824_vm1  ;;  %v2688_v20 = vsel %vm9837_vm10, %v2656_v2, 0  ;;  %v2689_v59 = vsel %vm7348_vm3, %v2657_v52, 0  ;;  %v3288_v50 = vor.u32 %v3286_v21, %v3284_v37  ;;  %v6580_v53 = vld [vmem:[%s9562_s1 + $0xe] sm:$0x3]  ;;  %v2662_v21 = vld [vmem:[%s7357_s25 + $0x68] sm:$0xf] }
  0xa9   : > { %vm9838_vm11 = vmmov %vm9824_vm1  ;;  %v6456_v51 = vcombine.low %v2688_v20, %v2689_v59  ;;  %v3306_v7 = vshll.u32 %v7230_v40, 16  ;;  %v8162_v2 = vand.u32 %v6580_v53, %v7329_v5  ;;  %v8187_v53 = vld [vmem:[%s7357_s25 + $0x60] sm:$0xff]  }
  0xab   : > { %7106 = vmatprep.subr.bf16.mxu1 %v8162_v2 }
  0xad   : > { %6985 = vmatmul.mubr.msk.bf16.gmra.mrb[60].mxu1 %vm9835_vm5, %v6454_v8  ;;  %vm9839_vm5 = vnez %v9681_v57 }
  0xae   : > { %7011 = vmatmul.mubr.msk.bf16.gmra.mrb[52].mxu0 %vm9824_vm1, %v3277_v1  ;;  %6988 = vmatprep.mubr.msk.bf16.mxu1 %vm9836_vm15, %v6455_v41  ;;  %v2690_v3 = vsel %vm9839_vm5, %v2658_v34, 0  ;;  %vm9840_vm15 = vsmask.f32 7424  ;;  %v3302_v41 = vshrl.u32 %v7229_v29, 16  ;;  %v2661_v1 = vld [vmem:[%s7357_s25 + $0x64] sm:$0xf]  ;;  %vm9843_vm5 = vmmov %vm9838_vm11 }
  0xaf   : > { %7014 = vmatprep.mubr.msk.bf16.mxu0 %vm9838_vm11, %v3285_v16  ;;  %v6457_v8 = vcombine.low %v2690_v3, %v2691_v0  ;;  %v3293_v37 = vsel %vm9840_vm15, %v3288_v50, %v3292_v4  ;;  %vm9841_vm1 = vmmov %vm9840_vm15  ;;  %v3310_v16 = vshrl.u32 %v7230_v40, 16  ;;  %v6614_v34 = vld [vmem:[%s9562_s1 + $0x10] sm:$0x3]  ;;  %v3308_v29 = vrot.slane %v3306_v7, 1 }
  0xb0   : > { %v3301_v52 = vsel %vm9841_vm1, %v3296_v35, %v3300_v18  ;;  %vm9842_vm15 = vmmov %vm9838_vm11  ;;  %vm9844_vm1 = vnez %v9683_v6  ;;  %v2693_v40 = vsel %vm7348_vm3, %v2661_v1, 0  ;;  %v3304_v20 = vor.u32 %v3302_v41, %v3300_v18  ;;  %v2665_v41 = vld [vmem:[%s7357_s25 + $0x74] sm:$0xf]  ;;  %v2666_v1 = vld [vmem:[%s7357_s25 + $0x78] sm:$0xf] }
  0xb1   : > { %v2692_v4 = vsel %vm9844_vm1, %v2660_v44, 0  ;;  %vm9845_vm10 = vmmov %vm9843_vm5  ;;  %v2695_v50 = vsel %vm7348_vm3, %v2663_v31, 0  ;;  %v8184_v3 = vand.u32 %v6614_v34, %v7329_v5  ;;  %v3312_v0 = vor.u32 %v3310_v16, %v3308_v29  ;;  %v2664_v44 = vld [vmem:[%s7357_s25 + $0x70] sm:$0xf]  ;;  %v7234_v5 = vld [vmem:[%s7357_s25 + $0x68] sm:$0xff]  }
  0xb2   : > { %v3316_v35 = vrot.slane %v3314_v32, 1  ;;  %v3318_v18 = vshrl.u32 %v7231_v60, 16  ;;  %v3322_v7 = vshll.u32 %v7232_v36, 16  ;;  %v3326_v16 = vshrl.u32 %v7232_v36, 16  ;;  %v3650_v31 = vld [vmem:[%s7357_s25 + $0x8] sm:$0xe] }
  0xb3   : > { %7140 = vmatprep.subr.bf16.mxu0 %v8184_v3  ;;  %v3330_v32 = vshll.u32 %v8187_v53, 16  ;;  %v3651_v34 = vld [vmem:[%s7357_s25 + $0xc] sm:$0xf]  ;;  %v8202_v60 = vld [vmem:[%s7357_s25 + $0x70] sm:$0xff]   ;;  %vm9851_vm1 = vnez %v9691_v43 }
  0xb4   : > { %v2696_v36 = vsel %vm9851_vm1, %v2664_v44, 0 }
  0xb5   : > { %6989 = vmatmul.mubr.msk.bf16.gmra.mrb[64].mxu1 %vm9838_vm11, %v6456_v51  ;;  %vm9846_vm11 = vnez %v9689_v39  ;;  %v6458_v51 = vcombine.low %v2692_v4, %v2693_v40  ;;  %v3652_v4 = vld [vmem:[%s7357_s25 + $0x10] sm:$0xf]  ;;  %v3653_v40 = vld [vmem:[%s7357_s25 + $0x14] sm:$0xf] }
  0xb6   : > { %7015 = vmatmul.mubr.msk.bf16.gmra.mrb[56].mxu0 %vm9842_vm15, %v3293_v37  ;;  %6992 = vmatprep.mubr.msk.bf16.mxu1 %vm9843_vm5, %v6457_v8  ;;  %v2694_v59 = vsel %vm9846_vm11, %v2662_v21, 0  ;;  %v2667_v21 = vld [vmem:[%s7357_s25 + $0x7c] sm:$0xf]  ;;  %vm9849_vm11 = vmmov %vm9842_vm15 }
  0xb7   : > { %7018 = vmatprep.mubr.msk.bf16.mxu0 %vm9845_vm10, %v3301_v52  ;;  %v6459_v8 = vcombine.low %v2694_v59, %v2695_v50  ;;  %vm9847_vm10 = vsmask.f32 7424  ;;  %v2697_v59 = vsel %vm7348_vm3, %v2665_v41, 0 }
  0xb8   : > { %v3309_v37 = vsel %vm9847_vm10, %v3304_v20, %v3308_v29  ;;  %vm9848_vm5 = vmmov %vm9847_vm10  ;;  %v3320_v29 = vor.u32 %v3318_v18, %v3316_v35  ;;  %v3324_v20 = vrot.slane %v3322_v7, 1  ;;  %v3332_v7 = vrot.slane %v3330_v32, 1 }
  0xb9   : > { %v3317_v52 = vsel %vm9848_vm5, %v3312_v0, %v3316_v35  ;;  %vm9850_vm10 = vmmov %vm9849_vm11  ;;  %v2699_v0 = vsel %vm7348_vm3, %v2667_v21, 0  ;;  %v6460_v41 = vcombine.low %v2696_v36, %v2697_v59  ;;  %v3334_v32 = vshrl.u32 %v8187_v53, 16  ;;  %v3656_v36 = vld [vmem:[%s7357_s25 + $0x20] sm:$0xf]  ;;  %v3657_v59 = vld [vmem:[%s7357_s25 + $0x24] sm:$0xf] }
  0xba   : > { %vm9852_vm5 = vmmov %vm9850_vm10  ;;  %v3328_v18 = vor.u32 %v3326_v16, %v3324_v20 }
  0xbd   : > { %6993 = vmatmul.mubr.msk.bf16.gmra.mrb[68].mxu1 %vm9842_vm15, %v6458_v51  ;;  %vm9853_vm15 = vnez %v9698_v23 }
  0xbe   : > { %7019 = vmatmul.mubr.msk.bf16.gmra.mrb[60].mxu0 %vm9849_vm11, %v3309_v37  ;;  %6996 = vmatprep.mubr.msk.bf16.mxu1 %vm9850_vm10, %v6459_v8  ;;  %v2698_v50 = vsel %vm9853_vm15, %v2666_v1, 0  ;;  %vm9854_vm11 = vcmp.ne.s16.totalorder %v7599_v22, 0  ;;  %vm9855_vm10 = vcmp.ne.s16.totalorder %v7642_v62, 0  ;;  %v3685_v8 = vsel %vm7662_vm13, %v3652_v4, 0  ;;  %v2669_v4 = vld [vmem:[%s7357_s25 + $0x84] sm:$0xf] }
  0xbf   : > { %7022 = vmatprep.mubr.msk.bf16.mxu0 %vm9852_vm5, %v3317_v52  ;;  %v3683_v35 = vsel %vm9854_vm11, %v3650_v31, 0  ;;  %v3684_v51 = vsel %vm9855_vm10, %v3651_v34, 0  ;;  %vm9856_vm5 = vcmp.ne.s16.totalorder %v7649_v13, 0  ;;  %v3338_v37 = vshll.u32 %v7234_v5, 16  ;;  %v2668_v52 = vld [vmem:[%s7357_s25 + $0x80] sm:$0xf] }
  0xc0   : > { %v3686_v44 = vsel %vm9856_vm5, %v3653_v40, 0  ;;  %v3346_v1 = vshll.u32 %v8202_v60, 16  ;;  %v6461_v21 = vcombine.low %v2698_v50, %v2699_v0  ;;  %v6514_v31 = vcombine.low %v3683_v35, %v3684_v51  ;;  %v3654_v40 = vld [vmem:[%s7357_s25 + $0x18] sm:$0xf]  ;;  %v3655_v22 = vld [vmem:[%s7357_s25 + $0x1c] sm:$0xf] }
  0xc1   : > { %vm9857_vm11 = vsmask.f32 7424  ;;  %v3342_v34 = vshrl.u32 %v7234_v5, 16  ;;  %v8233_v13 = vcombine.low %v3685_v8, %v3686_v44  ;;  %v3340_v50 = vrot.slane %v3338_v37, 1  ;;  %v8256_v44 = vld [vmem:[%s7357_s25 + $0x80] sm:$0xff]  }
  0xc2   : > { %v3325_v16 = vsel %vm9857_vm11, %v3320_v29, %v3324_v20  ;;  %vm9858_vm10 = vmmov %vm9857_vm11  ;;  %vm9859_vm5 = vcmask 23552   ;;  %v8241_v0 = vrot.slane %v3346_v1, 1  ;;  %vm9862_vm15 = vnez %v9701_v42 }
  0xc3   : > { %v3333_v62 = vsel %vm9858_vm10, %v3328_v18, %v3332_v7  ;;  %vm9860_vm11 = vmmov %vm9859_vm5  ;;  %v2700_v53 = vsel %vm9862_vm15, %v2668_v52, 0  ;;  %v2701_v5 = vsel %vm7348_vm3, %v2669_v4, 0  ;;  %v3833_v29 = vrot.slane %v6514_v31, 1  ;;  %v3658_v52 = vld [vmem:[%s7357_s25 + $0x28] sm:$0xf] }
  0xc4   : > { %vm9861_vm13 = vmmov %vm9859_vm5  ;;  %vm9863_vm10 = vnez %v9730_v46  ;;  %v3336_v35 = vor.u32 %v3334_v32, %v3332_v7  ;;  %v3344_v51 = vor.u32 %v3342_v34, %v3340_v50  ;;  %v3834_v18 = vrot.slane %v8233_v13, 1  ;;  %v3659_v34 = vld [vmem:[%s7357_s25 + $0x2c] sm:$0xf]  ;;  %v3665_v13 = vld [vmem:[%s7357_s25 + $0x44] sm:$0xf] }
  0xc5   : > { %6997 = vmatmul.mubr.msk.bf16.gmra.mrb[72].mxu1 %vm9859_vm5, %v6460_v41  ;;  %v3687_v20 = vsel %vm9863_vm10, %v3654_v40, 0  ;;  %vm9864_vm1 = vmmov %vm9859_vm5  ;;  %v3354_v37 = vshll.u32 %v8230_v28, 16  ;;  %v6462_v41 = vcombine.low %v2700_v53, %v2701_v5  ;;  %vm9866_vm5 = vnez %v9733_v33 }
  0xc6   : > { %7023 = vmatmul.mubr.msk.bf16.gmra.mrb[64].mxu0 %vm9860_vm11, %v3325_v16  ;;  %7000 = vmatprep.mubr.msk.bf16.mxu1 %vm9861_vm13, %v6461_v21  ;;  %vm9865_vm13 = vcmp.ne.s16.totalorder %v7686_v58, 0  ;;  %v3689_v1 = vsel %vm9866_vm5, %v3656_v36, 0  ;;  %vm9867_vm11 = vcmp.ne.s16.totalorder %v7712_v27, 0  ;;  %v3350_v7 = vshrl.u32 %v8202_v60, 16  ;;  %v3660_v36 = vld [vmem:[%s7357_s25 + $0x30] sm:$0xf] }
  0xc7   : > { %7026 = vmatprep.mubr.msk.bf16.mxu0 %vm9864_vm1, %v3333_v62  ;;  %v3688_v8 = vsel %vm9865_vm13, %v3655_v22, 0  ;;  %v3690_v62 = vsel %vm9867_vm11, %v3657_v59, 0  ;;  %vm9868_vm1 = vsmask.f32 7424  ;;  %v3358_v16 = vshrl.u32 %v8230_v28, 16 }
  0xc8   : > { %v8264_v21 = vcombine.low %v3687_v20, %v3688_v8  ;;  %v3341_v22 = vsel %vm9868_vm1, %v3336_v35, %v3340_v50  ;;  %vm9869_vm13 = vmmov %vm9868_vm1  ;;  %vm9870_vm10 = vcmask 1046528   ;;  %v3362_v4 = vshll.u32 %v8256_v44, 16  ;;  %v3661_v59 = vld [vmem:[%s7357_s25 + $0x34] sm:$0xf] }
  0xc9   : > { %v3349_v31 = vsel %vm9869_vm13, %v3344_v51, %v8241_v0  ;;  %v3835_v32 = vsel %vm9870_vm10, %v3833_v29, %v3834_v18  ;;  %v8276_v40 = vcombine.low %v3689_v1, %v3690_v62  ;;  %vm9668_vm11 = vcmask 130048   ;;  %v7238_v28 = vld [vmem:[%s7357_s25 + $0x88] ss:$0 sps:$4 sm:$0x11]  }
  0xca   : > { %v3356_v60 = vrot.slane %v3354_v37, 1  ;;  %vm9871_vm5 = vcmask 23552   ;;  %v7283_v50 = vmov 0.0   ;;  %v3836_v53 = vrot.slane %v8264_v21, 1 }
  0xcb   : > { %277 = vst.msk [vmem:[#allocation2 + $0x90] sm:$0xff] %vm9668_vm11, %v7283_v50  ;;  %259 = vst.msk [vmem:[#allocation2] sm:$0xff] %vm9668_vm11, %v7283_v50  ;;  %v3352_v5 = vor.u32 %v3350_v7, %v8241_v0  ;;  %vm9874_vm13 = vnez %v9739_v63  ;;  %vm9875_vm15 = vcmp.ne.s16.totalorder %v7742_v45, 0  ;;  %v3364_v51 = vrot.slane %v3362_v4, 1  ;;  %v4143_v4 = vld [vmem:[%s7357_s25 + $0x14] sm:$0xf] }
  0xcc   : > { %260 = vst.msk [vmem:[#allocation2 + $0x8] sm:$0xff] %vm9668_vm11, %v7283_v50  ;;  %261 = vst.msk [vmem:[#allocation2 + $0x10] sm:$0xff] %vm9668_vm11, %v7283_v50  ;;  %v3360_v29 = vor.u32 %v3358_v16, %v3356_v60  ;;  %v3691_v20 = vsel %vm9874_vm13, %v3658_v52, 0  ;;  %v3692_v35 = vsel %vm9875_vm15, %v3659_v34, 0  ;;  %v3838_v8 = vrot.slane %v8276_v40, 1 }
  0xcd   : > { %7001 = vmatmul.mubr.msk.bf16.gmra.mrb[76].mxu1 %vm9871_vm5, %v6462_v41  ;;  %262 = vst.msk [vmem:[#allocation2 + $0x18] sm:$0xff] %vm9668_vm11, %v7283_v50  ;;  %263 = vst.msk [vmem:[#allocation2 + $0x20] sm:$0xff] %vm9668_vm11, %v7283_v50  ;;  %v3370_v41 = vshll.u32 %v7238_v28, 16  ;;  %v6518_v62 = vcombine.low %v3691_v20, %v3692_v35  ;;  %v3366_v21 = vshrl.u32 %v8256_v44, 16  ;;  %v3663_v34 = vld [vmem:[%s7357_s25 + $0x3c] sm:$0xf] }
  0xce   : > { %264 = vst.msk [vmem:[#allocation2 + $0x28] sm:$0xff] %vm9668_vm11, %v7283_v50  ;;  %265 = vst.msk [vmem:[#allocation2 + $0x30] sm:$0xff] %vm9668_vm11, %v7283_v50  ;;  %7040 = vmatprep.mubr.msk.bf16.mxu1 %vm9871_vm5, %v3835_v32  ;;  %v3662_v32 = vld [vmem:[%s7357_s25 + $0x38] sm:$0xf]  ;;  %v3664_v40 = vld [vmem:[%s7357_s25 + $0x40] sm:$0xf] }
  0xcf   : > { %266 = vst.msk [vmem:[#allocation2 + $0x38] sm:$0xff] %vm9668_vm11, %v7283_v50  ;;  %267 = vst.msk [vmem:[#allocation2 + $0x40] sm:$0xff] %vm9668_vm11, %v7283_v50  ;;  %v3840_v44 = vrot.slane %v6518_v62, 1  ;;  %v4146_v62 = vld [vmem:[%s7357_s25 + $0x20] sm:$0xf] }
  0xd0   : > { %268 = vst.msk [vmem:[#allocation2 + $0x48] sm:$0xff] %vm9668_vm11, %v7283_v50  ;;  %269 = vst.msk [vmem:[#allocation2 + $0x50] sm:$0xff] %vm9668_vm11, %v7283_v50 }
  0xd1   : > { %270 = vst.msk [vmem:[#allocation2 + $0x58] sm:$0xff] %vm9668_vm11, %v7283_v50  ;;  %271 = vst.msk [vmem:[#allocation2 + $0x60] sm:$0xff] %vm9668_vm11, %v7283_v50 }
  0xd2   : > { %272 = vst.msk [vmem:[#allocation2 + $0x68] sm:$0xff] %vm9668_vm11, %v7283_v50  ;;  %273 = vst.msk [vmem:[#allocation2 + $0x70] sm:$0xff] %vm9668_vm11, %v7283_v50 }
  0xd3   : > { %274 = vst.msk [vmem:[#allocation2 + $0x78] sm:$0xff] %vm9668_vm11, %v7283_v50  ;;  %275 = vst.msk [vmem:[#allocation2 + $0x80] sm:$0xff] %vm9668_vm11, %v7283_v50 }
  0xd4   : > { %276 = vst.msk [vmem:[#allocation2 + $0x88] sm:$0xff] %vm9668_vm11, %v7283_v50  ;;  %278 = vst.msk [vmem:[#allocation2 + $0x98] sm:$0xff] %vm9668_vm11, %v7283_v50 }
  0xd5   : > { %279 = vst.msk [vmem:[#allocation2 + $0xa0] sm:$0xff] %vm9668_vm11, %v7283_v50  ;;  %280 = vst.msk [vmem:[#allocation2 + $0xa8] sm:$0xff] %vm9668_vm11, %v7283_v50 }
  0xd6   : > { %281 = vst.msk [vmem:[#allocation2 + $0xb0] sm:$0xff] %vm9668_vm11, %v7283_v50  ;;  %282 = vst.msk [vmem:[#allocation2 + $0xb8] sm:$0xff] %vm9668_vm11, %v7283_v50 }
  0xd7   : > { %283 = vst.msk [vmem:[#allocation2 + $0xc0] sm:$0xff] %vm9668_vm11, %v7283_v50  ;;  %284 = vst.msk [vmem:[#allocation2 + $0xc8] sm:$0xff] %vm9668_vm11, %v7283_v50 }
  0xd8   : > { %285 = vst.msk [vmem:[#allocation2 + $0xd0] sm:$0xff] %vm9668_vm11, %v7283_v50  ;;  %286 = vst.msk [vmem:[#allocation2 + $0xd8] sm:$0xff] %vm9668_vm11, %v7283_v50 }
  0xd9   : > { %287 = vst.msk [vmem:[#allocation2 + $0xe0] sm:$0xff] %vm9668_vm11, %v7283_v50  ;;  %288 = vst.msk [vmem:[#allocation2 + $0xe8] sm:$0xff] %vm9668_vm11, %v7283_v50 }
  0xda   : > { %289 = vst.msk [vmem:[#allocation2 + $0xf0] sm:$0xff] %vm9668_vm11, %v7283_v50  ;;  %290 = vst.msk [vmem:[#allocation2 + $0xf8] sm:$0xff] %vm9668_vm11, %v7283_v50  ;;  %vm9879_vm11 = vsmask.f32 7424 }
  0xdb   : > { %vm9872_vm10 = vmmov %vm9871_vm5  ;;  %v3357_v7 = vsel %vm9879_vm11, %v3352_v5, %v3356_v60  ;;  %v3368_v60 = vor.u32 %v3366_v21, %v3364_v51  ;;  %v9889_v5 = vld [vmem:[#allocation7_spill] sm:$0xff]  ;;  %v3667_v21 = vld [vmem:[%s7357_s25 + $0x4c] sm:$0xf] }
  0xdc   : > { %7027 = vmatmul.mubr.msk.bf16.gmra.mrb[68].mxu0 %vm9872_vm10, %v3341_v22  ;;  %vm9873_vm1 = vmmov %vm9871_vm5  ;;  %vm9876_vm10 = vnez %v9743_v10  ;;  %vm9877_vm5 = vcmp.ne.s16.totalorder %v7771_v48, 0  ;;  %v4142_v22 = vld [vmem:[%s7357_s25 + $0x10] sm:$0xf] }
  0xdd   : > { %7030 = vmatprep.mubr.msk.bf16.mxu0 %vm9873_vm1, %v3349_v31  ;;  %v3693_v37 = vsel %vm9876_vm10, %v3660_v36, 0  ;;  %v3694_v0 = vsel %vm9877_vm5, %v3661_v59, 0  ;;  %vm9878_vm1 = vcmask 1046528   ;;  %vm9880_vm15 = vmmov %vm9879_vm11  ;;  %vm9882_vm10 = vcmask 23552  }
  0xde   : > { %v3837_v1 = vsel %vm9878_vm1, %v3834_v18, %v3836_v53  ;;  %v6519_v52 = vcombine.low %v3693_v37, %v3694_v0  ;;  %v3365_v31 = vsel %vm9880_vm15, %v3360_v29, %v3364_v51  ;;  %vm9881_vm13 = vmmov %vm9878_vm1  ;;  %v3372_v18 = vrot.slane %v3370_v41, 1  ;;  %v4144_v51 = vld [vmem:[%s7357_s25 + $0x18] sm:$0xf]  ;;  %v4145_v37 = vld [vmem:[%s7357_s25 + $0x1c] sm:$0xf] }
  0xdf   : > { %v3839_v16 = vsel %vm9881_vm13, %v3836_v53, %v3838_v8  ;;  %7041 = vmatmul.mubr.msk.bf16.vlgmr.msra.gmra.mrb[80].mxu1 %vm9882_vm10, %v3837_v1  ;;  %vm9883_vm5 = vmmov %vm9882_vm10  ;;  %vm9886_vm13 = vnez %v9749_v11  ;;  %vm9887_vm10 = vcmp.ne.s16.totalorder %v7791_v25, 0  ;;  %v4174_v28 = vsel %vm7368_vm6, %v4142_v22, 0  ;;  %v3668_v22 = vld [vmem:[%s7357_s25 + $0x50] sm:$0xf] }
  0xe0   : > { %7107 = vmatpush3.bf16.msra.mxu1 %v8162_v2  ;;  %vm9884_vm11 = vmmov %vm9883_vm5  ;;  %v3842_v36 = vrot.slane %v6519_v52, 1  ;;  %v3695_v59 = vsel %vm9886_vm13, %v3662_v32, 0  ;;  %v3696_v50 = vsel %vm9887_vm10, %v3663_v34, 0  ;;  %v4175_v2 = vsel %vm7348_vm3, %v4143_v4, 0  ;;  %v4147_v52 = vld [vmem:[%s7357_s25 + $0x24] sm:$0xf] }
  0xe1   : > { %vm9885_vm1 = vmmov %vm9883_vm5  ;;  %vm9888_vm15 = vnez %v9751_v56  ;;  %v6520_v35 = vcombine.low %v3695_v59, %v3696_v50  ;;  %v6548_v0 = vcombine.low %v4174_v28, %v4175_v2  ;;  %vm9894_vm10 = vcmask 23552   ;;  %v9898_v4 = vld [vmem:[#allocation8_spill] sm:$0xff]  ;;  %v9904_v50 = vld [vmem:[#allocation11_spill] sm:$0xff] }
  0xe2   : > { %7044 = vmatprep.mubr.msk.bf16.mxu1 %vm9885_vm1, %v3839_v16  ;;  %v3697_v53 = vsel %vm9888_vm15, %v3664_v40, 0  ;;  %vm9892_vm1 = vsmask.f32 7424  ;;  %v4177_v32 = vsel %vm7348_vm3, %v4145_v37, 0  ;;  %v930_v15 = vld [vmem:[#allocation2 + $0xf0] sm:$0xff] }
  0xe3   : > { %v3373_v24 = vsel %vm9892_vm1, %v3368_v60, %v3372_v18  ;;  %v3844_v16 = vrot.slane %v6520_v35, 1  ;;  %v4178_v18 = vsel %vm7458_vm4, %v4146_v62, 0  ;;  %v9902_v60 = vld [vmem:[#allocation10_spill] sm:$0xff]  ;;  %v3672_v62 = vld [vmem:[%s7357_s25 + $0x60] sm:$0xf] }
  0xe4   : > { %7031 = vmatmul.mubr.msk.bf16.gmra.mrb[72].mxu0 %vm9883_vm5, %v3357_v7  ;;  %vm9890_vm5 = vcmp.ne.s16.totalorder %v9889_v5, 0  ;;  %v3666_v7 = vld [vmem:[%s7357_s25 + $0x48] sm:$0xf] }
  0xe5   : > { %7034 = vmatprep.mubr.msk.bf16.mxu0 %vm9884_vm11, %v3365_v31  ;;  %v3698_v29 = vsel %vm9890_vm5, %v3665_v13, 0  ;;  %vm9891_vm11 = vcmask 1046528   ;;  %v3669_v31 = vld [vmem:[%s7357_s25 + $0x54] sm:$0xf]  ;;  %vm9895_vm5 = vmmov %vm9894_vm10 }
  0xe6   : > { %v3841_v20 = vsel %vm9891_vm11, %v3838_v8, %v3840_v44  ;;  %vm9893_vm6 = vmmov %vm9891_vm11  ;;  %v6521_v1 = vcombine.low %v3697_v53, %v3698_v29  ;;  %v4176_v8 = vsel %vm7397_vm12, %v4144_v51, 0  ;;  %v9900_v13 = vld [vmem:[#allocation9_spill] sm:$0xff]  ;;  %vm9903_vm12 = vnez %v9902_v60  ;;  %v4148_v53 = vld [vmem:[%s7357_s25 + $0x28] sm:$0xf] }
  0xe7   : > { %v3843_v41 = vsel %vm9893_vm6, %v3840_v44, %v3842_v36  ;;  %7045 = vmatmul.mubr.msk.bf16.gmra.mrb[84].mxu1 %vm9894_vm10, %v3841_v20  ;;  %vm9896_vm11 = vmmov %vm9895_vm5  ;;  %vm9899_vm6 = vnez %v9898_v4  ;;  %vm9901_vm10 = vcmp.ne.s16.totalorder %v9900_v13, 0  ;;  %v4179_v44 = vsel %vm7348_vm3, %v4147_v52, 0  ;;  %v4149_v29 = vld [vmem:[%s7357_s25 + $0x2c] sm:$0xf]  ;;  %v4150_v51 = vld [vmem:[%s7357_s25 + $0x30] sm:$0xf] }
  0xe8   : > { %7048 = vmatprep.mubr.msk.bf16.mxu1 %vm9896_vm11, %v3843_v41  ;;  %vm9897_vm1 = vmmov %vm9895_vm5  ;;  %v3846_v34 = vrot.slane %v6521_v1, 1  ;;  %v3699_v40 = vsel %vm9899_vm6, %v3666_v7, 0  ;;  %v3700_v38 = vsel %vm9901_vm10, %v3667_v21, 0  ;;  %v3701_v59 = vsel %vm9903_vm12, %v3668_v22, 0  ;;  %v3670_v41 = vld [vmem:[%s7357_s25 + $0x58] sm:$0xf] }
  0xe9   : > { %v6549_v2 = vcombine.low %v4176_v8, %v4177_v32  ;;  %vm9906_vm11 = vcmask 1046528   ;;  %v6522_v35 = vcombine.low %v3699_v40, %v3700_v38  ;;  %v6550_v12 = vcombine.low %v4178_v18, %v4179_v44  ;;  %v3671_v1 = vld [vmem:[%s7357_s25 + $0x5c] sm:$0xf]  ;;  %v3673_v7 = vld [vmem:[%s7357_s25 + $0x64] sm:$0xf]  ;;  %vm9908_vm10 = vmmov %vm9897_vm1 }
  0xea   : > { %v3845_v20 = vsel %vm9906_vm11, %v3842_v36, %v3844_v16  ;;  %vm9907_vm4 = vmmov %vm9906_vm11  ;;  %v4180_v21 = vsel %vm7469_vm8, %v4148_v53, 0  ;;  %v4181_v52 = vsel %vm7348_vm3, %v4149_v29, 0  ;;  %v4182_v32 = vsel %vm7519_vm9, %v4150_v51, 0  ;;  %v9915_v40 = vld [vmem:[#allocation14_spill] sm:$0xff]  ;;  %v9917_v18 = vld [vmem:[#allocation15_spill] sm:$0xff] }
  0xeb   : > { %v3847_v37 = vsel %vm9907_vm4, %v3844_v16, %v3846_v34  ;;  %v3848_v36 = vrot.slane %v6522_v35, 1  ;;  %vm9910_vm11 = vmmov %vm9897_vm1  ;;  %v9913_v16 = vld [vmem:[#allocation13_spill] sm:$0xff]  ;;  %vm9916_vm8 = vnez %v9915_v40  ;;  %v4155_v51 = vld [vmem:[%s7357_s25 + $0x44] sm:$0xf] }
  0xec   : > { %7035 = vmatmul.mubr.msk.bf16.gmra.mrb[76].mxu0 %vm9895_vm5, %v3373_v24  ;;  %vm9905_vm5 = vcmp.ne.s16.totalorder %v9904_v50, 0  ;;  %v3705_v38 = vsel %vm9916_vm8, %v3672_v62, 0 }
  0xed   : > { %7074 = vmatprep.mubr.msk.bf16.mxu0 %vm9897_vm1, %v6548_v0  ;;  %v3702_v28 = vsel %vm9905_vm5, %v3669_v31, 0  ;;  %v4151_v0 = vld [vmem:[%s7357_s25 + $0x34] sm:$0xf]  ;;  %vm9909_vm5 = vmmov %vm9897_vm1  ;;  %v9911_v31 = vld [vmem:[#allocation12_spill] sm:$0xff] }
  0xee   : > { %v6523_v24 = vcombine.low %v3701_v59, %v3702_v28  ;;  %vm9912_vm4 = vnez %v9911_v31  ;;  %v6551_v59 = vcombine.low %v4180_v21, %v4181_v52  ;;  %v4152_v28 = vld [vmem:[%s7357_s25 + $0x38] sm:$0xf]  ;;  %v4187_v21 = vsel %vm7348_vm3, %v4155_v51, 0  ;;  %v3680_v51 = vld [vmem:[%s7357_s25 + $0x80] sm:$0xf] }
  0xef   : > { %7049 = vmatmul.mubr.msk.bf16.gmra.mrb[88].mxu1 %vm9897_vm1, %v3845_v20  ;;  %v3703_v8 = vsel %vm9912_vm4, %v3670_v41, 0  ;;  %vm9914_vm1 = vcmp.ne.s16.totalorder %v9913_v16, 0  ;;  %v4154_v20 = vld [vmem:[%s7357_s25 + $0x40] sm:$0xf]  ;;  %v3677_v41 = vld [vmem:[%s7357_s25 + $0x74] sm:$0xf] }
  0xf0   : > { %7052 = vmatprep.mubr.msk.bf16.mxu1 %vm9909_vm5, %v3847_v37  ;;  %v3850_v22 = vrot.slane %v6523_v24, 1  ;;  %v3704_v19 = vsel %vm9914_vm1, %v3671_v1, 0  ;;  %vm9919_vm5 = vcmask 1046528   ;;  %v3674_v37 = vld [vmem:[%s7357_s25 + $0x68] sm:$0xf]  ;;  %vm9921_vm1 = vmmov %vm9910_vm11  ;;  %v4185_v1 = vsel %vm7348_vm3, %v4153_v61, 0 }
  0xf1   : > { %v6524_v53 = vcombine.low %v3703_v8, %v3704_v19  ;;  %vm9920_vm9 = vmmov %vm9919_vm5  ;;  %v3675_v24 = vld [vmem:[%s7357_s25 + $0x6c] sm:$0xf]  ;;  %v4186_v62 = vsel %vm9825_vm14, %v4154_v20, 0  ;;  %v9926_v8 = vld [vmem:[#allocation17_spill] sm:$0xff]  ;;  %vm9928_vm14 = vnez %v9795_v55 }
  0xf2   : > { %v3851_v35 = vsel %vm9920_vm9, %v3848_v36, %v3850_v22  ;;  %vm9927_vm9 = vcmp.ne.s16.totalorder %v9926_v8, 0  ;;  %v3678_v61 = vld [vmem:[%s7357_s25 + $0x78] sm:$0xf]  ;;  %v3679_v20 = vld [vmem:[%s7357_s25 + $0x7c] sm:$0xf] }
  0xf3   : > { %v3708_v47 = vsel %vm9927_vm9, %v3675_v24, 0  ;;  %v3711_v24 = vsel %vm7999_vm7, %v3678_v61, 0  ;;  %v918_v61 = vld [vmem:[#allocation2 + $0x90] sm:$0xff] }
  0xf4   : > { %7075 = vmatmul.mubr.msk.bf16.vlgmr.msra.gmra.mrb[80].mxu0 %vm9908_vm10, %v6549_v2  ;;  %vm9918_vm10 = vcmp.ne.s16.totalorder %v9917_v18, 0  ;;  %v3849_v2 = vsel %vm9919_vm5, %v3846_v34, %v3848_v36  ;;  %v4184_v34 = vsel %vm7533_vm0, %v4152_v28, 0  ;;  %vm9923_vm5 = vmmov %vm9921_vm1  ;;  %v9924_v36 = vld [vmem:[#allocation16_spill] sm:$0xff]  ;;  %v4158_v28 = vld [vmem:[%s7357_s25 + $0x50] sm:$0xf] }
  0xf5   : > { %7141 = vmatpush3.bf16.msra.mxu0 %v8184_v3  ;;  %7078 = vmatprep.mubr.msk.bf16.mxu0 %vm9910_vm11, %v6550_v12  ;;  %v4183_v3 = vsel %vm7348_vm3, %v4151_v0, 0  ;;  %v3706_v44 = vsel %vm9918_vm10, %v3673_v7, 0  ;;  %v3676_v0 = vld [vmem:[%s7357_s25 + $0x70] sm:$0xf]  ;;  %vm9922_vm10 = vmmov %vm9921_vm1  ;;  %v3852_v7 = vrot.slane %v6524_v53, 1  ;;  %vm9925_vm0 = vnez %v9924_v36 }
  0xf6   : > { %v6552_v29 = vcombine.low %v4182_v32, %v4183_v3  ;;  %v6525_v12 = vcombine.low %v3705_v38, %v3706_v44  ;;  %v3707_v52 = vsel %vm9925_vm0, %v3674_v37, 0  ;;  %v3709_v19 = vsel %vm9928_vm14, %v3676_v0, 0  ;;  %v4156_v38 = vld [vmem:[%s7357_s25 + $0x48] sm:$0xf]  ;;  %v3681_v37 = vld [vmem:[%s7357_s25 + $0x84] sm:$0xf]  ;;  %vm9932_vm9 = vmmov %vm9923_vm5 }
  0xf7   : > { %7053 = vmatmul.mubr.msk.bf16.gmra.mrb[92].mxu1 %vm9910_vm11, %v3849_v2  ;;  %vm9929_vm11 = vcmp.ne.s16.totalorder %v7981_v49, 0  ;;  %v6553_v3 = vcombine.low %v4184_v34, %v4185_v1  ;;  %v6554_v2 = vcombine.low %v4186_v62, %v4187_v21  ;;  %v9937_v21 = vld [vmem:[#allocation19_spill] sm:$0xff] }
  0xf8   : > { %7056 = vmatprep.mubr.msk.bf16.mxu1 %vm9922_vm10, %v3851_v35  ;;  %v3854_v14 = vrot.slane %v6525_v12, 1  ;;  %v3710_v32 = vsel %vm9929_vm11, %v3677_v41, 0  ;;  %v4157_v35 = vld [vmem:[%s7357_s25 + $0x4c] sm:$0xf]  ;;  %v4159_v12 = vld [vmem:[%s7357_s25 + $0x54] sm:$0xf]  ;;  %vm9933_vm11 = vmmov %vm9923_vm5 }
  0xf9   : > { %v4188_v41 = vsel %vm9830_vm2, %v4156_v38, 0  ;;  %v4189_v34 = vsel %vm7348_vm3, %v4157_v35, 0  ;;  %vm9941_vm2 = vcmask 1046528  }
  0xfc   : > { %7079 = vmatmul.mubr.msk.bf16.gmra.mrb[84].mxu0 %vm9921_vm1, %v6551_v59  ;;  %vm9930_vm1 = vcmask 1046528   ;;  %v6526_v59 = vcombine.low %v3707_v52, %v3708_v47  ;;  %v9939_v47 = vld [vmem:[#allocation20_spill] sm:$0xff] }
  0xfd   : > { %7082 = vmatprep.mubr.msk.bf16.mxu0 %vm9923_vm5, %v6552_v29  ;;  %v3853_v44 = vsel %vm9930_vm1, %v3850_v22, %v3852_v7  ;;  %vm9931_vm10 = vmmov %vm9930_vm1  ;;  %v8454_v29 = vcombine.low %v3709_v19, %v3710_v32  ;;  %vm9934_vm1 = vcmp.ne.s16.totalorder %v8016_v9, 0  ;;  %v6555_v32 = vcombine.low %v4188_v41, %v4189_v34  ;;  %v919_v41 = vld [vmem:[#allocation2 + $0x98] sm:$0xff]  ;;  %v901_v9 = vld [vmem:[#allocation2 + $0x8] sm:$0xff] }
  0xfe   : > { %v3855_v53 = vsel %vm9931_vm10, %v3852_v7, %v3854_v14  ;;  %v3856_v22 = vrot.slane %v6526_v59, 1  ;;  %v3712_v0 = vsel %vm9934_vm1, %v3679_v20, 0  ;;  %vm9935_vm10 = vmmov %vm9923_vm5  ;;  %v4191_v7 = vsel %vm7348_vm3, %v4159_v12, 0  ;;  %v4161_v59 = vld [vmem:[%s7357_s25 + $0x5c] sm:$0xf]  ;;  %v916_v12 = vld [vmem:[#allocation2 + $0x80] sm:$0xff] }
  0xff   : > { %7057 = vmatmul.mubr.msk.bf16.gmra.mrb[96].mxu1 %vm9923_vm5, %v3853_v44  ;;  %v3858_v1 = vrot.slane %v8454_v29, 1  ;;  %vm9936_vm5 = vnez %v9675_v26  ;;  %v6528_v19 = vcombine.low %v3711_v24, %v3712_v0  ;;  %v8486_v44 = vld [vmem:[%s7357_s25 + $0x10] sm:$0xff]   ;;  %vm9942_vm1 = vmmov %vm9941_vm2  ;;  %v3682_v20 = vld [vmem:[%s7357_s25 + $0x88] sm:$0x1]  ;;  %v6888_v0 = vpop.f32.mrb[0].mxu1 }
 0x100   : > { %7060 = vmatprep.mubr.msk.bf16.mxu1 %vm9933_vm11, %v3855_v53  ;;  %v4190_v62 = vsel %vm9936_vm5, %v4158_v28, 0  ;;  %vm9940_vm11 = vcmp.ne.s16.totalorder %v9939_v47, 0  ;;  %v3857_v38 = vsel %vm9941_vm2, %v3854_v14, %v3856_v22  ;;  %v4162_v28 = vld [vmem:[%s7357_s25 + $0x60] sm:$0xf]  ;;  %vm9943_vm5 = vmmov %vm9935_vm10  ;;  %vm9945_vm2 = vnez %v9681_v57  ;;  %v902_v57 = vld [vmem:[#allocation2 + $0x10] sm:$0xff] }
 0x101   : > { %v3714_v54 = vsel %vm9940_vm11, %v3681_v37, 0  ;;  %v6556_v26 = vcombine.low %v4190_v62, %v4191_v7  ;;  %v3859_v53 = vsel %vm9942_vm1, %v3856_v22, %v3858_v1  ;;  %v3860_v35 = vrot.slane %v6528_v19, 1  ;;  %vm9946_vm1 = vmmov %vm9943_vm5  ;;  %v917_v62 = vld [vmem:[#allocation2 + $0x88] sm:$0xff]  ;;  %v6872_v7 = vpop.f32.mrb[0].mxu0  ;;  %v4166_v47 = vld [vmem:[%s7357_s25 + $0x70] sm:$0xf] }
 0x102   : > { %vm9944_vm11 = vnez %v9677_v30  ;;  %v4193_v37 = vsel %vm7348_vm3, %v4161_v59, 0  ;;  %v4194_v22 = vsel %vm9945_vm2, %v4162_v28, 0  ;;  %v1248_v34 = vadd.f32 %v6888_v0, %v918_v61  ;;  %v1167_v30 = vpop.f32.mrb[1].mxu1  ;;  %v900_v59 = vld [vmem:[#allocation2] sm:$0xff] }
 0x103   : > { %v4749_v19 = vshll.u32 %v8486_v44, 16  ;;  %vm9951_vm2 = vcmask 130048  }
 0x104   : > { %7083 = vmatmul.mubr.msk.bf16.gmra.mrb[88].mxu0 %vm9932_vm9, %v6553_v3  ;;  %vm9938_vm9 = vnez %v9937_v21  ;;  %v4160_v3 = vld [vmem:[%s7357_s25 + $0x58] sm:$0xf]  ;;  %1281 = vst.msk [vmem:[#allocation2 + $0x90] sm:$0xff] %vm9951_vm2, %v1248_v34 }
 0x105   : > { %7086 = vmatprep.mubr.msk.bf16.mxu0 %vm9935_vm10, %v6554_v2  ;;  %v3713_v52 = vsel %vm9938_vm9, %v3680_v51, 0  ;;  %v4163_v2 = vld [vmem:[%s7357_s25 + $0x64] sm:$0xf]  ;;  %v8497_v51 = vld [vmem:[%s7357_s25 + $0x18] sm:$0xff]   ;;  %v4192_v14 = vsel %vm9944_vm11, %v4160_v3, 0  ;;  %v1246_v3 = vadd.f32 %v1167_v30, %v916_v12  ;;  %vm9950_vm11 = vcmask 1046528  }
 0x106   : > { %v8492_v29 = vcombine.low %v3713_v52, %v3714_v54  ;;  %v4195_v24 = vsel %vm7348_vm3, %v4163_v2, 0  ;;  %v9948_v52 = vld [vmem:[#allocation21_spill] sm:$0xff]  ;;  %v6557_v28 = vcombine.low %v4192_v14, %v4193_v37  ;;  %v1232_v12 = vadd.f32 %v6872_v7, %v902_v57  ;;  %v1103_v30 = vpop.f32.mrb[1].mxu0 }
 0x107   : > { %7061 = vmatmul.mubr.msk.bf16.gmra.mrb[100].mxu1 %vm9935_vm10, %v3857_v38  ;;  %vm9947_vm10 = vmmov %vm9946_vm1  ;;  %v6889_v38 = vpop.f32.mrb[2].mxu1  ;;  %v6558_v2 = vcombine.low %v4194_v22, %v4195_v24  ;;  %v4747_v14 = vshrl.u32 %v8486_v44, 16  ;;  %v4167_v37 = vld [vmem:[%s7357_s25 + $0x74] sm:$0xf]  ;;  %v1230_v24 = vadd.f32 %v1103_v30, %v900_v59  ;;  %v4751_v34 = vrot.slane %v4749_v19, 1  ;;  %v8546_v59 = vld [vmem:[%s7357_s25 + $0x28] sm:$0xff]  }
 0x108   : > { %7064 = vmatprep.mubr.msk.bf16.mxu1 %vm9946_vm1, %v3859_v53  ;;  %v4165_v53 = vld [vmem:[%s7357_s25 + $0x6c] sm:$0xf]  ;;  %v1249_v61 = vadd.f32 %v6889_v38, %v919_v41  ;;  %v1170_v0 = vpop.f32.mrb[3].mxu1  ;;  %vm9952_vm1 = vmmov %vm9951_vm2  ;;  %v6873_v41 = vpop.f32.mrb[2].mxu0  ;;  %v920_v38 = vld [vmem:[#allocation2 + $0xa0] sm:$0xff] }
 0x109   : > { %1279 = vst.msk [vmem:[#allocation2 + $0x80] sm:$0xff] %vm9952_vm1, %v1246_v3  ;;  %vm9957_vm2 = vmmov %vm9952_vm1  ;;  %v1106_v44 = vpop.f32.mrb[3].mxu0  ;;  %v4197_v57 = vsel %vm7348_vm3, %v4165_v53, 0  ;;  %v8536_v3 = vld [vmem:[%s7357_s25 + $0x20] sm:$0xff]  }
 0x10a   : > { %1265 = vst.msk [vmem:[#allocation2 + $0x10] sm:$0xff] %vm9957_vm2, %v1232_v12  ;;  %v1231_v19 = vadd.f32 %v1106_v44, %v901_v9  ;;  %v8550_v9 = vld [vmem:[%s7357_s25 + $0x78] sm:$0xf]  ;;  %v921_v12 = vld [vmem:[#allocation2 + $0xa8] sm:$0xff]  ;;  %v904_v30 = vld [vmem:[#allocation2 + $0x20] sm:$0xff] }
 0x10c   : > { %7087 = vmatmul.mubr.msk.bf16.gmra.mrb[92].mxu0 %vm9943_vm5, %v6555_v32  ;;  %vm9949_vm5 = vcmp.ne.s16.totalorder %v9948_v52, 0  ;;  %v4164_v32 = vld [vmem:[%s7357_s25 + $0x68] sm:$0xf]  ;;  %v1247_v52 = vadd.f32 %v1170_v0, %v917_v62  ;;  %v4754_v62 = vshll.u32 %v8497_v51, 16  ;;  %v4169_v0 = vld [vmem:[%s7357_s25 + $0x7c] sm:$0xf] }
 0x10d   : > { %7090 = vmatprep.mubr.msk.bf16.mxu0 %vm9947_vm10, %v6556_v26  ;;  %v3715_v54 = vsel %vm9949_vm5, %v3682_v20, 0  ;;  %v3861_v26 = vsel %vm9950_vm11, %v3858_v1, %v3860_v35  ;;  %v903_v20 = vld [vmem:[#allocation2 + $0x18] sm:$0xff]  ;;  %vm9953_vm10 = vmmov %vm9952_vm1  ;;  %v9954_v1 = vrot.slane %v8492_v29, 1 }
 0x10e   : > { %v6530_v21 = vcombine.low %v3715_v54, %v3715_v54  ;;  %1282 = vst.msk [vmem:[#allocation2 + $0x98] sm:$0xff] %vm9953_vm10, %v1249_v61  ;;  %vm9955_vm5 = vmmov %vm9950_vm11  ;;  %v1233_v7 = vadd.f32 %v6873_v41, %v903_v20  ;;  %vm9959_vm10 = vcmask 23552   ;;  %v4756_v53 = vrot.slane %v4754_v62, 1 }
 0x10f   : > { %v3863_v22 = vsel %vm9955_vm5, %v3860_v35, %v9954_v1  ;;  %vm9956_vm11 = vmmov %vm9952_vm1  ;;  %vm9958_vm1 = vnez %v9683_v6  ;;  %7065 = vmatmul.mubr.msk.bf16.gmra.mrb[104].mxu1 %vm9959_vm10, %v3861_v26  ;;  %v922_v35 = vld [vmem:[#allocation2 + $0xb0] sm:$0xff]  ;;  %v4199_v6 = vsel %vm7348_vm3, %v4167_v37, 0  ;;  %v4762_v41 = vshll.u32 %v8536_v3, 16 }
 0x110   : > { %1280 = vst.msk [vmem:[#allocation2 + $0x88] sm:$0xff] %vm9956_vm11, %v1247_v52  ;;  %v4196_v54 = vsel %vm9958_vm1, %v4164_v32, 0  ;;  %vm9960_vm5 = vmmov %vm9957_vm2  ;;  %vm9962_vm2 = vnez %v9689_v39  ;;  %v3864_v32 = vrot.slane %v6530_v21, 1  ;;  %v923_v39 = vld [vmem:[#allocation2 + $0xb8] sm:$0xff]  ;;  %v906_v26 = vld [vmem:[#allocation2 + $0x30] sm:$0xff] }
 0x111   : > { %1263 = vst.msk [vmem:[#allocation2] sm:$0xff] %vm9960_vm5, %v1230_v24  ;;  %vm9961_vm11 = vmmov %vm9959_vm10  ;;  %v4198_v52 = vsel %vm9962_vm2, %v4166_v47, 0  ;;  %v4752_v47 = vor.u32 %v4751_v34, %v4747_v14  ;;  %v6559_v61 = vcombine.low %v4196_v54, %v4197_v57  ;;  %v4758_v24 = vshrl.u32 %v8497_v51, 16  ;;  %v907_v14 = vld [vmem:[#allocation2 + $0x38] sm:$0xff]  ;;  %v4171_v57 = vld [vmem:[%s7357_s25 + $0x84] sm:$0xf] }
 0x112   : > { %vm9963_vm1 = vmmov %vm9959_vm10  ;;  %1264 = vst.msk [vmem:[#allocation2 + $0x8] sm:$0xff] %vm9960_vm5, %v1231_v19  ;;  %v6560_v37 = vcombine.low %v4198_v52, %v4199_v6  ;;  %v9966_v34 = vrot.slane %v8492_v29, 1  ;;  %v905_v52 = vld [vmem:[#allocation2 + $0x28] sm:$0xff]  ;;  %v4766_v51 = vshrl.u32 %v8536_v3, 16  ;;  %v4201_v3 = vsel %vm7348_vm3, %v4169_v0, 0  ;;  %v1344_v55 = vld [vmem:[#allocation2 + $0x80] sm:$0xff] }
 0x113   : > { %7068 = vmatprep.mubr.msk.bf16.mxu1 %vm9963_vm1, %v3863_v22  ;;  %vm9964_vm9 = vmmov %vm9960_vm5  ;;  %v8555_v22 = vld [vmem:[%s7357_s25 + $0x80] sm:$0xf] }
 0x114   : > { %7091 = vmatmul.mubr.msk.bf16.gmra.mrb[96].mxu0 %vm9961_vm11, %v6557_v28  ;;  %1266 = vst.msk [vmem:[#allocation2 + $0x18] sm:$0xff] %vm9964_vm9, %v1233_v7  ;;  %vm9965_vm10 = vmmov %vm9963_vm1  ;;  %v6892_v28 = vpop.f32.mrb[4].mxu1  ;;  %v6876_v7 = vpop.f32.mrb[4].mxu0  ;;  %vm9967_vm9 = vcmask 1046528   ;;  %vm9970_vm1 = vsmask.f32 7424 }
 0x115   : > { %7094 = vmatprep.mubr.msk.bf16.mxu0 %vm9965_vm10, %v6558_v2  ;;  %v1252_v21 = vadd.f32 %v6892_v28, %v922_v35  ;;  %v1183_v20 = vpop.f32.mrb[5].mxu1  ;;  %v3865_v62 = vsel %vm9967_vm9, %v9966_v34, %v3864_v32  ;;  %vm9968_vm11 = vmmov %vm9960_vm5  ;;  %v1236_v35 = vadd.f32 %v6876_v7, %v906_v26  ;;  %v1119_v19 = vpop.f32.mrb[5].mxu0  ;;  %v5155_v32 = vld [vmem:[%s7357_s25 + $0x14] sm:$0xf]  ;;  %vm9971_vm10 = vnez %v9691_v43  ;;  %v9982_v34 = vld [vmem:[#allocation4_spill] sm:$0xff] }
 0x116   : > { %v1250_v1 = vadd.f32 %v1183_v20, %v920_v38  ;;  %v6893_v2 = vpop.f32.mrb[6].mxu1  ;;  %vm9969_vm2 = vmmov %vm9960_vm5  ;;  %v4757_v38 = vsel %vm9970_vm1, %v4752_v47, %v4756_v53  ;;  %v1234_v29 = vadd.f32 %v1119_v19, %v904_v30  ;;  %v6877_v28 = vpop.f32.mrb[6].mxu0  ;;  %v5154_v20 = vld [vmem:[%s7357_s25 + $0x10] sm:$0xe]  ;;  %v4200_v26 = vsel %vm9971_vm10, %v8550_v9, 0 }
 0x117   : > { %1285 = vst.msk [vmem:[#allocation2 + $0xb0] sm:$0xff] %vm9968_vm11, %v1252_v21  ;;  %v1253_v44 = vadd.f32 %v6893_v2, %v923_v39  ;;  %v1186_v54 = vpop.f32.mrb[7].mxu1  ;;  %v4770_v39 = vshll.u32 %v8546_v59, 16  ;;  %vm9972_vm5 = vmmov %vm9969_vm2  ;;  %v1237_v47 = vadd.f32 %v6877_v28, %v907_v14  ;;  %v1122_v21 = vpop.f32.mrb[7].mxu0  ;;  %vm9974_vm11 = vcmask 23552   ;;  %v926_v9 = vld [vmem:[#allocation2 + $0xd0] sm:$0xff] }
 0x118   : > { %1283 = vst.msk [vmem:[#allocation2 + $0xa0] sm:$0xff] %vm9969_vm2, %v1250_v1  ;;  %v1251_v6 = vadd.f32 %v1186_v54, %v921_v12  ;;  %vm9973_vm9 = vmmov %vm9969_vm2  ;;  %v8578_v12 = vld [vmem:[%s7357_s25 + $0x30] sm:$0xff]   ;;  %7069 = vmatmul.mubr.msk.bf16.gmra.mrb[108].mxu1 %vm9974_vm11, %v3865_v62  ;;  %v4760_v30 = vor.u32 %v4758_v24, %v4756_v53  ;;  %v4764_v43 = vrot.slane %v4762_v41, 1  ;;  %v1235_v0 = vadd.f32 %v1122_v21, %v905_v52  ;;  %v5156_v1 = vld [vmem:[%s7357_s25 + $0x18] sm:$0xf]  ;;  %v6896_v54 = vpop.f32.mrb[8].mxu1 }
 0x119   : > { %1286 = vst.msk [vmem:[#allocation2 + $0xb8] sm:$0xff] %vm9972_vm5, %v1253_v44  ;;  %vm9975_vm1 = vmmov %vm9969_vm2  ;;  %v5157_v2 = vld [vmem:[%s7357_s25 + $0x1c] sm:$0xf]  ;;  %vm9977_vm5 = vnez %v9698_v23  ;;  %v4203_v14 = vsel %vm7348_vm3, %v4171_v57, 0  ;;  %v924_v53 = vld [vmem:[#allocation2 + $0xc0] sm:$0xff]  ;;  %v6561_v23 = vcombine.low %v4200_v26, %v4201_v3  ;;  %v4772_v19 = vrot.slane %v4770_v39, 1 }
 0x11a   : > { %1269 = vst.msk [vmem:[#allocation2 + $0x30] sm:$0xff] %vm9973_vm9, %v1236_v35  ;;  %vm9976_vm10 = vmmov %vm9974_vm11  ;;  %v4202_v7 = vsel %vm9977_vm5, %v8555_v22, 0  ;;  %v9980_v24 = vld [vmem:[#allocation3_spill] sm:$0xff]  ;;  %v8606_v22 = vld [vmem:[%s7357_s25 + $0x88] sm:$0xf]  ;;  %v4768_v35 = vor.u32 %v4766_v51, %v4764_v43  ;;  %v1256_v52 = vadd.f32 %v6896_v54, %v926_v9  ;;  %v6880_v54 = vpop.f32.mrb[8].mxu0 }
 0x11b   : > { %1284 = vst.msk [vmem:[#allocation2 + $0xa8] sm:$0xff] %vm9969_vm2, %v1251_v6  ;;  %vm9978_vm9 = vmmov %vm9976_vm10  ;;  %vm9981_vm2 = vcmp.ne.s16.totalorder %v9980_v24, 0  ;;  %v8609_v44 = vld [vmem:[%s7357_s25 + $0x8c] sm:$0xf]  ;;  %v927_v57 = vld [vmem:[#allocation2 + $0xd8] sm:$0xff]  ;;  %v1199_v6 = vpop.f32.mrb[9].mxu1  ;;  %v6562_v3 = vcombine.low %v4202_v7, %v4203_v14 }
 0x11c   : > { %1267 = vst.msk [vmem:[#allocation2 + $0x20] sm:$0xff] %vm9975_vm1, %v1234_v29  ;;  %7095 = vmatmul.mubr.msk.bf16.gmra.mrb[100].mxu0 %vm9976_vm10, %v6559_v61  ;;  %7108 = vmatprep.mubr.msk.bf16.mxu1 %vm9978_vm9, %v4757_v38  ;;  %vm9979_vm11 = vmmov %vm9975_vm1  ;;  %v8595_v41 = vsel %vm9981_vm2, %v5154_v20, 0  ;;  %vm9983_vm1 = vcmp.ne.s16.totalorder %v9982_v34, 0  ;;  %v8602_v61 = vld [vmem:[%s7357_s25 + $0x38] sm:$0xff]   ;;  %v925_v38 = vld [vmem:[#allocation2 + $0xc8] sm:$0xff]  ;;  %v1254_v21 = vadd.f32 %v1199_v6, %v924_v53  ;;  %v4782_v7 = vshrl.u32 %v8578_v12, 16 }
 0x11d   : > { %1270 = vst.msk [vmem:[#allocation2 + $0x38] sm:$0xff] %vm9979_vm11, %v1237_v47  ;;  %v8599_v62 = vsel %vm9983_vm1, %v5155_v32, 0  ;;  %vm9984_vm10 = vmmov %vm9978_vm9  ;;  %v9986_v29 = vld [vmem:[#allocation6_spill] sm:$0xff]  ;;  %v4778_v32 = vshll.u32 %v8578_v12, 16  ;;  %v910_v26 = vld [vmem:[#allocation2 + $0x50] sm:$0xff]  ;;  %v4205_v12 = vsel %vm7348_vm3, %v8609_v44, 0 }
 0x11e   : > { %7098 = vmatprep.mubr.msk.bf16.mxu0 %vm9984_vm10, %v6560_v37  ;;  %vm9985_vm5 = vmmov %vm9979_vm11  ;;  %vm9987_vm9 = vnez %v9986_v29  ;;  %v9988_v37 = vld [vmem:[#allocation5_spill] sm:$0xff]  ;;  %vm9990_vm2 = vsmask.f32 7424  ;;  %v6615_v51 = vcombine.low %v8595_v41, %v8599_v62  ;;  %v5158_v39 = vld [vmem:[%s7357_s25 + $0x20] sm:$0xf]  ;;  %v1240_v41 = vadd.f32 %v6880_v54, %v910_v26  ;;  %v1135_v62 = vpop.f32.mrb[9].mxu0 }
 0x11f   : > { %1268 = vst.msk [vmem:[#allocation2 + $0x28] sm:$0xff] %vm9985_vm5, %v1235_v0  ;;  %v5189_v28 = vsel %vm9987_vm9, %v5156_v1, 0  ;;  %vm9989_vm11 = vcmp.ne.s16.totalorder %v9988_v37, 0  ;;  %v4765_v47 = vsel %vm9990_vm2, %v4760_v30, %v4764_v43  ;;  %v6897_v0 = vpop.f32.mrb[10].mxu1  ;;  %v5159_v9 = vld [vmem:[%s7357_s25 + $0x24] sm:$0xf]  ;;  %vm9991_vm1 = vmmov %vm9985_vm5  ;;  %vm9994_vm9 = vnez %v9701_v42 }
 0x120   : > { %v5190_v20 = vsel %vm9989_vm11, %v5157_v2, 0  ;;  %v908_v24 = vld [vmem:[#allocation2 + $0x40] sm:$0xff]  ;;  %1289 = vst.msk [vmem:[#allocation2 + $0xd0] sm:$0xff] %vm9991_vm1, %v1256_v52  ;;  %v1257_v1 = vadd.f32 %v6897_v0, %v927_v57  ;;  %v1202_v34 = vpop.f32.mrb[11].mxu1  ;;  %v4774_v2 = vshrl.u32 %v8546_v59, 16  ;;  %v911_v29 = vld [vmem:[#allocation2 + $0x58] sm:$0xff]  ;;  %vm9992_vm10 = vmmov %vm9991_vm1 }
 0x121   : > { %v4786_v30 = vshll.u32 %v8602_v61, 16  ;;  %1287 = vst.msk [vmem:[#allocation2 + $0xc0] sm:$0xff] %vm9992_vm10, %v1254_v21  ;;  %v1255_v43 = vadd.f32 %v1202_v34, %v925_v38  ;;  %v8627_v14 = vcombine.low %v5189_v28, %v5190_v20  ;;  %vm9993_vm5 = vmmov %vm9990_vm2  ;;  %v909_v57 = vld [vmem:[#allocation2 + $0x48] sm:$0xff]  ;;  %v8631_v52 = vld [vmem:[%s7357_s25 + $0x40] sm:$0xff]   ;;  %v4204_v59 = vsel %vm9994_vm9, %v8606_v22, 0  ;;  %v6881_v28 = vpop.f32.mrb[10].mxu0 }
 0x122   : > { %v4773_v53 = vsel %vm9993_vm5, %v4768_v35, %v4772_v19  ;;  %vm9995_vm11 = vmmov %vm9991_vm1  ;;  %v4780_v6 = vrot.slane %v4778_v32, 1  ;;  %v1238_v38 = vadd.f32 %v1135_v62, %v908_v24  ;;  %v5160_v35 = vld [vmem:[%s7357_s25 + $0x28] sm:$0xf]  ;;  %vm9996_vm2 = vcmask 23552   ;;  %v1138_v37 = vpop.f32.mrb[11].mxu0  ;;  %v1334_v11 = vld [vmem:[#allocation2 + $0x30] sm:$0xff] }
 0x123   : > { %1290 = vst.msk [vmem:[#allocation2 + $0xd8] sm:$0xff] %vm9995_vm11, %v1257_v1  ;;  %7109 = vmatmul.mubr.msk.bf16.vlgmr.msra.gmra.mrb[112].mxu1 %vm9996_vm2, %v4765_v47  ;;  %vm9997_vm10 = vnez %v9730_v46  ;;  %vm9998_vm5 = vcmp.ne.s16.totalorder %v7686_v58, 0  ;;  %vm9999_vm9 = vmmov %vm9991_vm1  ;;  %v1241_v44 = vadd.f32 %v6881_v28, %v911_v29  ;;  %v5161_v20 = vld [vmem:[%s7357_s25 + $0x2c] sm:$0xf]  ;;  %v4776_v32 = vor.u32 %v4774_v2, %v4772_v19  ;;  %v928_v46 = vld [vmem:[#allocation2 + $0xe0] sm:$0xff]  ;;  %v6900_v1 = vpop.f32.mrb[12].mxu1 }
 0x124   : > { %1288 = vst.msk [vmem:[#allocation2 + $0xc8] sm:$0xff] %vm9991_vm1, %v1255_v43  ;;  %v5191_v42 = vsel %vm9997_vm10, %v5158_v39, 0  ;;  %v5192_v22 = vsel %vm9998_vm5, %v5159_v9, 0  ;;  %vm10000_vm3 = vmmov %vm9996_vm2  ;;  %v1239_v26 = vadd.f32 %v1138_v37, %v909_v57  ;;  %v4784_v47 = vor.u32 %v4782_v7, %v4780_v6  ;;  %v5162_v21 = vld [vmem:[%s7357_s25 + $0x30] sm:$0xf]  ;;  %v8658_v34 = vld [vmem:[%s7357_s25 + $0x48] sm:$0xff]  }
 0x125   : > { %1273 = vst.msk [vmem:[#allocation2 + $0x50] sm:$0xff] %vm9999_vm9, %v1240_v41  ;;  %7099 = vmatmul.mubr.msk.bf16.gmra.mrb[104].mxu0 %vm10000_vm3, %v6561_v23  ;;  %vm10001_vm11 = vmmov %vm9996_vm2  ;;  %v4788_v58 = vrot.slane %v4786_v30, 1  ;;  %v5163_v0 = vld [vmem:[%s7357_s25 + $0x34] sm:$0xf]  ;;  %v6563_v39 = vcombine.low %v4204_v59, %v4205_v12  ;;  %v5337_v9 = vrot.slane %v6615_v51, 1  ;;  %v5338_v24 = vrot.slane %v8627_v14, 1 }
 0x126   : > { %7112 = vmatprep.mubr.msk.bf16.mxu1 %vm10001_vm11, %v4773_v53  ;;  %vm10002_vm2 = vmmov %vm9991_vm1  ;;  %v931_v23 = vld [vmem:[#allocation2 + $0xf8] sm:$0xff]  ;;  %v8660_v19 = vcombine.low %v5191_v42, %v5192_v22  ;;  %v1260_v2 = vadd.f32 %v6900_v1, %v930_v15  ;;  %v1215_v54 = vpop.f32.mrb[13].mxu1  ;;  %v929_v29 = vld [vmem:[#allocation2 + $0xe8] sm:$0xff]  ;;  %vm10006_vm9 = vnez %v9733_v33  ;;  %vm10008_vm11 = vnez %v9739_v63  ;;  %v6884_v28 = vpop.f32.mrb[12].mxu0 }
 0x127   : > { %1271 = vst.msk [vmem:[#allocation2 + $0x40] sm:$0xff] %vm10002_vm2, %v1238_v38  ;;  %vm10003_vm1 = vmmov %vm10000_vm3  ;;  %vm10007_vm3 = vcmp.ne.s16.totalorder %v7712_v27, 0  ;;  %v914_v7 = vld [vmem:[#allocation2 + $0x70] sm:$0xff]  ;;  %v1258_v30 = vadd.f32 %v1215_v54, %v928_v46  ;;  %v6901_v43 = vpop.f32.mrb[14].mxu1  ;;  %v5195_v53 = vsel %vm10008_vm11, %v5162_v21, 0  ;;  %v4794_v62 = vshll.u32 %v8631_v52, 16 }
 0x128   : > { %7102 = vmatprep.mubr.msk.bf16.mxu0 %vm10003_vm1, %v6562_v3  ;;  %vm10004_vm10 = vmmov %vm10002_vm2  ;;  %v5193_v3 = vsel %vm10006_vm9, %v5160_v35, 0  ;;  %v5194_v51 = vsel %vm10007_vm3, %v5161_v20, 0  ;;  %v912_v57 = vld [vmem:[#allocation2 + $0x60] sm:$0xff]  ;;  %vm10010_vm1 = vsmask.f32 7424  ;;  %v1261_v33 = vadd.f32 %v6901_v43, %v931_v23  ;;  %v1218_v12 = vpop.f32.mrb[15].mxu1 }
 0x129   : > { %1274 = vst.msk [vmem:[#allocation2 + $0x58] sm:$0xff] %vm10004_vm10, %v1241_v44  ;;  %vm10005_vm5 = vmmov %vm10002_vm2  ;;  %vm10009_vm2 = vcmp.ne.s16.totalorder %v7742_v45, 0  ;;  %v4781_v59 = vsel %vm10010_vm1, %v4776_v32, %v4780_v6  ;;  %v4790_v38 = vshrl.u32 %v8602_v61, 16  ;;  %v915_v35 = vld [vmem:[#allocation2 + $0x78] sm:$0xff]  ;;  %v1259_v63 = vadd.f32 %v1218_v12, %v929_v29  ;;  %v1151_v42 = vpop.f32.mrb[13].mxu0  ;;  %v913_v22 = vld [vmem:[#allocation2 + $0x68] sm:$0xff] }
 0x12a   : > { %1272 = vst.msk [vmem:[#allocation2 + $0x48] sm:$0xff] %vm10005_vm5, %v1239_v26  ;;  %v5196_v41 = vsel %vm10009_vm2, %v5163_v0, 0  ;;  %vm10011_vm10 = vmmov %vm10005_vm5  ;;  %v1244_v45 = vadd.f32 %v6884_v28, %v914_v7  ;;  %v4798_v6 = vshrl.u32 %v8631_v52, 16  ;;  %v4802_v15 = vshll.u32 %v8658_v34, 16  ;;  %v6885_v20 = vpop.f32.mrb[14].mxu0  ;;  %v7247_v21 = vld [vmem:[%s7357_s25 + $0x50] sm:$0xff]  }
 0x12b   : > { %1293 = vst.msk [vmem:[#allocation2 + $0xf0] sm:$0xff] %vm10011_vm10, %v1260_v2  ;;  %vm10012_vm5 = vmmov %vm10010_vm1  ;;  %vm10014_vm3 = vcmask 1046528   ;;  %v8683_v61 = vcombine.low %v5193_v3, %v5194_v51  ;;  %v1242_v37 = vadd.f32 %v1151_v42, %v912_v57  ;;  %v5340_v32 = vrot.slane %v8660_v19, 1  ;;  %v1154_v26 = vpop.f32.mrb[15].mxu0  ;;  %v5165_v23 = vld [vmem:[%s7357_s25 + $0x3c] sm:$0xf] }
 0x12c   : > { %v4789_v27 = vsel %vm10012_vm5, %v4784_v47, %v4788_v58  ;;  %vm10013_vm9 = vmmov %vm10011_vm10  ;;  %v5339_v44 = vsel %vm10014_vm3, %v5337_v9, %v5338_v24  ;;  %vm10016_vm2 = vcmask 23552   ;;  %v4796_v52 = vrot.slane %v4794_v62, 1  ;;  %v5164_v47 = vld [vmem:[%s7357_s25 + $0x38] sm:$0xf]  ;;  %v1330_v19 = vld [vmem:[#allocation2 + $0x10] sm:$0xff]  ;;  %v6906_v2 = vpop.f32.mrb[16].mxu1 }
 0x12d   : > { %1291 = vst.msk [vmem:[#allocation2 + $0xe0] sm:$0xff] %vm10013_vm9, %v1258_v30  ;;  %vm10015_vm11 = vmmov %vm10013_vm9  ;;  %7113 = vmatmul.mubr.msk.bf16.gmra.mrb[116].mxu1 %vm10016_vm2, %v4781_v59  ;;  %v1245_v46 = vadd.f32 %v6885_v20, %v915_v35  ;;  %v8693_v0 = vcombine.low %v5195_v53, %v5196_v41  ;;  %v4792_v9 = vor.u32 %v4790_v38, %v4788_v58  ;;  %v4804_v29 = vrot.slane %v4802_v15, 1  ;;  %v8700_v3 = vld [vmem:[%s7357_s25 + $0x58] sm:$0xff]   ;;  %v1328_v7 = vld [vmem:[#allocation2] sm:$0xff]  ;;  %v1663_v58 = vpop.f32.mrb[17].mxu1 }
 0x12e   : > { %1294 = vst.msk [vmem:[#allocation2 + $0xf8] sm:$0xff] %vm10015_vm11, %v1261_v33  ;;  %vm10017_vm1 = vmmov %vm10013_vm9  ;;  %v1243_v1 = vadd.f32 %v1154_v26, %v913_v22  ;;  %v4800_v54 = vor.u32 %v4798_v6, %v4796_v52  ;;  %v1792_v51 = vadd.f32 %v6906_v2, %v1330_v19  ;;  %v1790_v53 = vadd.f32 %v1663_v58, %v1328_v7  ;;  %v1331_v41 = vld [vmem:[#allocation2 + $0x18] sm:$0xff]  ;;  %v6907_v62 = vpop.f32.mrb[18].mxu1  ;;  %v5166_v59 = vld [vmem:[%s7357_s25 + $0x40] sm:$0xf] }
 0x12f   : > { %1292 = vst.msk [vmem:[#allocation2 + $0xe8] sm:$0xff] %vm10017_vm1, %v1259_v63  ;;  %vm10018_vm10 = vmmov %vm10017_vm1  ;;  %v4810_v33 = vshll.u32 %v7247_v21, 16  ;;  %v5344_v12 = vrot.slane %v8693_v0, 1  ;;  %v1329_v38 = vld [vmem:[#allocation2 + $0x8] sm:$0xff]  ;;  %v1666_v28 = vpop.f32.mrb[19].mxu1  ;;  %v4814_v63 = vshrl.u32 %v7247_v21, 16 }
 0x130   : > { %1277 = vst.msk [vmem:[#allocation2 + $0x70] sm:$0xff] %vm10018_vm10, %v1244_v45  ;;  %vm10019_vm5 = vmmov %vm10016_vm2  ;;  %vm10024_vm10 = vnez %v9743_v10  ;;  %v1793_v10 = vadd.f32 %v6907_v62, %v1331_v41  ;;  %v5167_v14 = vld [vmem:[%s7357_s25 + $0x44] sm:$0xf]  ;;  %v4818_v45 = vshll.u32 %v8700_v3, 16  ;;  %v5169_v20 = vld [vmem:[%s7357_s25 + $0x4c] sm:$0xf] }
 0x131   : > { %7103 = vmatmul.mubr.msk.bf16.gmra.mrb[108].mxu0 %vm10019_vm5, %v6563_v39  ;;  %vm10020_vm9 = vmmov %vm10016_vm2  ;;  %v5342_v39 = vrot.slane %v8683_v61, 1  ;;  %1276 = vst.msk [vmem:[#allocation2 + $0x68] sm:$0xff] %vm10017_vm1, %v1243_v1  ;;  %v5197_v30 = vsel %vm10024_vm10, %v5164_v47, 0  ;;  %vm10025_vm5 = vcmask 1046528   ;;  %v4812_v15 = vrot.slane %v4810_v33, 1  ;;  %v8732_v61 = vld [vmem:[%s7357_s25 + $0x60] sm:$0xff]  }
 0x132   : > { %7116 = vmatprep.mubr.msk.bf16.mxu1 %vm10020_vm9, %v4789_v27  ;;  %vm10021_vm3 = vmmov %vm10017_vm1  ;;  %v5341_v43 = vsel %vm10025_vm5, %v5338_v24, %v5340_v32  ;;  %vm10026_vm9 = vcmp.ne.s16.totalorder %v7771_v48, 0  ;;  %v4806_v24 = vshrl.u32 %v8658_v34, 16  ;;  %v1791_v48 = vadd.f32 %v1666_v28, %v1329_v38  ;;  %v5171_v47 = vld [vmem:[%s7357_s25 + $0x54] sm:$0xf]  ;;  %v8744_v21 = vld [vmem:[%s7357_s25 + $0x68] sm:$0xff]   ;;  %v6940_v28 = vpop.f32.mrb[16].mxu0 }
 0x133   : > { %1275 = vst.msk [vmem:[#allocation2 + $0x60] sm:$0xff] %vm10021_vm3, %v1242_v37  ;;  %vm10022_vm11 = vmmov %vm10016_vm2  ;;  %v5198_v57 = vsel %vm10026_vm9, %v5165_v23, 0  ;;  %vm10027_vm3 = vsmask.f32 7424  ;;  %vm10033_vm9 = vcmask 23552   ;;  %v5199_v34 = vsel %vm9886_vm13, %v5166_v59, 0 }
 0x134   : > { %7142 = vmatprep.mubr.msk.bf16.mxu0 %vm10022_vm11, %v5339_v44  ;;  %vm10023_vm2 = vmmov %vm10017_vm1  ;;  %v4797_v27 = vsel %vm10027_vm3, %v4792_v9, %v4796_v52  ;;  %v8722_v22 = vcombine.low %v5197_v30, %v5198_v57  ;;  %v5168_v44 = vld [vmem:[%s7357_s25 + $0x48] sm:$0xf]  ;;  %v4808_v37 = vor.u32 %v4806_v24, %v4804_v29  ;;  %vm10039_vm13 = vcmask 1046528   ;;  %v6910_v52 = vpop.f32.mrb[20].mxu1  ;;  %v1332_v19 = vld [vmem:[#allocation2 + $0x20] sm:$0xff] }
 0x135   : > { %1278 = vst.msk [vmem:[#allocation2 + $0x78] sm:$0xff] %vm10023_vm2, %v1245_v46  ;;  %vm10028_vm11 = vmmov %vm10017_vm1  ;;  %7117 = vmatmul.mubr.msk.bf16.gmra.mrb[120].mxu1 %vm10033_vm9, %v4797_v27  ;;  %v4816_v46 = vor.u32 %v4814_v63, %v4812_v15  ;;  %v4820_v26 = vrot.slane %v4818_v45, 1  ;;  %v1796_v23 = vadd.f32 %v6910_v52, %v1334_v11  ;;  %v1679_v2 = vpop.f32.mrb[21].mxu1  ;;  %v4826_v30 = vshll.u32 %v8732_v61, 16  ;;  %v1333_v56 = vld [vmem:[#allocation2 + $0x28] sm:$0xff]  ;;  %v2447_v63 = vpop.f32.mrb[17].mxu0 }
 0x136   : > { %1824 = vst.msk [vmem:[#allocation2 + $0x10] sm:$0xff] %vm10028_vm11, %v1792_v51  ;;  %vm10029_vm2 = vmmov %vm10017_vm1  ;;  %vm10035_vm11 = vcmp.ne.s16.totalorder %v7791_v25, 0  ;;  %v5345_v25 = vsel %vm10039_vm13, %v5342_v39, %v5344_v12  ;;  %v5346_v9 = vrot.slane %v8722_v22, 1  ;;  %v1335_v51 = vld [vmem:[#allocation2 + $0x38] sm:$0xff]  ;;  %v4834_v38 = vshll.u32 %v8744_v21, 16 }
 0x137   : > { %1822 = vst.msk [vmem:[#allocation2] sm:$0xff] %vm10029_vm2, %v1790_v53  ;;  %vm10030_vm1 = vmmov %vm10027_vm3  ;;  %v5200_v6 = vsel %vm10035_vm11, %v5167_v14, 0  ;;  %v5172_v27 = vld [vmem:[%s7357_s25 + $0x58] sm:$0xf]  ;;  %v5173_v24 = vld [vmem:[%s7357_s25 + $0x5c] sm:$0xf] }
 0x138   : > { %v4805_v35 = vsel %vm10030_vm1, %v4800_v54, %v4804_v29  ;;  %vm10031_vm10 = vmmov %vm10025_vm5  ;;  %v8747_v1 = vcombine.low %v5199_v34, %v5200_v6  ;;  %v5201_v54 = vsel %vm9888_vm15, %v5168_v44, 0  ;;  %v1794_v29 = vadd.f32 %v1679_v2, %v1332_v19  ;;  %v6941_v6 = vpop.f32.mrb[18].mxu0  ;;  %v5174_v19 = vld [vmem:[%s7357_s25 + $0x60] sm:$0xf] }
 0x139   : > { %v5343_v42 = vsel %vm10031_vm10, %v5340_v32, %v5342_v39  ;;  %vm10032_vm5 = vmmov %vm10029_vm2  ;;  %v5170_v32 = vld [vmem:[%s7357_s25 + $0x50] sm:$0xf]  ;;  %v6911_v39 = vpop.f32.mrb[22].mxu1  ;;  %vm10042_vm15 = vcmp.ne.s16.totalorder %v9900_v13, 0  ;;  %v4828_v0 = vrot.slane %v4826_v30, 1  ;;  %v5205_v44 = vsel %vm9903_vm12, %v5172_v27, 0 }
 0x13a   : > { %1825 = vst.msk [vmem:[#allocation2 + $0x18] sm:$0xff] %vm10032_vm5, %v1793_v10  ;;  %vm10034_vm3 = vmmov %vm10029_vm2  ;;  %vm10040_vm5 = vcmp.ne.s16.totalorder %v9889_v5, 0  ;;  %v5203_v58 = vsel %vm9899_vm6, %v5170_v32, 0  ;;  %v1797_v41 = vadd.f32 %v6911_v39, %v1335_v51  ;;  %v1682_v62 = vpop.f32.mrb[23].mxu1  ;;  %v5204_v57 = vsel %vm10042_vm15, %v5171_v47, 0  ;;  %v1337_v30 = vld [vmem:[#allocation2 + $0x48] sm:$0xff] }
 0x13b   : > { %1823 = vst.msk [vmem:[#allocation2 + $0x8] sm:$0xff] %vm10034_vm3, %v1791_v48  ;;  %vm10036_vm2 = vmmov %vm10033_vm9  ;;  %v5202_v7 = vsel %vm10040_vm5, %v5169_v20, 0  ;;  %vm10041_vm9 = vsmask.f32 7424  ;;  %v4822_v5 = vshrl.u32 %v8700_v3, 16  ;;  %v1795_v4 = vadd.f32 %v1682_v62, %v1333_v56  ;;  %v1338_v20 = vld [vmem:[#allocation2 + $0x50] sm:$0xff] }
 0x13c   : > { %7143 = vmatmul.mubr.msk.bf16.vlgmr.msra.gmra.mrb[112].mxu0 %vm10036_vm2, %v5341_v43  ;;  %vm10037_vm1 = vmmov %vm10036_vm2  ;;  %v4813_v43 = vsel %vm10041_vm9, %v4808_v37, %v4812_v15  ;;  %1828 = vst.msk [vmem:[#allocation2 + $0x30] sm:$0xff] %vm10034_vm3, %v1796_v23  ;;  %v4830_v10 = vshrl.u32 %v8732_v61, 16  ;;  %v8772_v14 = vcombine.low %v5201_v54, %v5202_v7  ;;  %v5348_v48 = vrot.slane %v8747_v1, 1  ;;  %v2450_v37 = vpop.f32.mrb[19].mxu0  ;;  %v6914_v32 = vpop.f32.mrb[24].mxu1  ;;  %v1336_v1 = vld [vmem:[#allocation2 + $0x40] sm:$0xff] }
 0x13d   : > { %7120 = vmatprep.mubr.msk.bf16.mxu1 %vm10037_vm1, %v4805_v35  ;;  %vm10038_vm10 = vmmov %vm10037_vm1  ;;  %v2213_v53 = vld [vmem:[#allocation2 + $0x10] sm:$0xff]  ;;  %v4824_v15 = vor.u32 %v4822_v5, %v4820_v26  ;;  %v4836_v52 = vrot.slane %v4834_v38, 1  ;;  %v1800_v47 = vadd.f32 %v6914_v32, %v1338_v20  ;;  %v1695_v23 = vpop.f32.mrb[25].mxu1  ;;  %v5175_v39 = vld [vmem:[%s7357_s25 + $0x64] sm:$0xf] }
 0x13e   : > { %7146 = vmatprep.mubr.msk.bf16.mxu0 %vm10038_vm10, %v5343_v42  ;;  %v2211_v59 = vld [vmem:[#allocation2] sm:$0xff]  ;;  %vm10043_vm11 = vmmov %vm10034_vm3  ;;  %7121 = vmatmul.mubr.msk.bf16.gmra.mrb[124].mxu1 %vm10038_vm10, %v4813_v43  ;;  %v2576_v35 = vadd.f32 %v6940_v28, %v2213_v53  ;;  %v8778_v42 = vcombine.low %v5203_v58, %v5204_v57  ;;  %v4832_v11 = vor.u32 %v4830_v10, %v4828_v0  ;;  %v6915_v51 = vpop.f32.mrb[26].mxu1  ;;  %v4838_v53 = vshrl.u32 %v8744_v21, 16  ;;  %v5176_v10 = vld [vmem:[%s7357_s25 + $0x68] sm:$0xf] }
 0x13f   : > { %1826 = vst.msk [vmem:[#allocation2 + $0x20] sm:$0xff] %vm10043_vm11, %v1794_v29  ;;  %vm10044_vm6 = vmmov %vm10041_vm9  ;;  %v2574_v34 = vadd.f32 %v2447_v63, %v2211_v59  ;;  %vm10052_vm11 = vcmp.ne.s16.totalorder %v9904_v50, 0  ;;  %v1798_v54 = vadd.f32 %v1695_v23, %v1336_v1  ;;  %v1339_v29 = vld [vmem:[#allocation2 + $0x58] sm:$0xff]  ;;  %v5207_v59 = vsel %vm9912_vm4, %v5174_v19, 0  ;;  %v5177_v38 = vld [vmem:[%s7357_s25 + $0x6c] sm:$0xf] }
 0x140   : > { %v4821_v33 = vsel %vm10044_vm6, %v4816_v46, %v4820_v26  ;;  %vm10045_vm2 = vmmov %vm10039_vm13  ;;  %v8792_v46 = vld [vmem:[%s7357_s25 + $0x78] sm:$0xff]   ;;  %v5350_v26 = vrot.slane %v8772_v14, 1  ;;  %v5352_v50 = vrot.slane %v8778_v42, 1  ;;  %v1801_v22 = vadd.f32 %v6915_v51, %v1339_v29  ;;  %v8833_v28 = vld [vmem:[%s7357_s25 + $0x88] sm:$0xff]  }
 0x141   : > { %v5347_v13 = vsel %vm10045_vm2, %v5344_v12, %v5346_v9  ;;  %v2214_v3 = vld [vmem:[#allocation2 + $0x18] sm:$0xff]  ;;  %vm10046_vm1 = vmmov %vm10034_vm3  ;;  %v8781_v12 = vld [vmem:[%s7357_s25 + $0x70] sm:$0xff]   ;;  %v4850_v57 = vshll.u32 %v8792_v46, 16 }
 0x142   : > { %1829 = vst.msk [vmem:[#allocation2 + $0x38] sm:$0xff] %vm10046_vm1, %v1797_v41  ;;  %v2212_v45 = vld [vmem:[#allocation2 + $0x8] sm:$0xff]  ;;  %vm10047_vm13 = vmmov %vm10046_vm1  ;;  %v2577_v61 = vadd.f32 %v6941_v6, %v2214_v3  ;;  %v4842_v7 = vshll.u32 %v8781_v12, 16  ;;  %v4846_v62 = vshrl.u32 %v8781_v12, 16  ;;  %v6944_v3 = vpop.f32.mrb[20].mxu0 }
 0x143   : > { %1827 = vst.msk [vmem:[#allocation2 + $0x28] sm:$0xff] %vm10047_vm13, %v1795_v4  ;;  %vm10048_vm5 = vmmov %vm10038_vm10  ;;  %v2575_v60 = vadd.f32 %v2450_v37, %v2212_v45  ;;  %vm10056_vm10 = vsmask.f32 7424  ;;  %v8821_v4 = vld [vmem:[%s7357_s25 + $0x80] sm:$0xff]   ;;  %v5209_v37 = vsel %vm9916_vm8, %v5176_v10, 0 }
 0x144   : > { %7147 = vmatmul.mubr.msk.bf16.gmra.mrb[116].mxu0 %vm10048_vm5, %v5345_v25  ;;  %vm10049_vm9 = vmmov %vm10048_vm5  ;;  %v5206_v25 = vsel %vm10052_vm11, %v5173_v24, 0  ;;  %v4829_v58 = vsel %vm10056_vm10, %v4824_v15, %v4828_v0  ;;  %vm10062_vm11 = vcmp.ne.s16.totalorder %v9913_v16, 0  ;;  %v4844_v27 = vrot.slane %v4842_v7, 1  ;;  %v5180_v42 = vld [vmem:[%s7357_s25 + $0x78] sm:$0xf] }
 0x145   : > { %7124 = vmatprep.mubr.msk.bf16.mxu1 %vm10049_vm9, %v4821_v33  ;;  %vm10050_vm3 = vmmov %vm10048_vm5  ;;  %2607 = vst.msk [vmem:[#allocation2 + $0x8] sm:$0xff] %vm10046_vm1, %v2575_v60  ;;  %v8807_v43 = vcombine.low %v5205_v44, %v5206_v25  ;;  %v5208_v21 = vsel %vm10062_vm11, %v5175_v39, 0  ;;  %v2217_v33 = vld [vmem:[#allocation2 + $0x30] sm:$0xff]  ;;  %v4840_v16 = vor.u32 %v4838_v53, %v4836_v52  ;;  %v4852_v0 = vrot.slane %v4850_v57, 1  ;;  %v1340_v44 = vld [vmem:[#allocation2 + $0x60] sm:$0xff] }
 0x146   : > { %7150 = vmatprep.mubr.msk.bf16.mxu0 %vm10050_vm3, %v5347_v13  ;;  %vm10051_vm15 = vmmov %vm10046_vm1  ;;  %v2215_v13 = vld [vmem:[#allocation2 + $0x20] sm:$0xff]  ;;  %v4848_v45 = vor.u32 %v4846_v62, %v4844_v27  ;;  %v2580_v12 = vadd.f32 %v6944_v3, %v2217_v33  ;;  %v4866_v39 = vshll.u32 %v8833_v28, 16  ;;  %v7255_v62 = vld [vmem:[%s7357_s25 + $0x90] ss:$0 sps:$4 sm:$0x11]   ;;  %v5213_v3 = vsel %vm9928_vm14, %v5180_v42, 0 }
 0x147   : > { %2608 = vst.msk [vmem:[#allocation2 + $0x10] sm:$0xff] %vm10051_vm15, %v2576_v35  ;;  %vm10053_vm6 = vmmov %vm10046_vm1  ;;  %v5354_v24 = vrot.slane %v8807_v43, 1  ;;  %v1342_v35 = vld [vmem:[#allocation2 + $0x70] sm:$0xff]  ;;  %v4874_v43 = vshll.u32 %v7255_v62, 16 }
 0x148   : > { %2606 = vst.msk [vmem:[#allocation2] sm:$0xff] %vm10053_vm6, %v2574_v34  ;;  %vm10054_vm12 = vmmov %vm10045_vm2  ;;  %vm10063_vm6 = vcmask 23552   ;;  %v2463_v34 = vpop.f32.mrb[21].mxu0 }
 0x149   : > { %v5349_v2 = vsel %vm10054_vm12, %v5346_v9, %v5348_v48  ;;  %vm10055_vm2 = vmmov %vm10046_vm1  ;;  %v1698_v9 = vpop.f32.mrb[27].mxu1  ;;  %7125 = vmatmul.mubr.msk.bf16.gmra.mrb[128].mxu1 %vm10063_vm6, %v4829_v58  ;;  %v2218_v14 = vld [vmem:[#allocation2 + $0x38] sm:$0xff]  ;;  %v2578_v32 = vadd.f32 %v2463_v34, %v2215_v13  ;;  %v6945_v25 = vpop.f32.mrb[22].mxu0 }
 0x14a   : > { %2609 = vst.msk [vmem:[#allocation2 + $0x18] sm:$0xff] %vm10055_vm2, %v2577_v61  ;;  %vm10057_vm13 = vmmov %vm10046_vm1  ;;  %v1799_v41 = vadd.f32 %v1698_v9, %v1337_v30  ;;  %v6918_v63 = vpop.f32.mrb[28].mxu1  ;;  %v2216_v6 = vld [vmem:[#allocation2 + $0x28] sm:$0xff]  ;;  %v2581_v1 = vadd.f32 %v6945_v25, %v2218_v14  ;;  %v2466_v23 = vpop.f32.mrb[23].mxu0  ;;  %v5179_v9 = vld [vmem:[%s7357_s25 + $0x74] sm:$0xf] }
 0x14b   : > { %1832 = vst.msk [vmem:[#allocation2 + $0x50] sm:$0xff] %vm10057_vm13, %v1800_v47  ;;  %vm10058_vm5 = vmmov %vm10046_vm1  ;;  %v1804_v15 = vadd.f32 %v6918_v63, %v1342_v35  ;;  %v1711_v61 = vpop.f32.mrb[29].mxu1  ;;  %vm10069_vm13 = vcmp.ne.s16.totalorder %v9917_v18, 0  ;;  %v4858_v47 = vshll.u32 %v8821_v4, 16  ;;  %v1341_v18 = vld [vmem:[#allocation2 + $0x68] sm:$0xff]  ;;  %v1346_v63 = vld [vmem:[#allocation2 + $0x90] sm:$0xff] }
 0x14c   : > { %1830 = vst.msk [vmem:[#allocation2 + $0x40] sm:$0xff] %vm10058_vm5, %v1798_v54  ;;  %vm10059_vm9 = vmmov %vm10056_vm10  ;;  %v5210_v20 = vsel %vm10069_vm13, %v5177_v38, 0  ;;  %v6919_v60 = vpop.f32.mrb[30].mxu1  ;;  %v4862_v54 = vshrl.u32 %v8821_v4, 16  ;;  %v1345_v25 = vld [vmem:[#allocation2 + $0x88] sm:$0xff] }
 0x14d   : > { %v4837_v56 = vsel %vm10059_vm9, %v4832_v11, %v4836_v52  ;;  %vm10060_vm3 = vmmov %vm10054_vm12  ;;  %v1802_v11 = vadd.f32 %v1711_v61, %v1340_v44  ;;  %v1343_v52 = vld [vmem:[#allocation2 + $0x78] sm:$0xff]  ;;  %2612 = vst.msk [vmem:[#allocation2 + $0x30] sm:$0xff] %vm10058_vm5, %v2580_v12  ;;  %v4845_v19 = vsel %vm10059_vm9, %v4840_v16, %v4844_v27  ;;  %v8860_v58 = vcombine.low %v5209_v37, %v5210_v20 }
 0x14e   : > { %v5351_v5 = vsel %vm10060_vm3, %v5348_v48, %v5350_v26  ;;  %vm10061_vm15 = vmmov %vm10046_vm1  ;;  %v8837_v48 = vcombine.low %v5207_v59, %v5208_v21  ;;  %v1805_v40 = vadd.f32 %v6919_v60, %v1343_v52  ;;  %v4860_v53 = vrot.slane %v4858_v47, 1  ;;  %v6948_v21 = vpop.f32.mrb[24].mxu0  ;;  %v5182_v52 = vld [vmem:[%s7357_s25 + $0x80] sm:$0xf]  ;;  %v5183_v60 = vld [vmem:[%s7357_s25 + $0x84] sm:$0xf] }
 0x14f   : > { %1833 = vst.msk [vmem:[#allocation2 + $0x58] sm:$0xff] %vm10061_vm15, %v1801_v22  ;;  %vm10064_vm12 = vmmov %vm10046_vm1  ;;  %v5178_v22 = vld [vmem:[%s7357_s25 + $0x70] sm:$0xf]  ;;  %v4868_v59 = vrot.slane %v4866_v39, 1  ;;  %v5358_v33 = vrot.slane %v8860_v58, 1  ;;  %v2479_v13 = vpop.f32.mrb[25].mxu0 }
 0x150   : > { %1831 = vst.msk [vmem:[#allocation2 + $0x48] sm:$0xff] %vm10064_vm12, %v1799_v41  ;;  %vm10065_vm2 = vmmov %vm10063_vm6  ;;  %v5356_v30 = vrot.slane %v8837_v48, 1  ;;  %v5211_v27 = vsel %vm9925_vm0, %v5178_v22, 0  ;;  %v6949_v35 = vpop.f32.mrb[26].mxu0 }
 0x151   : > { %7151 = vmatmul.mubr.msk.bf16.gmra.mrb[120].mxu0 %vm10065_vm2, %v5349_v2  ;;  %vm10066_vm1 = vmmov %vm10060_vm3  ;;  %v1714_v2 = vpop.f32.mrb[31].mxu1 }
 0x152   : > { %v5353_v31 = vsel %vm10066_vm1, %v5350_v26, %v5352_v50  ;;  %vm10067_vm4 = vmmov %vm10065_vm2  ;;  %v4854_v26 = vshrl.u32 %v8792_v46, 16  ;;  %v2579_v46 = vadd.f32 %v2466_v23, %v2216_v6  ;;  %v1803_v29 = vadd.f32 %v1714_v2, %v1341_v18  ;;  %v5184_v23 = vld [vmem:[%s7357_s25 + $0x88] sm:$0xf] }
 0x153   : > { %7128 = vmatprep.mubr.msk.bf16.mxu1 %vm10067_vm4, %v4837_v56  ;;  %vm10068_vm10 = vmmov %vm10065_vm2  ;;  %v5181_v56 = vld [vmem:[%s7357_s25 + $0x7c] sm:$0xf]  ;;  %v2219_v57 = vld [vmem:[#allocation2 + $0x40] sm:$0xff]  ;;  %v5215_v2 = vsel %vm7999_vm7, %v5182_v52, 0 }
 0x154   : > { %7154 = vmatprep.mubr.msk.bf16.mxu0 %vm10068_vm10, %v5351_v5  ;;  %vm10070_vm3 = vmmov %vm10058_vm5  ;;  %7129 = vmatmul.mubr.msk.bf16.gmra.mrb[132].mxu1 %vm10067_vm4, %v4845_v19  ;;  %v4856_v41 = vor.u32 %v4854_v26, %v4852_v0  ;;  %v4864_v5 = vor.u32 %v4862_v54, %v4860_v53  ;;  %v2582_v48 = vadd.f32 %v2479_v13, %v2219_v57  ;;  %v5185_v19 = vld [vmem:[%s7357_s25 + $0x8c] sm:$0xf]  ;;  %v10099_v54 = vld [vmem:[#allocation18_spill] sm:$0xff] }
 0x155   : > { %1836 = vst.msk [vmem:[#allocation2 + $0x70] sm:$0xff] %vm10070_vm3, %v1804_v15  ;;  %vm10071_vm8 = vmmov %vm10070_vm3 }
 0x156   : > { %2610 = vst.msk [vmem:[#allocation2 + $0x20] sm:$0xff] %vm10071_vm8, %v2578_v32  ;;  %vm10072_vm15 = vmmov %vm10070_vm3  ;;  %v2222_v4 = vld [vmem:[#allocation2 + $0x58] sm:$0xff] }
 0x157   : > { %1834 = vst.msk [vmem:[#allocation2 + $0x60] sm:$0xff] %vm10072_vm15, %v1802_v11  ;;  %vm10073_vm11 = vmmov %vm10059_vm9  ;;  %v2220_v16 = vld [vmem:[#allocation2 + $0x48] sm:$0xff]  ;;  %vm10084_vm15 = vcmp.ne.s16.totalorder %v7981_v49, 0 }
 0x158   : > { %v4853_v51 = vsel %vm10073_vm11, %v4848_v45, %v4852_v0  ;;  %vm10074_vm6 = vmmov %vm10070_vm3  ;;  %v5214_v14 = vsel %vm10084_vm15, %v5181_v56, 0  ;;  %v4861_v36 = vsel %vm10073_vm11, %v4856_v41, %v4860_v53  ;;  %v4870_v45 = vshrl.u32 %v8833_v28, 16  ;;  %v2482_v0 = vpop.f32.mrb[27].mxu0  ;;  %v1347_v28 = vld [vmem:[#allocation2 + $0x98] sm:$0xff] }
 0x159   : > { %2613 = vst.msk [vmem:[#allocation2 + $0x38] sm:$0xff] %vm10074_vm6, %v2581_v1  ;;  %vm10075_vm12 = vmmov %vm10066_vm1  ;;  %v2583_v15 = vadd.f32 %v2482_v0, %v2220_v16  ;;  %v8892_v20 = vcombine.low %v5213_v3, %v5214_v14  ;;  %v4876_v1 = vrot.slane %v4874_v43, 1  ;;  %v6952_v53 = vpop.f32.mrb[28].mxu0  ;;  %v1348_v16 = vld [vmem:[#allocation2 + $0xa0] sm:$0xff]  ;;  %v1349_v43 = vld [vmem:[#allocation2 + $0xa8] sm:$0xff] }
 0x15a   : > { %v5355_v7 = vsel %vm10075_vm12, %v5352_v50, %v5354_v24  ;;  %vm10076_vm2 = vmmov %vm10070_vm3  ;;  %v2221_v50 = vld [vmem:[#allocation2 + $0x50] sm:$0xff]  ;;  %vm10082_vm3 = vcmp.ne.s16.totalorder %v9926_v8, 0  ;;  %v6922_v8 = vpop.f32.mrb[32].mxu1  ;;  %v4872_v47 = vor.u32 %v4870_v45, %v4868_v59  ;;  %v2495_v41 = vpop.f32.mrb[29].mxu0 }
 0x15b   : > { %1837 = vst.msk [vmem:[#allocation2 + $0x78] sm:$0xff] %vm10076_vm2, %v1805_v40  ;;  %vm10077_vm1 = vmmov %vm10076_vm2  ;;  %v5212_v10 = vsel %vm10082_vm3, %v5179_v9, 0  ;;  %v1808_v34 = vadd.f32 %v6922_v8, %v1346_v63  ;;  %v1727_v6 = vpop.f32.mrb[33].mxu1  ;;  %v5362_v18 = vrot.slane %v8892_v20, 1  ;;  %v10111_v63 = vld [vmem:[#allocation21_spill] sm:$0xff] }
 0x15c   : > { %2611 = vst.msk [vmem:[#allocation2 + $0x28] sm:$0xff] %vm10077_vm1, %v2579_v46  ;;  %vm10078_vm10 = vmmov %vm10077_vm1  ;;  %v6627_v12 = vcombine.low %v5211_v27, %v5212_v10  ;;  %v1806_v61 = vadd.f32 %v1727_v6, %v1344_v55  ;;  %v6923_v37 = vpop.f32.mrb[34].mxu1  ;;  %v1350_v27 = vld [vmem:[#allocation2 + $0xb0] sm:$0xff] }
 0x15d   : > { %1835 = vst.msk [vmem:[#allocation2 + $0x68] sm:$0xff] %vm10078_vm10, %v1803_v29  ;;  %vm10079_vm13 = vmmov %vm10067_vm4  ;;  %v1809_v32 = vadd.f32 %v6923_v37, %v1347_v28  ;;  %v1730_v11 = vpop.f32.mrb[35].mxu1  ;;  %v2225_v29 = vld [vmem:[#allocation2 + $0x70] sm:$0xff] }
 0x15e   : > { %7155 = vmatmul.mubr.msk.bf16.gmra.mrb[124].mxu0 %vm10079_vm13, %v5353_v31  ;;  %vm10080_vm5 = vmmov %vm10067_vm4  ;;  %v2584_v31 = vadd.f32 %v6948_v21, %v2221_v50  ;;  %v1807_v26 = vadd.f32 %v1730_v11, %v1345_v25  ;;  %v5360_v40 = vrot.slane %v6627_v12, 1  ;;  %v2223_v22 = vld [vmem:[#allocation2 + $0x60] sm:$0xff]  ;;  %v2588_v50 = vadd.f32 %v6952_v53, %v2225_v29  ;;  %v5186_v21 = vld [vmem:[%s7357_s25 + $0x90] sm:$0x1]  ;;  %v6926_v10 = vpop.f32.mrb[36].mxu1 }
 0x15f   : > { %7132 = vmatprep.mubr.msk.bf16.mxu1 %vm10080_vm5, %v4853_v51  ;;  %vm10081_vm9 = vmmov %vm10067_vm4  ;;  %v10101_v51 = vld [vmem:[#allocation19_spill] sm:$0xff]  ;;  %v1812_v13 = vadd.f32 %v6926_v10, %v1350_v27  ;;  %v1743_v3 = vpop.f32.mrb[37].mxu1  ;;  %v1354_v20 = vld [vmem:[#allocation2 + $0xd0] sm:$0xff] }
 0x160   : > { %7158 = vmatprep.mubr.msk.bf16.mxu0 %vm10081_vm9, %v5355_v7  ;;  %vm10083_vm8 = vmmov %vm10075_vm12  ;;  %v10103_v7 = vld [vmem:[#allocation20_spill] sm:$0xff]  ;;  %v1810_v14 = vadd.f32 %v1743_v3, %v1348_v16  ;;  %v1359_v27 = vld [vmem:[#allocation2 + $0xf8] sm:$0xff] }
 0x161   : > { %v5357_v38 = vsel %vm10083_vm8, %v5354_v24, %v5356_v30  ;;  %vm10085_vm0 = vmmov %vm10077_vm1  ;;  %v2585_v24 = vadd.f32 %v6949_v35, %v2222_v4  ;;  %v6927_v35 = vpop.f32.mrb[38].mxu1 }
 0x162   : > { %2616 = vst.msk [vmem:[#allocation2 + $0x50] sm:$0xff] %vm10085_vm0, %v2584_v31  ;;  %vm10086_vm14 = vmmov %vm10073_vm11  ;;  %vm10100_vm11 = vcmp.ne.s16.totalorder %v10099_v54, 0  ;;  %v2226_v42 = vld [vmem:[#allocation2 + $0x78] sm:$0xff] }
 0x163   : > { %v4869_v49 = vsel %vm10086_vm14, %v4864_v5, %v4868_v59  ;;  %vm10087_vm6 = vmmov %vm10085_vm0  ;;  %v5216_v46 = vsel %vm10100_vm11, %v5183_v60, 0  ;;  %vm10104_vm14 = vcmp.ne.s16.totalorder %v10103_v7, 0  ;;  %v2586_v5 = vadd.f32 %v2495_v41, %v2223_v22  ;;  %v6953_v59 = vpop.f32.mrb[30].mxu0  ;;  %v1358_v41 = vld [vmem:[#allocation2 + $0xf0] sm:$0xff] }
 0x164   : > { %2614 = vst.msk [vmem:[#allocation2 + $0x40] sm:$0xff] %vm10087_vm6, %v2582_v48  ;;  %vm10088_vm12 = vmmov %vm10083_vm8  ;;  %v5218_v58 = vsel %vm10104_vm14, %v5185_v19, 0  ;;  %vm10105_vm6 = vsmask.f32 7424  ;;  %v6629_v17 = vcombine.low %v5215_v2, %v5216_v46  ;;  %v2224_v56 = vld [vmem:[#allocation2 + $0x68] sm:$0xff]  ;;  %v2589_v4 = vadd.f32 %v6953_v59, %v2226_v42  ;;  %v1351_v48 = vld [vmem:[#allocation2 + $0xb8] sm:$0xff] }
 0x165   : > { %v5359_v44 = vsel %vm10088_vm12, %v5356_v30, %v5358_v33  ;;  %vm10089_vm2 = vmmov %vm10085_vm0  ;;  %v4877_v30 = vsel %vm10105_vm6, %v4872_v47, %v4876_v1  ;;  %v5361_v9 = vsel %vm10088_vm12, %v5358_v33, %v5360_v40  ;;  %v2498_v33 = vpop.f32.mrb[31].mxu0  ;;  %v1813_v45 = vadd.f32 %v6927_v35, %v1351_v48  ;;  %v1353_v46 = vld [vmem:[#allocation2 + $0xc8] sm:$0xff]  ;;  %v1356_v59 = vld [vmem:[#allocation2 + $0xe0] sm:$0xff] }
 0x166   : > { %2617 = vst.msk [vmem:[#allocation2 + $0x58] sm:$0xff] %vm10089_vm2, %v2585_v24  ;;  %vm10090_vm1 = vmmov %vm10067_vm4  ;;  %v5364_v31 = vrot.slane %v6629_v17, 1  ;;  %v1746_v24 = vpop.f32.mrb[39].mxu1  ;;  %v2704_v48 = vld [vmem:[#allocation2 + $0x10] sm:$0xff] }
 0x167   : > { %7133 = vmatmul.mubr.msk.bf16.gmra.mrb[136].mxu1 %vm10090_vm1, %v4861_v36  ;;  %vm10091_vm4 = vmmov %vm10085_vm0  ;;  %v1811_v0 = vadd.f32 %v1746_v24, %v1349_v43 }
 0x168   : > { %1840 = vst.msk [vmem:[#allocation2 + $0x90] sm:$0xff] %vm10091_vm4, %v1808_v34  ;;  %vm10092_vm10 = vmmov %vm10090_vm1 }
 0x169   : > { %7159 = vmatmul.mubr.msk.bf16.gmra.mrb[128].mxu0 %vm10092_vm10, %v5357_v38  ;;  %vm10093_vm13 = vmmov %vm10085_vm0  ;;  %2620 = vst.msk [vmem:[#allocation2 + $0x70] sm:$0xff] %vm10091_vm4, %v2588_v50  ;;  %v2587_v38 = vadd.f32 %v2498_v33, %v2224_v56 }
 0x16a   : > { %2615 = vst.msk [vmem:[#allocation2 + $0x48] sm:$0xff] %vm10093_vm13, %v2583_v15  ;;  %vm10094_vm5 = vmmov %vm10085_vm0  ;;  %v6956_v15 = vpop.f32.mrb[32].mxu0 }
 0x16b   : > { %1838 = vst.msk [vmem:[#allocation2 + $0x80] sm:$0xff] %vm10094_vm5, %v1806_v61  ;;  %vm10095_vm9 = vmmov %vm10090_vm1  ;;  %v2511_v28 = vpop.f32.mrb[33].mxu0 }
 0x16c   : > { %7136 = vmatprep.mubr.msk.bf16.mxu1 %vm10095_vm9, %v4869_v49  ;;  %vm10096_vm3 = vmmov %vm10090_vm1  ;;  %vm10112_vm9 = vcmp.ne.s16.totalorder %v10111_v63, 0  ;;  %v6957_v11 = vpop.f32.mrb[34].mxu0 }
 0x16d   : > { %7162 = vmatprep.mubr.msk.bf16.mxu0 %vm10096_vm3, %v5359_v44  ;;  %vm10097_vm8 = vmmov %vm10085_vm0  ;;  %v5219_v8 = vsel %vm10112_vm9, %v5186_v21, 0 }
 0x16e   : > { %1841 = vst.msk [vmem:[#allocation2 + $0x98] sm:$0xff] %vm10097_vm8, %v1809_v32  ;;  %vm10098_vm15 = vmmov %vm10085_vm0  ;;  %vm10102_vm0 = vnez %v10101_v51  ;;  %v6631_v55 = vcombine.low %v5219_v8, %v5219_v8  ;;  %v6930_v32 = vpop.f32.mrb[40].mxu1 }
 0x16f   : > { %1839 = vst.msk [vmem:[#allocation2 + $0x88] sm:$0xff] %vm10098_vm15, %v1807_v26  ;;  %v5217_v39 = vsel %vm10102_vm0, %v5184_v23, 0  ;;  %vm10106_vm7 = vmmov %vm10088_vm12  ;;  %v2229_v34 = vld [vmem:[#allocation2 + $0x90] sm:$0xff]  ;;  %v1816_v60 = vadd.f32 %v6930_v32, %v1354_v20  ;;  %v1352_v26 = vld [vmem:[#allocation2 + $0xc0] sm:$0xff]  ;;  %v1759_v47 = vpop.f32.mrb[41].mxu1  ;;  %v2514_v23 = vpop.f32.mrb[35].mxu0 }
 0x170   : > { %v5363_v62 = vsel %vm10106_vm7, %v5360_v40, %v5362_v18  ;;  %v8920_v57 = vcombine.low %v5217_v39, %v5218_v58  ;;  %vm10107_vm2 = vmmov %vm10090_vm1  ;;  %v2592_v61 = vadd.f32 %v6956_v15, %v2229_v34  ;;  %v5368_v52 = vrot.slane %v6631_v55, 1  ;;  %v1355_v40 = vld [vmem:[#allocation2 + $0xd8] sm:$0xff]  ;;  %v6960_v22 = vpop.f32.mrb[36].mxu0 }
 0x171   : > { %7137 = vmatmul.mubr.msk.bf16.gmra.mrb[140].mxu1 %vm10107_vm2, %v4877_v30  ;;  %7163 = vmatmul.mubr.msk.bf16.gmra.mrb[132].mxu0 %vm10090_vm1, %v5361_v9  ;;  %vm10108_vm10 = vmmov %vm10091_vm4  ;;  %v1814_v19 = vadd.f32 %v1759_v47, %v1352_v26  ;;  %v2527_v53 = vpop.f32.mrb[37].mxu0  ;;  %v2705_v55 = vld [vmem:[#allocation2 + $0x18] sm:$0xff] }
 0x172   : > { %2618 = vst.msk [vmem:[#allocation2 + $0x60] sm:$0xff] %vm10108_vm10, %v2586_v5  ;;  %vm10109_vm13 = vmmov %vm10090_vm1  ;;  %v5366_v36 = vrot.slane %v8920_v57, 1  ;;  %v2227_v6 = vld [vmem:[#allocation2 + $0x80] sm:$0xff]  ;;  %v6961_v50 = vpop.f32.mrb[38].mxu0 }
 0x173   : > { %7166 = vmatprep.mubr.msk.bf16.mxu0 %vm10109_vm13, %v5363_v62  ;;  %vm10110_vm5 = vmmov %vm10091_vm4  ;;  %v2590_v25 = vadd.f32 %v2511_v28, %v2227_v6  ;;  %v2530_v57 = vpop.f32.mrb[39].mxu0 }
 0x174   : > { %2621 = vst.msk [vmem:[#allocation2 + $0x78] sm:$0xff] %vm10110_vm5, %v2589_v4  ;;  %vm10113_vm3 = vmmov %vm10091_vm4 }
 0x175   : > { %2619 = vst.msk [vmem:[#allocation2 + $0x68] sm:$0xff] %vm10113_vm3, %v2587_v38  ;;  %vm10114_vm8 = vmmov %vm10113_vm3  ;;  %v2230_v44 = vld [vmem:[#allocation2 + $0x98] sm:$0xff] }
 0x176   : > { %1844 = vst.msk [vmem:[#allocation2 + $0xb0] sm:$0xff] %vm10114_vm8, %v1812_v13  ;;  %vm10115_vm15 = vmmov %vm10113_vm3  ;;  %v2228_v37 = vld [vmem:[#allocation2 + $0x88] sm:$0xff]  ;;  %v2593_v1 = vadd.f32 %v6957_v11, %v2230_v44 }
 0x177   : > { %1842 = vst.msk [vmem:[#allocation2 + $0xa0] sm:$0xff] %vm10115_vm15, %v1810_v14  ;;  %vm10116_vm11 = vmmov %vm10106_vm7  ;;  %v2591_v2 = vadd.f32 %v2514_v23, %v2228_v37 }
 0x178   : > { %v5365_v12 = vsel %vm10116_vm11, %v5362_v18, %v5364_v31  ;;  %vm10117_vm0 = vmmov %vm10113_vm3  ;;  %v6931_v18 = vpop.f32.mrb[42].mxu1 }
 0x179   : > { %1845 = vst.msk [vmem:[#allocation2 + $0xb8] sm:$0xff] %vm10117_vm0, %v1813_v45  ;;  %vm10118_vm14 = vmmov %vm10117_vm0  ;;  %v1817_v54 = vadd.f32 %v6931_v18, %v1355_v40  ;;  %v1762_v29 = vpop.f32.mrb[43].mxu1  ;;  %v2702_v45 = vld [vmem:[#allocation2] sm:$0xff] }
 0x17a   : > { %1843 = vst.msk [vmem:[#allocation2 + $0xa8] sm:$0xff] %vm10118_vm14, %v1811_v0  ;;  %vm10119_vm6 = vmmov %vm10106_vm7  ;;  %v1815_v51 = vadd.f32 %v1762_v29, %v1353_v46  ;;  %v6934_v56 = vpop.f32.mrb[44].mxu1  ;;  %v2709_v29 = vld [vmem:[#allocation2 + $0x38] sm:$0xff] }
 0x17b   : > { %v5367_v49 = vsel %vm10119_vm6, %v5364_v31, %v5366_v36  ;;  %vm10120_vm12 = vmmov %vm10090_vm1  ;;  %v1820_v5 = vadd.f32 %v6934_v56, %v1358_v41  ;;  %v1775_v21 = vpop.f32.mrb[45].mxu1  ;;  %v1357_v31 = vld [vmem:[#allocation2 + $0xe8] sm:$0xff]  ;;  %v2712_v56 = vld [vmem:[#allocation2 + $0x50] sm:$0xff] }
 0x17c   : > { %7167 = vmatmul.mubr.msk.bf16.gmra.mrb[136].mxu0 %vm10120_vm12, %v5365_v12  ;;  %vm10121_vm7 = vmmov %vm10090_vm1  ;;  %v1818_v33 = vadd.f32 %v1775_v21, %v1356_v59  ;;  %v6935_v10 = vpop.f32.mrb[46].mxu1  ;;  %v2710_v21 = vld [vmem:[#allocation2 + $0x40] sm:$0xff] }
 0x17d   : > { %7170 = vmatprep.mubr.msk.bf16.mxu0 %vm10121_vm7, %v5367_v49  ;;  %vm10122_vm2 = vmmov %vm10117_vm0  ;;  %v2233_v7 = vld [vmem:[#allocation2 + $0xb0] sm:$0xff]  ;;  %v1821_v38 = vadd.f32 %v6935_v10, %v1359_v27  ;;  %v1778_v13 = vpop.f32.mrb[47].mxu1 }
 0x17e   : > { %2624 = vst.msk [vmem:[#allocation2 + $0x90] sm:$0xff] %vm10122_vm2, %v2592_v61  ;;  %vm10123_vm1 = vmmov %vm10117_vm0  ;;  %v2231_v58 = vld [vmem:[#allocation2 + $0xa0] sm:$0xff]  ;;  %v2596_v9 = vadd.f32 %v6960_v22, %v2233_v7  ;;  %v1819_v16 = vadd.f32 %v1778_v13, %v1357_v31  ;;  %v6974_v35 = vpop.f32.mrb[48].mxu1  ;;  %v2703_v61 = vld [vmem:[#allocation2 + $0x8] sm:$0xff] }
 0x17f   : > { %2622 = vst.msk [vmem:[#allocation2 + $0x80] sm:$0xff] %vm10123_vm1, %v2590_v25  ;;  %vm10124_vm4 = vmmov %vm10117_vm0  ;;  %v2594_v17 = vadd.f32 %v2527_v53, %v2231_v58  ;;  %v3030_v8 = vadd.f32 %v6974_v35, %v2704_v48  ;;  %v2901_v43 = vpop.f32.mrb[49].mxu1  ;;  %v2707_v22 = vld [vmem:[#allocation2 + $0x28] sm:$0xff]  ;;  %v2713_v31 = vld [vmem:[#allocation2 + $0x58] sm:$0xff] }
 0x180   : > { %1848 = vst.msk [vmem:[#allocation2 + $0xd0] sm:$0xff] %vm10124_vm4, %v1816_v60  ;;  %vm10125_vm10 = vmmov %vm10117_vm0  ;;  %v2234_v30 = vld [vmem:[#allocation2 + $0xb8] sm:$0xff]  ;;  %v3028_v34 = vadd.f32 %v2901_v43, %v2702_v45  ;;  %v6975_v6 = vpop.f32.mrb[50].mxu1  ;;  %v2708_v60 = vld [vmem:[#allocation2 + $0x30] sm:$0xff] }
 0x181   : > { %2625 = vst.msk [vmem:[#allocation2 + $0x98] sm:$0xff] %vm10125_vm10, %v2593_v1  ;;  %vm10126_vm13 = vmmov %vm10117_vm0  ;;  %v2232_v42 = vld [vmem:[#allocation2 + $0xa8] sm:$0xff]  ;;  %v2597_v62 = vadd.f32 %v6961_v50, %v2234_v30  ;;  %v3031_v44 = vadd.f32 %v6975_v6, %v2705_v55  ;;  %v2904_v28 = vpop.f32.mrb[51].mxu1 }
 0x182   : > { %1846 = vst.msk [vmem:[#allocation2 + $0xc0] sm:$0xff] %vm10126_vm13, %v1814_v19  ;;  %vm10127_vm5 = vmmov %vm10117_vm0  ;;  %v2595_v4 = vadd.f32 %v2530_v57, %v2232_v42  ;;  %v3029_v32 = vadd.f32 %v2904_v28, %v2703_v61  ;;  %v6978_v26 = vpop.f32.mrb[52].mxu1  ;;  %v2706_v19 = vld [vmem:[#allocation2 + $0x20] sm:$0xff]  ;;  %v2711_v48 = vld [vmem:[#allocation2 + $0x48] sm:$0xff] }
 0x183   : > { %2623 = vst.msk [vmem:[#allocation2 + $0x88] sm:$0xff] %vm10127_vm5, %v2591_v2  ;;  %vm10128_vm9 = vmmov %vm10119_vm6  ;;  %v3034_v23 = vadd.f32 %v6978_v26, %v2708_v60  ;;  %v2917_v40 = vpop.f32.mrb[53].mxu1  ;;  %v2715_v60 = vld [vmem:[#allocation2 + $0x68] sm:$0xff] }
 0x184   : > { %v5369_v39 = vsel %vm10128_vm9, %v5366_v36, %v5368_v52  ;;  %vm10129_vm3 = vmmov %vm10117_vm0  ;;  %2626 = vst.msk [vmem:[#allocation2 + $0xa0] sm:$0xff] %vm10117_vm0, %v2594_v17  ;;  %v6964_v36 = vpop.f32.mrb[40].mxu0  ;;  %v3032_v46 = vadd.f32 %v2917_v40, %v2706_v19 }
 0x185   : > { %1849 = vst.msk [vmem:[#allocation2 + $0xd8] sm:$0xff] %vm10129_vm3, %v1817_v54  ;;  %vm10130_vm8 = vmmov %vm10117_vm0  ;;  %v2543_v0 = vpop.f32.mrb[41].mxu0 }
 0x186   : > { %1847 = vst.msk [vmem:[#allocation2 + $0xc8] sm:$0xff] %vm10130_vm8, %v1815_v51  ;;  %vm10131_vm15 = vmmov %vm10121_vm7  ;;  %v6965_v15 = vpop.f32.mrb[42].mxu0  ;;  %v6979_v51 = vpop.f32.mrb[54].mxu1 }
 0x187   : > { %7171 = vmatmul.mubr.msk.bf16.gmra.mrb[140].mxu0 %vm10131_vm15, %v5369_v39  ;;  %vm10132_vm11 = vmmov %vm10117_vm0  ;;  %v2237_v3 = vld [vmem:[#allocation2 + $0xd0] sm:$0xff]  ;;  %v2546_v20 = vpop.f32.mrb[43].mxu0  ;;  %v3035_v58 = vadd.f32 %v6979_v51, %v2709_v29  ;;  %v2920_v30 = vpop.f32.mrb[55].mxu1 }
 0x188   : > { %2628 = vst.msk [vmem:[#allocation2 + $0xb0] sm:$0xff] %vm10132_vm11, %v2596_v9  ;;  %vm10133_vm14 = vmmov %vm10117_vm0  ;;  %v2600_v24 = vadd.f32 %v6964_v36, %v2237_v3  ;;  %v6968_v47 = vpop.f32.mrb[44].mxu0  ;;  %v3033_v42 = vadd.f32 %v2920_v30, %v2707_v22 }
 0x189   : > { %2629 = vst.msk [vmem:[#allocation2 + $0xb8] sm:$0xff] %vm10133_vm14, %v2597_v62  ;;  %vm10134_vm6 = vmmov %vm10117_vm0  ;;  %v2235_v14 = vld [vmem:[#allocation2 + $0xc0] sm:$0xff]  ;;  %v2559_v2 = vpop.f32.mrb[45].mxu0  ;;  %v6982_v62 = vpop.f32.mrb[56].mxu1 }
 0x18a   : > { %1852 = vst.msk [vmem:[#allocation2 + $0xf0] sm:$0xff] %vm10134_vm6, %v1820_v5  ;;  %vm10135_vm12 = vmmov %vm10117_vm0  ;;  %v2598_v49 = vadd.f32 %v2543_v0, %v2235_v14  ;;  %v6969_v7 = vpop.f32.mrb[46].mxu0  ;;  %v3038_v59 = vadd.f32 %v6982_v62, %v2712_v56  ;;  %v2716_v0 = vld [vmem:[#allocation2 + $0x70] sm:$0xff]  ;;  %v2719_v62 = vld [vmem:[#allocation2 + $0x88] sm:$0xff] }
 0x18b   : > { %2627 = vst.msk [vmem:[#allocation2 + $0xa8] sm:$0xff] %vm10135_vm12, %v2595_v4  ;;  %vm10136_vm7 = vmmov %vm10117_vm0  ;;  %v2562_v53 = vpop.f32.mrb[47].mxu0  ;;  %v2933_v4 = vpop.f32.mrb[57].mxu1 }
 0x18c   : > { %1850 = vst.msk [vmem:[#allocation2 + $0xe0] sm:$0xff] %vm10136_vm7, %v1818_v33  ;;  %vm10137_vm2 = vmmov %vm10117_vm0  ;;  %v2238_v63 = vld [vmem:[#allocation2 + $0xd8] sm:$0xff]  ;;  %v7008_v57 = vpop.f32.mrb[48].mxu0  ;;  %v6983_v13 = vpop.f32.mrb[58].mxu1 }
 0x18d   : > { %1853 = vst.msk [vmem:[#allocation2 + $0xf8] sm:$0xff] %vm10137_vm2, %v1821_v38  ;;  %vm10138_vm1 = vmmov %vm10117_vm0  ;;  %v2236_v12 = vld [vmem:[#allocation2 + $0xc8] sm:$0xff]  ;;  %v2601_v37 = vadd.f32 %v6965_v15, %v2238_v63  ;;  %v3459_v27 = vpop.f32.mrb[49].mxu0  ;;  %v3036_v38 = vadd.f32 %v2933_v4, %v2710_v21  ;;  %v3039_v14 = vadd.f32 %v6983_v13, %v2713_v31  ;;  %v2936_v35 = vpop.f32.mrb[59].mxu1 }
 0x18e   : > { %1851 = vst.msk [vmem:[#allocation2 + $0xe8] sm:$0xff] %vm10138_vm1, %v1819_v16  ;;  %vm10139_vm4 = vmmov %vm10117_vm0  ;;  %v2599_v25 = vadd.f32 %v2546_v20, %v2236_v12  ;;  %v7009_v3 = vpop.f32.mrb[50].mxu0  ;;  %v6986_v12 = vpop.f32.mrb[60].mxu1  ;;  %v2717_v20 = vld [vmem:[#allocation2 + $0x78] sm:$0xff] }
 0x18f   : > { %3062 = vst.msk [vmem:[#allocation2 + $0x10] sm:$0xff] %vm10139_vm4, %v3030_v8  ;;  %vm10140_vm10 = vmmov %vm10117_vm0  ;;  %v3462_v63 = vpop.f32.mrb[51].mxu0  ;;  %v3037_v8 = vadd.f32 %v2936_v35, %v2711_v48  ;;  %v3042_v6 = vadd.f32 %v6986_v12, %v2716_v0  ;;  %v2949_v15 = vpop.f32.mrb[61].mxu1 }
 0x190   : > { %2632 = vst.msk [vmem:[#allocation2 + $0xd0] sm:$0xff] %vm10140_vm10, %v2600_v24  ;;  %vm10141_vm13 = vmmov %vm10117_vm0 }
 0x191   : > { %3060 = vst.msk [vmem:[#allocation2] sm:$0xff] %vm10141_vm13, %v3028_v34  ;;  %vm10142_vm5 = vmmov %vm10117_vm0  ;;  %v2241_v11 = vld [vmem:[#allocation2 + $0xf0] sm:$0xff]  ;;  %v7012_v34 = vpop.f32.mrb[52].mxu0 }
 0x192   : > { %2630 = vst.msk [vmem:[#allocation2 + $0xc0] sm:$0xff] %vm10142_vm5, %v2598_v49  ;;  %vm10143_vm9 = vmmov %vm10117_vm0  ;;  %v2604_v18 = vadd.f32 %v6968_v47, %v2241_v11  ;;  %v2714_v49 = vld [vmem:[#allocation2 + $0x60] sm:$0xff]  ;;  %v3475_v61 = vpop.f32.mrb[53].mxu0  ;;  %v2723_v12 = vld [vmem:[#allocation2 + $0xa8] sm:$0xff] }
 0x193   : > { %3063 = vst.msk [vmem:[#allocation2 + $0x18] sm:$0xff] %vm10143_vm9, %v3031_v44  ;;  %vm10144_vm3 = vmmov %vm10117_vm0  ;;  %v2239_v52 = vld [vmem:[#allocation2 + $0xe0] sm:$0xff]  ;;  %v7013_v11 = vpop.f32.mrb[54].mxu0 }
 0x194   : > { %2633 = vst.msk [vmem:[#allocation2 + $0xd8] sm:$0xff] %vm10144_vm3, %v2601_v37  ;;  %vm10145_vm8 = vmmov %vm10117_vm0  ;;  %v2242_v1 = vld [vmem:[#allocation2 + $0xf8] sm:$0xff]  ;;  %v2602_v39 = vadd.f32 %v2559_v2, %v2239_v52  ;;  %v3040_v37 = vadd.f32 %v2949_v15, %v2714_v49  ;;  %v2720_v2 = vld [vmem:[#allocation2 + $0x90] sm:$0xff] }
 0x195   : > { %3061 = vst.msk [vmem:[#allocation2 + $0x8] sm:$0xff] %vm10145_vm8, %v3029_v32  ;;  %vm10146_vm15 = vmmov %vm10117_vm0  ;;  %v2240_v54 = vld [vmem:[#allocation2 + $0xe8] sm:$0xff]  ;;  %v2605_v9 = vadd.f32 %v6969_v7, %v2242_v1  ;;  %v6987_v32 = vpop.f32.mrb[62].mxu1  ;;  %v3478_v1 = vpop.f32.mrb[55].mxu0 }
 0x196   : > { %2631 = vst.msk [vmem:[#allocation2 + $0xc8] sm:$0xff] %vm10146_vm15, %v2599_v25  ;;  %vm10147_vm11 = vmmov %vm10117_vm0  ;;  %v2603_v17 = vadd.f32 %v2562_v53, %v2240_v54  ;;  %v3127_v50 = vld [vmem:[#allocation2 + $0x10] sm:$0xff]  ;;  %v3043_v52 = vadd.f32 %v6987_v32, %v2717_v20  ;;  %v2952_v26 = vpop.f32.mrb[63].mxu1  ;;  %v2721_v53 = vld [vmem:[#allocation2 + $0x98] sm:$0xff] }
 0x197   : > { %3066 = vst.msk [vmem:[#allocation2 + $0x30] sm:$0xff] %vm10147_vm11, %v3034_v23  ;;  %vm10148_vm14 = vmmov %vm10117_vm0  ;;  %v3588_v33 = vadd.f32 %v7008_v57, %v3127_v50  ;;  %v3041_v23 = vadd.f32 %v2952_v26, %v2715_v60  ;;  %v6990_v54 = vpop.f32.mrb[64].mxu1 }
 0x198   : > { %2636 = vst.msk [vmem:[#allocation2 + $0xf0] sm:$0xff] %vm10117_vm0, %v2604_v18  ;;  %vm10149_vm6 = vmmov %vm10117_vm0  ;;  %v3125_v41 = vld [vmem:[#allocation2] sm:$0xff]  ;;  %v3046_v51 = vadd.f32 %v6990_v54, %v2720_v2  ;;  %v2965_v7 = vpop.f32.mrb[65].mxu1 }
 0x199   : > { %3064 = vst.msk [vmem:[#allocation2 + $0x20] sm:$0xff] %vm10148_vm14, %v3032_v46  ;;  %vm10150_vm12 = vmmov %vm10117_vm0  ;;  %v3586_v16 = vadd.f32 %v3459_v27, %v3125_v41  ;;  %v7016_v46 = vpop.f32.mrb[56].mxu0 }
 0x19a   : > { %2634 = vst.msk [vmem:[#allocation2 + $0xe0] sm:$0xff] %vm10149_vm6, %v2602_v39  ;;  %vm10151_vm7 = vmmov %vm10117_vm0  ;;  %v3128_v5 = vld [vmem:[#allocation2 + $0x18] sm:$0xff]  ;;  %v2718_v39 = vld [vmem:[#allocation2 + $0x80] sm:$0xff]  ;;  %v3491_v22 = vpop.f32.mrb[57].mxu0 }
 0x19b   : > { %3067 = vst.msk [vmem:[#allocation2 + $0x38] sm:$0xff] %vm10150_vm12, %v3035_v58  ;;  %vm10152_vm2 = vmmov %vm10117_vm0  ;;  %v3589_v36 = vadd.f32 %v7009_v3, %v3128_v5  ;;  %v7017_v41 = vpop.f32.mrb[58].mxu0  ;;  %v2722_v3 = vld [vmem:[#allocation2 + $0xa0] sm:$0xff] }
 0x19c   : > { %2637 = vst.msk [vmem:[#allocation2 + $0xf8] sm:$0xff] %vm10151_vm7, %v2605_v9  ;;  %vm10153_vm1 = vmmov %vm10117_vm0  ;;  %v3126_v10 = vld [vmem:[#allocation2 + $0x8] sm:$0xff]  ;;  %v3044_v9 = vadd.f32 %v2965_v7, %v2718_v39 }
 0x19d   : > { %3065 = vst.msk [vmem:[#allocation2 + $0x28] sm:$0xff] %vm10152_vm2, %v3033_v42  ;;  %vm10154_vm4 = vmmov %vm10117_vm0  ;;  %v3587_v45 = vadd.f32 %v3462_v63, %v3126_v10  ;;  %v6991_v42 = vpop.f32.mrb[66].mxu1  ;;  %v2724_v10 = vld [vmem:[#allocation2 + $0xb0] sm:$0xff]  ;;  %v2727_v54 = vld [vmem:[#allocation2 + $0xc8] sm:$0xff] }
 0x19e   : > { %2635 = vst.msk [vmem:[#allocation2 + $0xe8] sm:$0xff] %vm10153_vm1, %v2603_v17  ;;  %vm10155_vm10 = vmmov %vm10117_vm0  ;;  %v3131_v43 = vld [vmem:[#allocation2 + $0x30] sm:$0xff]  ;;  %v10169_v17 = vmov 0   ;;  %v3047_v56 = vadd.f32 %v6991_v42, %v2721_v53  ;;  %v2968_v57 = vpop.f32.mrb[67].mxu1 }
 0x19f   : > { %3070 = vst.msk [vmem:[#allocation2 + $0x50] sm:$0xff] %vm10154_vm4, %v3038_v59  ;;  %vm10156_vm13 = vmmov %vm10117_vm0  ;;  %v3592_v44 = vadd.f32 %v7012_v34, %v3131_v43  ;;  %vm5720_vm4 = vcmask 125952   ;;  %v3494_v59 = vpop.f32.mrb[59].mxu0  ;;  %v3045_v21 = vadd.f32 %v2968_v57, %v2719_v62 }
 0x1a0   : > { %3620 = vst.msk [vmem:[#allocation2 + $0x10] sm:$0xff] %vm10155_vm10, %v3588_v33  ;;  %vm10157_vm5 = vmmov %vm10117_vm0  ;;  %v3129_v24 = vld [vmem:[#allocation2 + $0x20] sm:$0xff]  ;;  %v7020_v31 = vpop.f32.mrb[60].mxu0 }
 0x1a1   : > { %3068 = vst.msk [vmem:[#allocation2 + $0x40] sm:$0xff] %vm10156_vm13, %v3036_v38  ;;  %vm10158_vm9 = vmmov %vm10117_vm0  ;;  %v3590_v25 = vadd.f32 %v3475_v61, %v3129_v24  ;;  %v6994_v38 = vpop.f32.mrb[68].mxu1  ;;  %v3507_v35 = vpop.f32.mrb[61].mxu0 }
 0x1a2   : > { %3618 = vst.msk [vmem:[#allocation2] sm:$0xff] %vm10157_vm5, %v3586_v16  ;;  %vm10159_vm3 = vmmov %vm10117_vm0  ;;  %v3132_v55 = vld [vmem:[#allocation2 + $0x38] sm:$0xff]  ;;  %v3050_v16 = vadd.f32 %v6994_v38, %v2724_v10  ;;  %v7021_v24 = vpop.f32.mrb[62].mxu0 }
 0x1a3   : > { %3071 = vst.msk [vmem:[#allocation2 + $0x58] sm:$0xff] %vm10158_vm9, %v3039_v14  ;;  %vm10160_vm8 = vmmov %vm10117_vm0  ;;  %v3593_v47 = vadd.f32 %v7013_v11, %v3132_v55  ;;  %v2981_v14 = vpop.f32.mrb[69].mxu1  ;;  %v2726_v11 = vld [vmem:[#allocation2 + $0xc0] sm:$0xff] }
 0x1a4   : > { %3621 = vst.msk [vmem:[#allocation2 + $0x18] sm:$0xff] %vm10159_vm3, %v3589_v36  ;;  %vm10161_vm15 = vmmov %vm10117_vm0  ;;  %v3130_v28 = vld [vmem:[#allocation2 + $0x28] sm:$0xff]  ;;  %v3048_v63 = vadd.f32 %v2981_v14, %v2722_v3 }
 0x1a5   : > { %3069 = vst.msk [vmem:[#allocation2 + $0x48] sm:$0xff] %vm10160_vm8, %v3037_v8  ;;  %vm10162_vm11 = vmmov %vm10117_vm0  ;;  %v3591_v19 = vadd.f32 %v3478_v1, %v3130_v28  ;;  %v2725_v8 = vld [vmem:[#allocation2 + $0xb8] sm:$0xff]  ;;  %v2728_v28 = vld [vmem:[#allocation2 + $0xd0] sm:$0xff] }
 0x1a6   : > { %3619 = vst.msk [vmem:[#allocation2 + $0x8] sm:$0xff] %vm10161_vm15, %v3587_v45  ;;  %vm10163_vm14 = vmmov %vm10117_vm0  ;;  %v3135_v40 = vld [vmem:[#allocation2 + $0x50] sm:$0xff]  ;;  %v6995_v45 = vpop.f32.mrb[70].mxu1  ;;  %v2731_v38 = vld [vmem:[#allocation2 + $0xe8] sm:$0xff] }
 0x1a7   : > { %3074 = vst.msk [vmem:[#allocation2 + $0x70] sm:$0xff] %vm10162_vm11, %v3042_v6  ;;  %vm10164_vm6 = vmmov %vm10117_vm0  ;;  %v3596_v58 = vadd.f32 %v7016_v46, %v3135_v40  ;;  %v3051_v0 = vadd.f32 %v6995_v45, %v2725_v8  ;;  %v2984_v34 = vpop.f32.mrb[71].mxu1  ;;  %v3510_v6 = vpop.f32.mrb[63].mxu0 }
 0x1a8   : > { %3624 = vst.msk [vmem:[#allocation2 + $0x30] sm:$0xff] %vm10117_vm0, %v3592_v44  ;;  %vm10165_vm12 = vmmov %vm10117_vm0  ;;  %v3133_v18 = vld [vmem:[#allocation2 + $0x40] sm:$0xff]  ;;  %v3049_v49 = vadd.f32 %v2984_v34, %v2723_v12  ;;  %v7024_v20 = vpop.f32.mrb[64].mxu0 }
 0x1a9   : > { %3072 = vst.msk [vmem:[#allocation2 + $0x60] sm:$0xff] %vm10163_vm14, %v3040_v37  ;;  %vm10166_vm7 = vmmov %vm10117_vm0  ;;  %v3594_v50 = vadd.f32 %v3491_v22, %v3133_v18  ;;  %v6998_v37 = vpop.f32.mrb[72].mxu1  ;;  %v3523_v26 = vpop.f32.mrb[65].mxu0 }
 0x1aa   : > { %3622 = vst.msk [vmem:[#allocation2 + $0x20] sm:$0xff] %vm10164_vm6, %v3590_v25  ;;  %vm10167_vm2 = vmmov %vm10117_vm0  ;;  %v3136_v29 = vld [vmem:[#allocation2 + $0x58] sm:$0xff]  ;;  %v3054_v25 = vadd.f32 %v6998_v37, %v2728_v28  ;;  %v7025_v18 = vpop.f32.mrb[66].mxu0 }
 0x1ab   : > { %3075 = vst.msk [vmem:[#allocation2 + $0x78] sm:$0xff] %vm10165_vm12, %v3043_v52  ;;  %vm10168_vm1 = vmmov %vm10117_vm0  ;;  %v3597_v5 = vadd.f32 %v7017_v41, %v3136_v29  ;;  %v2997_v52 = vpop.f32.mrb[73].mxu1  ;;  %v2730_v41 = vld [vmem:[#allocation2 + $0xe0] sm:$0xff] }
 0x1ac   : > { %3625 = vst.msk [vmem:[#allocation2 + $0x38] sm:$0xff] %vm10166_vm7, %v3593_v47  ;;  %v3134_v30 = vld [vmem:[#allocation2 + $0x48] sm:$0xff]  ;;  %vm10170_vm10 = vmmov %vm10117_vm0  ;;  %v3052_v1 = vadd.f32 %v2997_v52, %v2726_v11 }
 0x1ad   : > { %3073 = vst.msk [vmem:[#allocation2 + $0x68] sm:$0xff] %vm10167_vm2, %v3041_v23  ;;  %vm10171_vm13 = vmmov %vm10117_vm0  ;;  %v3595_v4 = vadd.f32 %v3494_v59, %v3134_v30  ;;  %v2729_v23 = vld [vmem:[#allocation2 + $0xd8] sm:$0xff]  ;;  %v2732_v30 = vld [vmem:[#allocation2 + $0xf0] sm:$0xff] }
 0x1ae   : > { %3623 = vst.msk [vmem:[#allocation2 + $0x28] sm:$0xff] %vm10168_vm1, %v3591_v19  ;;  %vm10172_vm5 = vmmov %vm10117_vm0  ;;  %v3139_v33 = vld [vmem:[#allocation2 + $0x70] sm:$0xff]  ;;  %v6999_v19 = vpop.f32.mrb[74].mxu1  ;;  %v3717_v37 = vld [vmem:[#allocation2 + $0x8] sm:$0xff] }
 0x1af   : > { %5723 = vst.msk [vmem:[%s8996_s17 + $0x8] sm:$0xf] %vm5720_vm4, %v10169_v17  ;;  %5721 = vst.msk [vmem:[%s8996_s17] sm:$0xf] %vm5720_vm4, %v10169_v17  ;;  %v3600_v48 = vadd.f32 %v7020_v31, %v3139_v33  ;;  %v3055_v2 = vadd.f32 %v6999_v19, %v2729_v23  ;;  %v3000_v46 = vpop.f32.mrb[75].mxu1 }
 0x1b0   : > { %5722 = vst.msk [vmem:[%s8996_s17 + $0x4] sm:$0xf] %vm5720_vm4, %v10169_v17  ;;  %5724 = vst.msk [vmem:[%s8996_s17 + $0xc] sm:$0xf] %vm5720_vm4, %v10169_v17  ;;  %v3137_v27 = vld [vmem:[#allocation2 + $0x60] sm:$0xff]  ;;  %v3053_v39 = vadd.f32 %v3000_v46, %v2727_v54 }
 0x1b1   : > { %5725 = vst.msk [vmem:[%s8996_s17 + $0x10] sm:$0xf] %vm5720_vm4, %v10169_v17  ;;  %5726 = vst.msk [vmem:[%s8996_s17 + $0x14] sm:$0xf] %vm5720_vm4, %v10169_v17  ;;  %v3598_v43 = vadd.f32 %v3507_v35, %v3137_v27 }
 0x1b2   : > { %5727 = vst.msk [vmem:[%s8996_s17 + $0x18] sm:$0xf] %vm5720_vm4, %v10169_v17  ;;  %5728 = vst.msk [vmem:[%s8996_s17 + $0x1c] sm:$0xf] %vm5720_vm4, %v10169_v17  ;;  %v3140_v13 = vld [vmem:[#allocation2 + $0x78] sm:$0xff] }
 0x1b3   : > { %5729 = vst.msk [vmem:[%s8996_s17 + $0x20] sm:$0xf] %vm5720_vm4, %v10169_v17  ;;  %5730 = vst.msk [vmem:[%s8996_s17 + $0x24] sm:$0xf] %vm5720_vm4, %v10169_v17  ;;  %v3601_v55 = vadd.f32 %v7021_v24, %v3140_v13  ;;  %v3716_v24 = vld [vmem:[#allocation2] sm:$0xff] }
 0x1b4   : > { %5731 = vst.msk [vmem:[%s8996_s17 + $0x28] sm:$0xf] %vm5720_vm4, %v10169_v17  ;;  %5732 = vst.msk [vmem:[%s8996_s17 + $0x2c] sm:$0xf] %vm5720_vm4, %v10169_v17  ;;  %v3138_v36 = vld [vmem:[#allocation2 + $0x68] sm:$0xff] }
 0x1b5   : > { %5733 = vst.msk [vmem:[%s8996_s17 + $0x30] sm:$0xf] %vm5720_vm4, %v10169_v17  ;;  %5734 = vst.msk [vmem:[%s8996_s17 + $0x34] sm:$0xf] %vm5720_vm4, %v10169_v17  ;;  %v3599_v15 = vadd.f32 %v3510_v6, %v3138_v36  ;;  %v3718_v36 = vld [vmem:[#allocation2 + $0x10] sm:$0xff] }
 0x1b6   : > { %5735 = vst.msk [vmem:[%s8996_s17 + $0x38] sm:$0xf] %vm5720_vm4, %v10169_v17  ;;  %5736 = vst.msk [vmem:[%s8996_s17 + $0x3c] sm:$0xf] %vm5720_vm4, %v10169_v17 }
 0x1b7   : > { %5737 = vst.msk [vmem:[%s8996_s17 + $0x40] sm:$0xf] %vm5720_vm4, %v10169_v17  ;;  %5738 = vst.msk [vmem:[%s8996_s17 + $0x44] sm:$0xf] %vm5720_vm4, %v10169_v17 }
 0x1b8   : > { %5739 = vst.msk [vmem:[%s8996_s17 + $0x48] sm:$0xf] %vm5720_vm4, %v10169_v17  ;;  %5740 = vst.msk [vmem:[%s8996_s17 + $0x4c] sm:$0xf] %vm5720_vm4, %v10169_v17 }
 0x1b9   : > { %5741 = vst.msk [vmem:[%s8996_s17 + $0x50] sm:$0xf] %vm5720_vm4, %v10169_v17  ;;  %5742 = vst.msk [vmem:[%s8996_s17 + $0x54] sm:$0xf] %vm5720_vm4, %v10169_v17 }
 0x1ba   : > { %5743 = vst.msk [vmem:[%s8996_s17 + $0x58] sm:$0xf] %vm5720_vm4, %v10169_v17  ;;  %5744 = vst.msk [vmem:[%s8996_s17 + $0x5c] sm:$0xf] %vm5720_vm4, %v10169_v17 }
 0x1bb   : > { %5745 = vst.msk [vmem:[%s8996_s17 + $0x60] sm:$0xf] %vm5720_vm4, %v10169_v17  ;;  %5746 = vst.msk [vmem:[%s8996_s17 + $0x64] sm:$0xf] %vm5720_vm4, %v10169_v17 }
 0x1bc   : > { %5747 = vst.msk [vmem:[%s8996_s17 + $0x68] sm:$0xf] %vm5720_vm4, %v10169_v17  ;;  %5748 = vst.msk [vmem:[%s8996_s17 + $0x6c] sm:$0xf] %vm5720_vm4, %v10169_v17 }
 0x1bd   : > { %5749 = vst.msk [vmem:[%s8996_s17 + $0x70] sm:$0xf] %vm5720_vm4, %v10169_v17  ;;  %5750 = vst.msk [vmem:[%s8996_s17 + $0x74] sm:$0xf] %vm5720_vm4, %v10169_v17 }
 0x1be   : > { %5751 = vst.msk [vmem:[%s8996_s17 + $0x78] sm:$0xf] %vm5720_vm4, %v10169_v17  ;;  %5752 = vst.msk [vmem:[%s8996_s17 + $0x7c] sm:$0xf] %vm5720_vm4, %v10169_v17 }
 0x1bf   : > { %5753 = vst.msk [vmem:[%s8996_s17 + $0x80] sm:$0xf] %vm5720_vm4, %v10169_v17  ;;  %5754 = vst.msk [vmem:[%s8996_s17 + $0x84] sm:$0xf] %vm5720_vm4, %v10169_v17 }
 0x1c0   : > { %5755 = vst.msk [vmem:[%s8996_s17 + $0x88] sm:$0xf] %vm5720_vm4, %v10169_v17  ;;  %5756 = vst.msk [vmem:[%s8996_s17 + $0x8c] sm:$0xf] %vm5720_vm4, %v10169_v17 }
 0x1c1   : > { %3078 = vst.msk [vmem:[#allocation2 + $0x90] sm:$0xff] %vm10170_vm10, %v3046_v51  ;;  %vm10173_vm9 = vmmov %vm10117_vm0  ;;  %v3526_v51 = vpop.f32.mrb[67].mxu0 }
 0x1c2   : > { %3628 = vst.msk [vmem:[#allocation2 + $0x50] sm:$0xff] %vm10171_vm13, %v3596_v58  ;;  %vm10174_vm3 = vmmov %vm10117_vm0  ;;  %v7028_v53 = vpop.f32.mrb[68].mxu0 }
 0x1c3   : > { %3076 = vst.msk [vmem:[#allocation2 + $0x80] sm:$0xff] %vm10172_vm5, %v3044_v9  ;;  %vm10175_vm8 = vmmov %vm10117_vm0  ;;  %v7002_v9 = vpop.f32.mrb[76].mxu1  ;;  %v3539_v57 = vpop.f32.mrb[69].mxu0 }
 0x1c4   : > { %3626 = vst.msk [vmem:[#allocation2 + $0x40] sm:$0xff] %vm10173_vm9, %v3594_v50  ;;  %vm10176_vm15 = vmmov %vm10117_vm0  ;;  %v3058_v50 = vadd.f32 %v7002_v9, %v2732_v30  ;;  %v7029_v27 = vpop.f32.mrb[70].mxu0  ;;  %v3721_v9 = vld [vmem:[#allocation2 + $0x28] sm:$0xff] }
 0x1c5   : > { %3079 = vst.msk [vmem:[#allocation2 + $0x98] sm:$0xff] %vm10174_vm3, %v3047_v56  ;;  %vm10177_vm11 = vmmov %vm10117_vm0  ;;  %v3013_v56 = vpop.f32.mrb[77].mxu1 }
 0x1c6   : > { %3629 = vst.msk [vmem:[#allocation2 + $0x58] sm:$0xff] %vm10175_vm8, %v3597_v5  ;;  %vm10178_vm14 = vmmov %vm10117_vm0  ;;  %v3056_v59 = vadd.f32 %v3013_v56, %v2730_v41 }
 0x1c7   : > { %3077 = vst.msk [vmem:[#allocation2 + $0x88] sm:$0xff] %vm10176_vm15, %v3045_v21  ;;  %vm10179_vm6 = vmmov %vm10117_vm0  ;;  %v2733_v21 = vld [vmem:[#allocation2 + $0xf8] sm:$0xff] }
 0x1c8   : > { %3627 = vst.msk [vmem:[#allocation2 + $0x48] sm:$0xff] %vm10177_vm11, %v3595_v4  ;;  %vm10180_vm12 = vmmov %vm10117_vm0  ;;  %v3143_v44 = vld [vmem:[#allocation2 + $0x90] sm:$0xff]  ;;  %v7003_v4 = vpop.f32.mrb[78].mxu1 }
 0x1c9   : > { %3082 = vst.msk [vmem:[#allocation2 + $0xb0] sm:$0xff] %vm10117_vm0, %v3050_v16  ;;  %vm10181_vm7 = vmmov %vm10117_vm0  ;;  %v3604_v60 = vadd.f32 %v7024_v20, %v3143_v44  ;;  %v3059_v10 = vadd.f32 %v7003_v4, %v2733_v21  ;;  %v3016_v31 = vpop.f32.mrb[79].mxu1  ;;  %v3542_v16 = vpop.f32.mrb[71].mxu0 }
 0x1ca   : > { %3632 = vst.msk [vmem:[#allocation2 + $0x70] sm:$0xff] %vm10178_vm14, %v3600_v48  ;;  %vm10182_vm2 = vmmov %vm10117_vm0  ;;  %v3141_v61 = vld [vmem:[#allocation2 + $0x80] sm:$0xff]  ;;  %v3057_v3 = vadd.f32 %v3016_v31, %v2731_v38  ;;  %v7032_v8 = vpop.f32.mrb[72].mxu0 }
 0x1cb   : > { %3080 = vst.msk [vmem:[#allocation2 + $0xa0] sm:$0xff] %vm10179_vm6, %v3048_v63  ;;  %vm10183_vm1 = vmmov %vm10117_vm0  ;;  %v3602_v40 = vadd.f32 %v3523_v26, %v3141_v61  ;;  %v7042_v63 = vpop.f32.mrb[80].mxu1  ;;  %v3555_v34 = vpop.f32.mrb[73].mxu0 }
 0x1cc   : > { %3630 = vst.msk [vmem:[#allocation2 + $0x60] sm:$0xff] %vm10180_vm12, %v3598_v43  ;;  %vm10184_vm10 = vmmov %vm10117_vm0  ;;  %v3144_v32 = vld [vmem:[#allocation2 + $0x98] sm:$0xff]  ;;  %v4080_v43 = vadd.f32 %v7042_v63, %v3718_v36  ;;  %v7033_v61 = vpop.f32.mrb[74].mxu0 }
 0x1cd   : > { %3083 = vst.msk [vmem:[#allocation2 + $0xb8] sm:$0xff] %vm10181_vm7, %v3051_v0  ;;  %vm10185_vm13 = vmmov %vm10117_vm0  ;;  %v3605_v29 = vadd.f32 %v7025_v18, %v3144_v32  ;;  %v3951_v0 = vpop.f32.mrb[81].mxu1  ;;  %v3720_v18 = vld [vmem:[#allocation2 + $0x20] sm:$0xff] }
 0x1ce   : > { %3633 = vst.msk [vmem:[#allocation2 + $0x78] sm:$0xff] %vm10182_vm2, %v3601_v55  ;;  %v3142_v47 = vld [vmem:[#allocation2 + $0x88] sm:$0xff]  ;;  %vm10186_vm5 = vmmov %vm10117_vm0  ;;  %v4078_v6 = vadd.f32 %v3951_v0, %v3716_v24 }
 0x1cf   : > { %3081 = vst.msk [vmem:[#allocation2 + $0xa8] sm:$0xff] %vm10183_vm1, %v3049_v49  ;;  %vm10187_vm9 = vmmov %vm10117_vm0  ;;  %v3603_v7 = vadd.f32 %v3526_v51, %v3142_v47  ;;  %v3719_v49 = vld [vmem:[#allocation2 + $0x18] sm:$0xff]  ;;  %v3722_v47 = vld [vmem:[#allocation2 + $0x30] sm:$0xff] }
 0x1d0   : > { %3631 = vst.msk [vmem:[#allocation2 + $0x68] sm:$0xff] %vm10184_vm10, %v3599_v15  ;;  %vm10188_vm3 = vmmov %vm10117_vm0  ;;  %v3147_v58 = vld [vmem:[#allocation2 + $0xb0] sm:$0xff]  ;;  %v7043_v15 = vpop.f32.mrb[82].mxu1  ;;  %v3725_v63 = vld [vmem:[#allocation2 + $0x48] sm:$0xff] }
 0x1d1   : > { %3086 = vst.msk [vmem:[#allocation2 + $0xd0] sm:$0xff] %vm10185_vm13, %v3054_v25  ;;  %vm10189_vm8 = vmmov %vm10117_vm0  ;;  %v3608_v62 = vadd.f32 %v7028_v53, %v3147_v58  ;;  %v4081_v28 = vadd.f32 %v7043_v15, %v3719_v49  ;;  %v3954_v20 = vpop.f32.mrb[83].mxu1  ;;  %v3558_v25 = vpop.f32.mrb[75].mxu0 }
 0x1d2   : > { %3636 = vst.msk [vmem:[#allocation2 + $0x90] sm:$0xff] %vm10186_vm5, %v3604_v60  ;;  %vm10190_vm15 = vmmov %vm10117_vm0  ;;  %v3145_v22 = vld [vmem:[#allocation2 + $0xa0] sm:$0xff]  ;;  %v4079_v11 = vadd.f32 %v3954_v20, %v3717_v37  ;;  %v7036_v23 = vpop.f32.mrb[76].mxu0 }
 0x1d3   : > { %3084 = vst.msk [vmem:[#allocation2 + $0xc0] sm:$0xff] %vm10187_vm9, %v3052_v1  ;;  %vm10191_vm11 = vmmov %vm10117_vm0  ;;  %v3606_v33 = vadd.f32 %v3539_v57, %v3145_v22  ;;  %v7046_v1 = vpop.f32.mrb[84].mxu1  ;;  %v3571_v46 = vpop.f32.mrb[77].mxu0 }
 0x1d4   : > { %3634 = vst.msk [vmem:[#allocation2 + $0x80] sm:$0xff] %vm10188_vm3, %v3602_v40  ;;  %v3148_v42 = vld [vmem:[#allocation2 + $0xb8] sm:$0xff]  ;;  %vm10192_vm14 = vmmov %vm10117_vm0  ;;  %v4084_v40 = vadd.f32 %v7046_v1, %v3722_v47  ;;  %v7037_v22 = vpop.f32.mrb[78].mxu0 }
 0x1d5   : > { %3087 = vst.msk [vmem:[#allocation2 + $0xd8] sm:$0xff] %vm10189_vm8, %v3055_v2  ;;  %vm10193_vm6 = vmmov %vm10117_vm0  ;;  %v3609_v13 = vadd.f32 %v7029_v27, %v3148_v42  ;;  %v3967_v2 = vpop.f32.mrb[85].mxu1  ;;  %v3724_v27 = vld [vmem:[#allocation2 + $0x40] sm:$0xff] }
 0x1d6   : > { %3637 = vst.msk [vmem:[#allocation2 + $0x98] sm:$0xff] %vm10190_vm15, %v3605_v29  ;;  %v3146_v5 = vld [vmem:[#allocation2 + $0xa8] sm:$0xff]  ;;  %vm10194_vm12 = vmmov %vm10117_vm0  ;;  %v4082_v51 = vadd.f32 %v3967_v2, %v3720_v18 }
 0x1d7   : > { %3085 = vst.msk [vmem:[#allocation2 + $0xc8] sm:$0xff] %vm10191_vm11, %v3053_v39  ;;  %vm10195_vm7 = vmmov %vm10117_vm0  ;;  %v3607_v14 = vadd.f32 %v3542_v16, %v3146_v5  ;;  %v3723_v39 = vld [vmem:[#allocation2 + $0x38] sm:$0xff]  ;;  %v3726_v5 = vld [vmem:[#allocation2 + $0x50] sm:$0xff] }
 0x1d8   : > { %3635 = vst.msk [vmem:[#allocation2 + $0x88] sm:$0xff] %vm10117_vm0, %v3603_v7  ;;  %vm10196_vm2 = vmmov %vm10117_vm0  ;;  %v3151_v48 = vld [vmem:[#allocation2 + $0xd0] sm:$0xff]  ;;  %v7047_v7 = vpop.f32.mrb[86].mxu1  ;;  %v3729_v1 = vld [vmem:[#allocation2 + $0x68] sm:$0xff] }
 0x1d9   : > { %3090 = vst.msk [vmem:[#allocation2 + $0xf0] sm:$0xff] %vm10192_vm14, %v3058_v50  ;;  %vm10197_vm1 = vmmov %vm10117_vm0  ;;  %v3612_v12 = vadd.f32 %v7032_v8, %v3151_v48  ;;  %v4085_v30 = vadd.f32 %v7047_v7, %v3723_v39  ;;  %v3970_v53 = vpop.f32.mrb[87].mxu1  ;;  %v3574_v50 = vpop.f32.mrb[79].mxu0 }
 0x1da   : > { %3640 = vst.msk [vmem:[#allocation2 + $0xb0] sm:$0xff] %vm10193_vm6, %v3608_v62  ;;  %vm10198_vm10 = vmmov %vm10117_vm0  ;;  %v3149_v35 = vld [vmem:[#allocation2 + $0xc0] sm:$0xff]  ;;  %v4083_v41 = vadd.f32 %v3970_v53, %v3721_v9  ;;  %v7076_v21 = vpop.f32.mrb[80].mxu0 }
 0x1db   : > { %3088 = vst.msk [vmem:[#allocation2 + $0xe0] sm:$0xff] %vm10194_vm12, %v3056_v59  ;;  %vm10199_vm13 = vmmov %vm10117_vm0  ;;  %v3610_v44 = vadd.f32 %v3555_v34, %v3149_v35  ;;  %v7050_v59 = vpop.f32.mrb[88].mxu1  ;;  %v4405_v31 = vpop.f32.mrb[81].mxu0 }
 0x1dc   : > { %3638 = vst.msk [vmem:[#allocation2 + $0xa0] sm:$0xff] %vm10195_vm7, %v3606_v33  ;;  %v3152_v45 = vld [vmem:[#allocation2 + $0xd8] sm:$0xff]  ;;  %vm10200_vm5 = vmmov %vm10117_vm0  ;;  %v4088_v33 = vadd.f32 %v7050_v59, %v3726_v5  ;;  %v7077_v35 = vpop.f32.mrb[82].mxu0 }
 0x1dd   : > { %3091 = vst.msk [vmem:[#allocation2 + $0xf8] sm:$0xff] %vm10196_vm2, %v3059_v10  ;;  %vm10201_vm9 = vmmov %vm10117_vm0  ;;  %v3613_v32 = vadd.f32 %v7033_v61, %v3152_v45  ;;  %v3983_v10 = vpop.f32.mrb[89].mxu1  ;;  %v3728_v61 = vld [vmem:[#allocation2 + $0x60] sm:$0xff] }
 0x1de   : > { %3641 = vst.msk [vmem:[#allocation2 + $0xb8] sm:$0xff] %vm10197_vm1, %v3609_v13  ;;  %v3150_v55 = vld [vmem:[#allocation2 + $0xc8] sm:$0xff]  ;;  %vm10202_vm3 = vmmov %vm10117_vm0  ;;  %v4086_v16 = vadd.f32 %v3983_v10, %v3724_v27 }
 0x1df   : > { %3089 = vst.msk [vmem:[#allocation2 + $0xe8] sm:$0xff] %vm10198_vm10, %v3057_v3  ;;  %vm10203_vm8 = vmmov %vm10117_vm0  ;;  %v3611_v52 = vadd.f32 %v3558_v25, %v3150_v55  ;;  %v3727_v3 = vld [vmem:[#allocation2 + $0x58] sm:$0xff]  ;;  %v3730_v55 = vld [vmem:[#allocation2 + $0x70] sm:$0xff] }
 0x1e0   : > { %3639 = vst.msk [vmem:[#allocation2 + $0xa8] sm:$0xff] %vm10199_vm13, %v3607_v14  ;;  %vm10204_vm15 = vmmov %vm10117_vm0  ;;  %v3155_v60 = vld [vmem:[#allocation2 + $0xf0] sm:$0xff]  ;;  %v7051_v14 = vpop.f32.mrb[90].mxu1  ;;  %v3733_v59 = vld [vmem:[#allocation2 + $0x88] sm:$0xff] }
 0x1e1   : > { %4112 = vst.msk [vmem:[#allocation2 + $0x10] sm:$0xff] %vm10200_vm5, %v4080_v43  ;;  %vm10205_vm11 = vmmov %vm10117_vm0  ;;  %v3616_v54 = vadd.f32 %v7036_v23, %v3155_v60  ;;  %v4089_v36 = vadd.f32 %v7051_v14, %v3727_v3  ;;  %v3986_v8 = vpop.f32.mrb[91].mxu1  ;;  %v4408_v43 = vpop.f32.mrb[83].mxu0 }
 0x1e2   : > { %3644 = vst.msk [vmem:[#allocation2 + $0xd0] sm:$0xff] %vm10201_vm9, %v3612_v12  ;;  %vm10206_vm14 = vmmov %vm10117_vm0  ;;  %v3153_v26 = vld [vmem:[#allocation2 + $0xe0] sm:$0xff]  ;;  %v4087_v24 = vadd.f32 %v3986_v8, %v3725_v63  ;;  %v7080_v49 = vpop.f32.mrb[84].mxu0 }
 0x1e3   : > { %4110 = vst.msk [vmem:[#allocation2] sm:$0xff] %vm10202_vm3, %v4078_v6  ;;  %v3614_v58 = vadd.f32 %v3571_v46, %v3153_v26  ;;  %vm10207_vm6 = vmmov %vm10117_vm0  ;;  %v7054_v6 = vpop.f32.mrb[92].mxu1  ;;  %v4421_v20 = vpop.f32.mrb[85].mxu0 }
 0x1e4   : > { %3642 = vst.msk [vmem:[#allocation2 + $0xc0] sm:$0xff] %vm10203_vm8, %v3610_v44  ;;  %v3156_v19 = vld [vmem:[#allocation2 + $0xf8] sm:$0xff]  ;;  %vm10208_vm12 = vmmov %vm10117_vm0  ;;  %v4092_v44 = vadd.f32 %v7054_v6, %v3730_v55  ;;  %v7081_v26 = vpop.f32.mrb[86].mxu0 }
 0x1e5   : > { %4113 = vst.msk [vmem:[#allocation2 + $0x18] sm:$0xff] %vm10204_vm15, %v4081_v28  ;;  %v3617_v42 = vadd.f32 %v7037_v22, %v3156_v19  ;;  %vm10209_vm7 = vmmov %vm10117_vm0  ;;  %v3999_v28 = vpop.f32.mrb[93].mxu1  ;;  %v3732_v22 = vld [vmem:[#allocation2 + $0x80] sm:$0xff] }
 0x1e6   : > { %3645 = vst.msk [vmem:[#allocation2 + $0xd8] sm:$0xff] %vm10205_vm11, %v3613_v32  ;;  %v3154_v29 = vld [vmem:[#allocation2 + $0xe8] sm:$0xff]  ;;  %vm10210_vm2 = vmmov %vm10117_vm0  ;;  %v4090_v25 = vadd.f32 %v3999_v28, %v3728_v61 }
 0x1e7   : > { %4111 = vst.msk [vmem:[#allocation2 + $0x8] sm:$0xff] %vm10117_vm0, %v4079_v11  ;;  %v3615_v56 = vadd.f32 %v3574_v50, %v3154_v29  ;;  %vm10211_vm1 = vmmov %vm10117_vm0  ;;  %v3731_v11 = vld [vmem:[#allocation2 + $0x78] sm:$0xff]  ;;  %v3734_v29 = vld [vmem:[#allocation2 + $0x90] sm:$0xff] }
 0x1e8   : > { %3643 = vst.msk [vmem:[#allocation2 + $0xc8] sm:$0xff] %vm10206_vm14, %v3611_v52  ;;  %vm10212_vm10 = vmmov %vm10117_vm0  ;;  %v4208_v62 = vld [vmem:[#allocation2 + $0x10] sm:$0xff]  ;;  %v7055_v52 = vpop.f32.mrb[94].mxu1  ;;  %v3737_v6 = vld [vmem:[#allocation2 + $0xa8] sm:$0xff] }
 0x1e9   : > { %4116 = vst.msk [vmem:[#allocation2 + $0x30] sm:$0xff] %vm10207_vm6, %v4084_v40  ;;  %vm10213_vm13 = vmmov %vm10117_vm0  ;;  %v4534_v38 = vadd.f32 %v7076_v21, %v4208_v62  ;;  %v4093_v47 = vadd.f32 %v7055_v52, %v3731_v11  ;;  %v4002_v23 = vpop.f32.mrb[95].mxu1  ;;  %v4424_v40 = vpop.f32.mrb[87].mxu0 }
 0x1ea   : > { %3648 = vst.msk [vmem:[#allocation2 + $0xf0] sm:$0xff] %vm10208_vm12, %v3616_v54  ;;  %vm10214_vm5 = vmmov %vm10117_vm0  ;;  %v4206_v57 = vld [vmem:[#allocation2] sm:$0xff]  ;;  %v4091_v18 = vadd.f32 %v4002_v23, %v3729_v1  ;;  %v7084_v39 = vpop.f32.mrb[88].mxu0 }
 0x1eb   : > { %4114 = vst.msk [vmem:[#allocation2 + $0x20] sm:$0xff] %vm10209_vm7, %v4082_v51  ;;  %v4532_v48 = vadd.f32 %v4405_v31, %v4206_v57  ;;  %vm10215_vm9 = vmmov %vm10117_vm0  ;;  %v7058_v51 = vpop.f32.mrb[96].mxu1  ;;  %v4437_v53 = vpop.f32.mrb[89].mxu0 }
 0x1ec   : > { %3646 = vst.msk [vmem:[#allocation2 + $0xe0] sm:$0xff] %vm10210_vm2, %v3614_v58  ;;  %v4209_v4 = vld [vmem:[#allocation2 + $0x18] sm:$0xff]  ;;  %vm10216_vm3 = vmmov %vm10117_vm0  ;;  %v4096_v58 = vadd.f32 %v7058_v51, %v3734_v29  ;;  %v7085_v57 = vpop.f32.mrb[90].mxu0 }
 0x1ed   : > { %4117 = vst.msk [vmem:[#allocation2 + $0x38] sm:$0xff] %vm10211_vm1, %v4085_v30  ;;  %v4535_v45 = vadd.f32 %v7077_v35, %v4209_v4  ;;  %vm10217_vm8 = vmmov %vm10117_vm0  ;;  %v4015_v30 = vpop.f32.mrb[97].mxu1  ;;  %v3736_v35 = vld [vmem:[#allocation2 + $0xa0] sm:$0xff] }
 0x1ee   : > { %3649 = vst.msk [vmem:[#allocation2 + $0xf8] sm:$0xff] %vm10212_vm10, %v3617_v42  ;;  %v4207_v13 = vld [vmem:[#allocation2 + $0x8] sm:$0xff]  ;;  %vm10218_vm15 = vmmov %vm10117_vm0  ;;  %v4094_v50 = vadd.f32 %v4015_v30, %v3732_v22 }
 0x1ef   : > { %4115 = vst.msk [vmem:[#allocation2 + $0x28] sm:$0xff] %vm10213_vm13, %v4083_v41  ;;  %v4533_v0 = vadd.f32 %v4408_v43, %v4207_v13  ;;  %vm10219_vm11 = vmmov %vm10117_vm0  ;;  %v3735_v41 = vld [vmem:[#allocation2 + $0x98] sm:$0xff]  ;;  %v3738_v13 = vld [vmem:[#allocation2 + $0xb0] sm:$0xff] }
 0x1f0   : > { %3647 = vst.msk [vmem:[#allocation2 + $0xe8] sm:$0xff] %vm10214_vm5, %v3615_v56  ;;  %vm10220_vm14 = vmmov %vm10117_vm0  ;;  %v4212_v12 = vld [vmem:[#allocation2 + $0x30] sm:$0xff]  ;;  %v7059_v56 = vpop.f32.mrb[98].mxu1  ;;  %v3741_v51 = vld [vmem:[#allocation2 + $0xc8] sm:$0xff] }
 0x1f1   : > { %4120 = vst.msk [vmem:[#allocation2 + $0x50] sm:$0xff] %vm10215_vm9, %v4088_v33  ;;  %vm10221_vm6 = vmmov %vm10117_vm0  ;;  %v4538_v37 = vadd.f32 %v7080_v49, %v4212_v12  ;;  %v4097_v5 = vadd.f32 %v7059_v56, %v3735_v41  ;;  %v4018_v21 = vpop.f32.mrb[99].mxu1  ;;  %v4440_v33 = vpop.f32.mrb[91].mxu0 }
 0x1f2   : > { %4566 = vst.msk [vmem:[#allocation2 + $0x10] sm:$0xff] %vm10216_vm3, %v4534_v38  ;;  %v4210_v34 = vld [vmem:[#allocation2 + $0x20] sm:$0xff]  ;;  %vm10222_vm12 = vmmov %vm10117_vm0  ;;  %v4095_v27 = vadd.f32 %v4018_v21, %v3733_v59  ;;  %v7088_v3 = vpop.f32.mrb[92].mxu0 }
 0x1f3   : > { %4118 = vst.msk [vmem:[#allocation2 + $0x40] sm:$0xff] %vm10217_vm8, %v4086_v16  ;;  %v4536_v60 = vadd.f32 %v4421_v20, %v4210_v34  ;;  %vm10223_vm7 = vmmov %vm10117_vm0  ;;  %v7062_v16 = vpop.f32.mrb[100].mxu1  ;;  %v4453_v8 = vpop.f32.mrb[93].mxu0 }
 0x1f4   : > { %4564 = vst.msk [vmem:[#allocation2] sm:$0xff] %vm10218_vm15, %v4532_v48  ;;  %v4213_v15 = vld [vmem:[#allocation2 + $0x38] sm:$0xff]  ;;  %vm10224_vm2 = vmmov %vm10117_vm0  ;;  %v4100_v48 = vadd.f32 %v7062_v16, %v3738_v13  ;;  %v7089_v34 = vpop.f32.mrb[94].mxu0 }
 0x1f5   : > { %4121 = vst.msk [vmem:[#allocation2 + $0x58] sm:$0xff] %vm10219_vm11, %v4089_v36  ;;  %v4539_v19 = vadd.f32 %v7081_v26, %v4213_v15  ;;  %vm10225_vm1 = vmmov %vm10117_vm0  ;;  %v4031_v36 = vpop.f32.mrb[101].mxu1  ;;  %v3740_v26 = vld [vmem:[#allocation2 + $0xc0] sm:$0xff] }
 0x1f6   : > { %4567 = vst.msk [vmem:[#allocation2 + $0x18] sm:$0xff] %vm10117_vm0, %v4535_v45  ;;  %v4211_v32 = vld [vmem:[#allocation2 + $0x28] sm:$0xff]  ;;  %vm10226_vm10 = vmmov %vm10117_vm0  ;;  %v4098_v43 = vadd.f32 %v4031_v36, %v3736_v35 }
 0x1f7   : > { %4119 = vst.msk [vmem:[#allocation2 + $0x48] sm:$0xff] %vm10220_vm14, %v4087_v24  ;;  %v4537_v2 = vadd.f32 %v4424_v40, %v4211_v32  ;;  %vm10227_vm13 = vmmov %vm10117_vm0  ;;  %v3739_v24 = vld [vmem:[#allocation2 + $0xb8] sm:$0xff]  ;;  %v3742_v32 = vld [vmem:[#allocation2 + $0xd0] sm:$0xff] }
 0x1f8   : > { %4565 = vst.msk [vmem:[#allocation2 + $0x8] sm:$0xff] %vm10221_vm6, %v4533_v0  ;;  %vm10228_vm5 = vmmov %vm10117_vm0  ;;  %v4216_v54 = vld [vmem:[#allocation2 + $0x50] sm:$0xff]  ;;  %v7063_v0 = vpop.f32.mrb[102].mxu1  ;;  %v3745_v13 = vld [vmem:[#allocation2 + $0xe8] sm:$0xff] }
 0x1f9   : > { %4124 = vst.msk [vmem:[#allocation2 + $0x70] sm:$0xff] %vm10222_vm12, %v4092_v44  ;;  %vm10229_vm9 = vmmov %vm10117_vm0  ;;  %v4542_v9 = vadd.f32 %v7084_v39, %v4216_v54  ;;  %v4101_v55 = vadd.f32 %v7063_v0, %v3739_v24  ;;  %v4034_v49 = vpop.f32.mrb[103].mxu1  ;;  %v4456_v44 = vpop.f32.mrb[95].mxu0 }
 0x1fa   : > { %4570 = vst.msk [vmem:[#allocation2 + $0x30] sm:$0xff] %vm10223_vm7, %v4538_v37  ;;  %v4214_v46 = vld [vmem:[#allocation2 + $0x40] sm:$0xff]  ;;  %vm10230_vm3 = vmmov %vm10117_vm0  ;;  %v4099_v61 = vadd.f32 %v4034_v49, %v3737_v6  ;;  %v7092_v11 = vpop.f32.mrb[96].mxu0 }
 0x1fb   : > { %4122 = vst.msk [vmem:[#allocation2 + $0x60] sm:$0xff] %vm10224_vm2, %v4090_v25  ;;  %v4540_v62 = vadd.f32 %v4437_v53, %v4214_v46  ;;  %vm10231_vm8 = vmmov %vm10117_vm0  ;;  %v7066_v25 = vpop.f32.mrb[104].mxu1  ;;  %v4469_v23 = vpop.f32.mrb[97].mxu0 }
 0x1fc   : > { %4568 = vst.msk [vmem:[#allocation2 + $0x20] sm:$0xff] %vm10225_vm1, %v4536_v60  ;;  %v4217_v7 = vld [vmem:[#allocation2 + $0x58] sm:$0xff]  ;;  %vm10232_vm15 = vmmov %vm10117_vm0  ;;  %v4104_v60 = vadd.f32 %v7066_v25, %v3742_v32  ;;  %v7093_v46 = vpop.f32.mrb[98].mxu0 }
 0x1fd   : > { %4125 = vst.msk [vmem:[#allocation2 + $0x78] sm:$0xff] %vm10226_vm10, %v4093_v47  ;;  %v4543_v4 = vadd.f32 %v7085_v57, %v4217_v7  ;;  %vm10233_vm11 = vmmov %vm10117_vm0  ;;  %v4047_v47 = vpop.f32.mrb[105].mxu1  ;;  %v3744_v57 = vld [vmem:[#allocation2 + $0xe0] sm:$0xff] }
 0x1fe   : > { %4571 = vst.msk [vmem:[#allocation2 + $0x38] sm:$0xff] %vm10227_vm13, %v4539_v19  ;;  %v4215_v42 = vld [vmem:[#allocation2 + $0x48] sm:$0xff]  ;;  %vm10234_vm14 = vmmov %vm10117_vm0  ;;  %v4102_v40 = vadd.f32 %v4047_v47, %v3740_v26 }
 0x1ff   : > { %4123 = vst.msk [vmem:[#allocation2 + $0x68] sm:$0xff] %vm10228_vm5, %v4091_v18  ;;  %v4541_v10 = vadd.f32 %v4440_v33, %v4215_v42  ;;  %vm10235_vm6 = vmmov %vm10117_vm0  ;;  %v3743_v18 = vld [vmem:[#allocation2 + $0xd8] sm:$0xff]  ;;  %v3746_v42 = vld [vmem:[#allocation2 + $0xf0] sm:$0xff] }
 0x200   : > { %4569 = vst.msk [vmem:[#allocation2 + $0x28] sm:$0xff] %vm10229_vm9, %v4537_v2  ;;  %vm10236_vm12 = vmmov %vm10117_vm0  ;;  %v4220_v38 = vld [vmem:[#allocation2 + $0x70] sm:$0xff]  ;;  %v7067_v2 = vpop.f32.mrb[106].mxu1  ;;  %v3747_v33 = vld [vmem:[#allocation2 + $0xf8] sm:$0xff] }
 0x201   : > { %4128 = vst.msk [vmem:[#allocation2 + $0x90] sm:$0xff] %vm10230_vm3, %v4096_v58  ;;  %v4546_v63 = vadd.f32 %v7088_v3, %v4220_v38  ;;  %vm10237_vm7 = vmmov %vm10117_vm0  ;;  %v4105_v29 = vadd.f32 %v7067_v2, %v3743_v18  ;;  %v4050_v39 = vpop.f32.mrb[107].mxu1  ;;  %v4472_v58 = vpop.f32.mrb[99].mxu0  ;;  %v4630_v32 = vld [vmem:[#allocation2 + $0x8] sm:$0xff] }
 0x202   : > { %4574 = vst.msk [vmem:[#allocation2 + $0x50] sm:$0xff] %vm10231_vm8, %v4542_v9  ;;  %v4218_v31 = vld [vmem:[#allocation2 + $0x60] sm:$0xff]  ;;  %vm10238_vm2 = vmmov %vm10117_vm0  ;;  %v4103_v22 = vadd.f32 %v4050_v39, %v3741_v51  ;;  %v7096_v41 = vpop.f32.mrb[100].mxu0 }
 0x203   : > { %4126 = vst.msk [vmem:[#allocation2 + $0x80] sm:$0xff] %vm10232_vm15, %v4094_v50  ;;  %v4544_v12 = vadd.f32 %v4453_v8, %v4218_v31  ;;  %vm10239_vm1 = vmmov %vm10117_vm0  ;;  %vm5757_vm15 = vcmask 122880   ;;  %v7070_v50 = vpop.f32.mrb[108].mxu1  ;;  %v4485_v59 = vpop.f32.mrb[101].mxu0  ;;  %v4631_v8 = vld [vmem:[#allocation2 + $0x10] sm:$0xff] }
 0x204   : > { %4572 = vst.msk [vmem:[#allocation2 + $0x40] sm:$0xff] %vm10233_vm11, %v4540_v62  ;;  %v4221_v14 = vld [vmem:[#allocation2 + $0x78] sm:$0xff]  ;;  %vm10240_vm10 = vmmov %vm10117_vm0  ;;  %v4108_v62 = vadd.f32 %v7070_v50, %v3746_v42  ;;  %v7097_v38 = vpop.f32.mrb[102].mxu0 }
 0x205   : > { %4129 = vst.msk [vmem:[#allocation2 + $0x98] sm:$0xff] %vm10117_vm0, %v4097_v5  ;;  %v4547_v15 = vadd.f32 %v7089_v34, %v4221_v14  ;;  %vm10241_vm13 = vmmov %vm10117_vm0  ;;  %v4488_v14 = vpop.f32.mrb[103].mxu0 }
 0x206   : > { %4575 = vst.msk [vmem:[#allocation2 + $0x58] sm:$0xff] %vm10234_vm14, %v4543_v4  ;;  %v4219_v45 = vld [vmem:[#allocation2 + $0x68] sm:$0xff]  ;;  %vm10242_vm5 = vmmov %vm10117_vm0 }
 0x207   : > { %4127 = vst.msk [vmem:[#allocation2 + $0x88] sm:$0xff] %vm10235_vm6, %v4095_v27  ;;  %v4545_v28 = vadd.f32 %v4456_v44, %v4219_v45  ;;  %vm10243_vm9 = vmmov %vm10117_vm0  ;;  %v4632_v44 = vld [vmem:[#allocation2 + $0x18] sm:$0xff]  ;;  %v4634_v42 = vld [vmem:[#allocation2 + $0x28] sm:$0xff] }
 0x208   : > { %4573 = vst.msk [vmem:[#allocation2 + $0x48] sm:$0xff] %vm10236_vm12, %v4541_v10  ;;  %vm10244_vm3 = vmmov %vm10117_vm0  ;;  %v4224_v37 = vld [vmem:[#allocation2 + $0x90] sm:$0xff] }
 0x209   : > { %4132 = vst.msk [vmem:[#allocation2 + $0xb0] sm:$0xff] %vm10237_vm7, %v4100_v48  ;;  %v4550_v1 = vadd.f32 %v7092_v11, %v4224_v37  ;;  %vm10245_vm8 = vmmov %vm10117_vm0 }
 0x20a   : > { %4578 = vst.msk [vmem:[#allocation2 + $0x70] sm:$0xff] %vm10238_vm2, %v4546_v63  ;;  %v4222_v20 = vld [vmem:[#allocation2 + $0x80] sm:$0xff]  ;;  %vm10246_vm11 = vmmov %vm10117_vm0 }
 0x20b   : > { %4130 = vst.msk [vmem:[#allocation2 + $0xa0] sm:$0xff] %vm10239_vm1, %v4098_v43  ;;  %v4548_v54 = vadd.f32 %v4469_v23, %v4222_v20  ;;  %vm10247_vm14 = vmmov %vm10117_vm0  ;;  %v7100_v43 = vpop.f32.mrb[104].mxu0  ;;  %v4635_v23 = vld [vmem:[#allocation2 + $0x30] sm:$0xff] }
 0x20c   : > { %4576 = vst.msk [vmem:[#allocation2 + $0x60] sm:$0xff] %vm10240_vm10, %v4544_v12  ;;  %v4225_v52 = vld [vmem:[#allocation2 + $0x98] sm:$0xff]  ;;  %vm10248_vm6 = vmmov %vm10117_vm0  ;;  %v4629_v12 = vld [vmem:[#allocation2] sm:$0xff]  ;;  %v4501_v6 = vpop.f32.mrb[105].mxu0 }
 0x20d   : > { %4133 = vst.msk [vmem:[#allocation2 + $0xb8] sm:$0xff] %vm10241_vm13, %v4101_v55  ;;  %v4551_v7 = vadd.f32 %v7093_v46, %v4225_v52  ;;  %vm10249_vm12 = vmmov %vm10117_vm0  ;;  %v7101_v37 = vpop.f32.mrb[106].mxu0 }
 0x20e   : > { %4579 = vst.msk [vmem:[#allocation2 + $0x78] sm:$0xff] %vm10242_vm5, %v4547_v15  ;;  %v4223_v19 = vld [vmem:[#allocation2 + $0x88] sm:$0xff]  ;;  %vm10250_vm7 = vmmov %vm10117_vm0  ;;  %v4504_v52 = vpop.f32.mrb[107].mxu0 }
 0x20f   : > { %4131 = vst.msk [vmem:[#allocation2 + $0xa8] sm:$0xff] %vm10243_vm9, %v4099_v61  ;;  %v4549_v30 = vadd.f32 %v4472_v58, %v4223_v19  ;;  %vm10251_vm2 = vmmov %vm10117_vm0  ;;  %v4636_v58 = vld [vmem:[#allocation2 + $0x38] sm:$0xff] }
 0x210   : > { %4577 = vst.msk [vmem:[#allocation2 + $0x68] sm:$0xff] %vm10244_vm3, %v4545_v28  ;;  %v4228_v9 = vld [vmem:[#allocation2 + $0xb0] sm:$0xff]  ;;  %vm10252_vm1 = vmmov %vm10117_vm0 }
 0x211   : > { %4136 = vst.msk [vmem:[#allocation2 + $0xd0] sm:$0xff] %vm10245_vm8, %v4104_v60  ;;  %v4554_v5 = vadd.f32 %v7096_v41, %v4228_v9  ;;  %vm10253_vm10 = vmmov %vm10117_vm0 }
 0x212   : > { %4582 = vst.msk [vmem:[#allocation2 + $0x90] sm:$0xff] %vm10246_vm11, %v4550_v1  ;;  %v4226_v53 = vld [vmem:[#allocation2 + $0xa0] sm:$0xff]  ;;  %vm10254_vm13 = vmmov %vm10117_vm0 }
 0x213   : > { %4134 = vst.msk [vmem:[#allocation2 + $0xc0] sm:$0xff] %vm10117_vm0, %v4102_v40  ;;  %v4552_v10 = vadd.f32 %v4485_v59, %v4226_v53  ;;  %vm10255_vm5 = vmmov %vm10117_vm0  ;;  %v7104_v40 = vpop.f32.mrb[108].mxu0  ;;  %v4639_v59 = vld [vmem:[#allocation2 + $0x50] sm:$0xff] }
 0x214   : > { %5758 = vst.msk [vmem:[%s8996_s17 + $0x90] sm:$0x1] %vm5757_vm15, %v10169_v17  ;;  %v4229_v56 = vld [vmem:[#allocation2 + $0xb8] sm:$0xff]  ;;  %v4063_v17 = vpop.f32.mrb[109].mxu1  ;;  %vm10256_vm9 = vmmov %vm10117_vm0  ;;  %v4517_v51 = vpop.f32.mrb[109].mxu0 }
 0x215   : > { %4580 = vst.msk [vmem:[#allocation2 + $0x80] sm:$0xff] %vm10247_vm14, %v4548_v54  ;;  %v4106_v4 = vadd.f32 %v4063_v17, %v3744_v57  ;;  %v7071_v27 = vpop.f32.mrb[110].mxu1  ;;  %v4555_v3 = vadd.f32 %v7097_v38, %v4229_v56  ;;  %vm10257_vm3 = vmmov %vm10117_vm0  ;;  %v4633_v54 = vld [vmem:[#allocation2 + $0x20] sm:$0xff]  ;;  %v7105_v9 = vpop.f32.mrb[110].mxu0 }
 0x216   : > { %4137 = vst.msk [vmem:[#allocation2 + $0xd8] sm:$0xff] %vm10248_vm6, %v4105_v29  ;;  %v4227_v21 = vld [vmem:[#allocation2 + $0xa8] sm:$0xff]  ;;  %v4109_v31 = vadd.f32 %v7071_v27, %v3747_v33  ;;  %v4066_v16 = vpop.f32.mrb[111].mxu1  ;;  %vm10258_vm8 = vmmov %vm10117_vm0  ;;  %v4520_v56 = vpop.f32.mrb[111].mxu0 }
 0x217   : > { %4583 = vst.msk [vmem:[#allocation2 + $0x98] sm:$0xff] %vm10249_vm12, %v4551_v7  ;;  %v4107_v48 = vadd.f32 %v4066_v16, %v3745_v13  ;;  %v4553_v35 = vadd.f32 %v4488_v14, %v4227_v21  ;;  %vm10259_vm11 = vmmov %vm10117_vm0  ;;  %v7110_v45 = vpop.f32.mrb[112].mxu1  ;;  %v4640_v14 = vld [vmem:[#allocation2 + $0x58] sm:$0xff] }
 0x218   : > { %4135 = vst.msk [vmem:[#allocation2 + $0xc8] sm:$0xff] %vm10250_vm7, %v4103_v22  ;;  %v4232_v36 = vld [vmem:[#allocation2 + $0xd0] sm:$0xff]  ;;  %v5092_v0 = vadd.f32 %v7110_v45, %v4631_v8  ;;  %v4963_v34 = vpop.f32.mrb[113].mxu1  ;;  %vm10260_vm14 = vmmov %vm10117_vm0  ;;  %v4638_v8 = vld [vmem:[#allocation2 + $0x48] sm:$0xff] }
 0x219   : > { %4581 = vst.msk [vmem:[#allocation2 + $0x88] sm:$0xff] %vm10251_vm2, %v4549_v30  ;;  %v4558_v55 = vadd.f32 %v7100_v43, %v4232_v36  ;;  %v5090_v15 = vadd.f32 %v4963_v34, %v4629_v12  ;;  %v7111_v61 = vpop.f32.mrb[114].mxu1  ;;  %vm10261_vm6 = vmmov %vm10117_vm0 }
 0x21a   : > { %4140 = vst.msk [vmem:[#allocation2 + $0xf0] sm:$0xff] %vm10252_vm1, %v4108_v62  ;;  %v4230_v63 = vld [vmem:[#allocation2 + $0xc0] sm:$0xff]  ;;  %v5093_v20 = vadd.f32 %v7111_v61, %v4632_v44  ;;  %v4966_v25 = vpop.f32.mrb[115].mxu1  ;;  %vm10262_vm12 = vmmov %vm10117_vm0 }
 0x21b   : > { %4586 = vst.msk [vmem:[#allocation2 + $0xb0] sm:$0xff] %vm10253_vm10, %v4554_v5  ;;  %v4556_v28 = vadd.f32 %v4501_v6, %v4230_v63  ;;  %v5091_v60 = vadd.f32 %v4966_v25, %v4630_v32  ;;  %vm10263_vm7 = vmmov %vm10117_vm0  ;;  %v7114_v19 = vpop.f32.mrb[116].mxu1  ;;  %v4643_v6 = vld [vmem:[#allocation2 + $0x70] sm:$0xff] }
 0x21c   : > { %4138 = vst.msk [vmem:[#allocation2 + $0xe0] sm:$0xff] %vm10254_vm13, %v4106_v4  ;;  %vm10264_vm2 = vmmov %vm10117_vm0  ;;  %v5096_v2 = vadd.f32 %v7114_v19, %v4635_v23  ;;  %v4979_v46 = vpop.f32.mrb[117].mxu1  ;;  %v7144_v4 = vpop.f32.mrb[112].mxu0 }
 0x21d   : > { %4584 = vst.msk [vmem:[#allocation2 + $0xa0] sm:$0xff] %vm10255_vm5, %v4552_v10  ;;  %v4233_v24 = vld [vmem:[#allocation2 + $0xd8] sm:$0xff]  ;;  %vm10265_vm1 = vmmov %vm10117_vm0  ;;  %v5094_v7 = vadd.f32 %v4979_v46, %v4633_v54  ;;  %v7115_v22 = vpop.f32.mrb[118].mxu1  ;;  %v4637_v10 = vld [vmem:[#allocation2 + $0x40] sm:$0xff]  ;;  %v5455_v13 = vpop.f32.mrb[113].mxu0 }
 0x21e   : > { %4141 = vst.msk [vmem:[#allocation2 + $0xf8] sm:$0xff] %vm10256_vm9, %v4109_v31  ;;  %v4559_v11 = vadd.f32 %v7101_v37, %v4233_v24  ;;  %vm10266_vm10 = vmmov %vm10117_vm0  ;;  %v5097_v53 = vadd.f32 %v7115_v22, %v4636_v58  ;;  %v4982_v50 = vpop.f32.mrb[119].mxu1  ;;  %v7145_v36 = vpop.f32.mrb[114].mxu0  ;;  %v4641_v37 = vld [vmem:[#allocation2 + $0x60] sm:$0xff] }
 0x21f   : > { %4587 = vst.msk [vmem:[#allocation2 + $0xb8] sm:$0xff] %vm10257_vm3, %v4555_v3  ;;  %v4231_v49 = vld [vmem:[#allocation2 + $0xc8] sm:$0xff]  ;;  %vm10267_vm13 = vmmov %vm10117_vm0  ;;  %v5095_v62 = vadd.f32 %v4982_v50, %v4634_v42  ;;  %v7118_v21 = vpop.f32.mrb[120].mxu1  ;;  %v5458_v24 = vpop.f32.mrb[115].mxu0 }
 0x220   : > { %4139 = vst.msk [vmem:[#allocation2 + $0xe8] sm:$0xff] %vm10258_vm8, %v4107_v48  ;;  %v4557_v26 = vadd.f32 %v4504_v52, %v4231_v49  ;;  %vm10268_vm5 = vmmov %vm10117_vm0  ;;  %v5100_v27 = vadd.f32 %v7118_v21, %v4639_v59  ;;  %v4995_v38 = vpop.f32.mrb[121].mxu1  ;;  %v7148_v44 = vpop.f32.mrb[116].mxu0 }
 0x221   : > { %4585 = vst.msk [vmem:[#allocation2 + $0xa8] sm:$0xff] %vm10259_vm11, %v4553_v35  ;;  %v4236_v47 = vld [vmem:[#allocation2 + $0xf0] sm:$0xff]  ;;  %vm10269_vm9 = vmmov %vm10117_vm0  ;;  %v5098_v3 = vadd.f32 %v4995_v38, %v4637_v10  ;;  %v7119_v48 = vpop.f32.mrb[122].mxu1  ;;  %v5471_v25 = vpop.f32.mrb[117].mxu0 }
 0x222   : > { %5124 = vst.msk [vmem:[#allocation2 + $0x10] sm:$0xff] %vm10117_vm0, %v5092_v0  ;;  %v4562_v29 = vadd.f32 %v7104_v40, %v4236_v47  ;;  %vm10270_vm3 = vmmov %vm10117_vm0  ;;  %v5101_v63 = vadd.f32 %v7119_v48, %v4640_v14  ;;  %v4998_v45 = vpop.f32.mrb[123].mxu1  ;;  %v7149_v23 = vpop.f32.mrb[118].mxu0  ;;  %v4642_v40 = vld [vmem:[#allocation2 + $0x68] sm:$0xff] }
 0x223   : > { %4590 = vst.msk [vmem:[#allocation2 + $0xd0] sm:$0xff] %vm10260_vm14, %v4558_v55  ;;  %v4234_v1 = vld [vmem:[#allocation2 + $0xe0] sm:$0xff]  ;;  %vm10271_vm8 = vmmov %vm10117_vm0  ;;  %v5099_v0 = vadd.f32 %v4998_v45, %v4638_v8  ;;  %v7122_v49 = vpop.f32.mrb[124].mxu1 }
 0x224   : > { %5122 = vst.msk [vmem:[#allocation2] sm:$0xff] %vm10261_vm6, %v5090_v15  ;;  %v4560_v30 = vadd.f32 %v4517_v51, %v4234_v1  ;;  %vm10272_vm11 = vmmov %vm10117_vm0  ;;  %v9232_v15 = vld [vmem:[%s9563_s2] ss:$0 sm:$0xff] }
 0x225   : > { %4588 = vst.msk [vmem:[#allocation2 + $0xc0] sm:$0xff] %vm10262_vm12, %v4556_v28  ;;  %v4237_v18 = vld [vmem:[#allocation2 + $0xf8] sm:$0xff]  ;;  %vm10273_vm14 = vmmov %vm10117_vm0  ;;  %v5104_v28 = vadd.f32 %v7122_v49, %v4643_v6 }
 0x226   : > { %5125 = vst.msk [vmem:[#allocation2 + $0x18] sm:$0xff] %vm10263_vm7, %v5093_v20  ;;  %v4563_v41 = vadd.f32 %v7105_v9, %v4237_v18  ;;  %vm10274_vm6 = vmmov %vm10117_vm0  ;;  %v5011_v20 = vpop.f32.mrb[125].mxu1 }
 0x227   : > { %4591 = vst.msk [vmem:[#allocation2 + $0xd8] sm:$0xff] %vm10264_vm2, %v4559_v11  ;;  %v4235_v39 = vld [vmem:[#allocation2 + $0xe8] sm:$0xff]  ;;  %vm10275_vm12 = vmmov %vm10117_vm0  ;;  %v5102_v52 = vadd.f32 %v5011_v20, %v4641_v37 }
 0x228   : > { %5123 = vst.msk [vmem:[#allocation2 + $0x8] sm:$0xff] %vm10265_vm1, %v5091_v60  ;;  %v4561_v57 = vadd.f32 %v4520_v56, %v4235_v39  ;;  %vm10276_vm7 = vmmov %vm10117_vm0  ;;  %v4644_v60 = vld [vmem:[#allocation2 + $0x78] sm:$0xff] }
 0x229   : > { %4589 = vst.msk [vmem:[#allocation2 + $0xc8] sm:$0xff] %vm10266_vm10, %v4557_v26  ;;  %v5222_v17 = vld [vmem:[#allocation2 + $0x10] sm:$0xff]  ;;  %vm10277_vm2 = vmmov %vm10117_vm0  ;;  %v7123_v26 = vpop.f32.mrb[126].mxu1 }
 0x22a   : > { %5128 = vst.msk [vmem:[#allocation2 + $0x30] sm:$0xff] %vm10267_vm13, %v5096_v2  ;;  %v5584_v31 = vadd.f32 %v7144_v4, %v5222_v17  ;;  %vm10278_vm1 = vmmov %vm10117_vm0  ;;  %v5105_v19 = vadd.f32 %v7123_v26, %v4644_v60  ;;  %v5014_v18 = vpop.f32.mrb[127].mxu1 }
 0x22b   : > { %4594 = vst.msk [vmem:[#allocation2 + $0xf0] sm:$0xff] %vm10268_vm5, %v4562_v29  ;;  %v5220_v5 = vld [vmem:[#allocation2] sm:$0xff]  ;;  %vm10279_vm10 = vmmov %vm10117_vm0  ;;  %v5474_v29 = vpop.f32.mrb[119].mxu0  ;;  %v5103_v51 = vadd.f32 %v5014_v18, %v4642_v40  ;;  %v7126_v17 = vpop.f32.mrb[128].mxu1 }
 0x22c   : > { %5126 = vst.msk [vmem:[#allocation2 + $0x20] sm:$0xff] %vm10269_vm9, %v5094_v7  ;;  %v5582_v35 = vadd.f32 %v5455_v13, %v5220_v5  ;;  %vm10280_vm13 = vmmov %vm10117_vm0  ;;  %v7152_v4 = vpop.f32.mrb[120].mxu0 }
 0x22d   : > { %4592 = vst.msk [vmem:[#allocation2 + $0xe0] sm:$0xff] %vm10270_vm3, %v4560_v30  ;;  %v5223_v33 = vld [vmem:[#allocation2 + $0x18] sm:$0xff]  ;;  %vm10281_vm5 = vmmov %vm10117_vm0 }
 0x22e   : > { %5129 = vst.msk [vmem:[#allocation2 + $0x38] sm:$0xff] %vm10271_vm8, %v5097_v53  ;;  %v5585_v43 = vadd.f32 %v7145_v36, %v5223_v33  ;;  %vm10282_vm9 = vmmov %vm10117_vm0 }
 0x22f   : > { %4595 = vst.msk [vmem:[#allocation2 + $0xf8] sm:$0xff] %vm10272_vm11, %v4563_v41  ;;  %v5221_v16 = vld [vmem:[#allocation2 + $0x8] sm:$0xff]  ;;  %vm10283_vm3 = vmmov %vm10117_vm0 }
 0x230   : > { %5127 = vst.msk [vmem:[#allocation2 + $0x28] sm:$0xff] %vm10117_vm0, %v5095_v62  ;;  %v5583_v12 = vadd.f32 %v5458_v24, %v5221_v16  ;;  %vm10284_vm8 = vmmov %vm10117_vm0 }
 0x231   : > { %4593 = vst.msk [vmem:[#allocation2 + $0xe8] sm:$0xff] %vm10273_vm14, %v4561_v57  ;;  %v5226_v34 = vld [vmem:[#allocation2 + $0x30] sm:$0xff]  ;;  %vm10285_vm11 = vmmov %vm10117_vm0 }
 0x232   : > { %5132 = vst.msk [vmem:[#allocation2 + $0x50] sm:$0xff] %vm10274_vm6, %v5100_v27  ;;  %v5588_v32 = vadd.f32 %v7148_v44, %v5226_v34  ;;  %vm10286_vm14 = vmmov %vm10117_vm0  ;;  %v4647_v57 = vld [vmem:[#allocation2 + $0x90] sm:$0xff]  ;;  %v9246_v27 = vpop.f32.mrb[129].mxu1 }
 0x233   : > { %5616 = vst.msk [vmem:[#allocation2 + $0x10] sm:$0xff] %vm10275_vm12, %v5584_v31  ;;  %v5224_v55 = vld [vmem:[#allocation2 + $0x20] sm:$0xff]  ;;  %vm10287_vm6 = vmmov %vm10117_vm0  ;;  %vm6179_vm12 = vsmask.f32 7938  ;;  %v5108_v33 = vadd.f32 %v7126_v17, %v4647_v57  ;;  %v6181_v31 = vld [vmem:[%s8996_s17 + $0x8] sm:$0xf] }
 0x234   : > { %5130 = vst.msk [vmem:[#allocation2 + $0x40] sm:$0xff] %vm10276_vm7, %v5098_v3  ;;  %v5586_v1 = vadd.f32 %v5471_v25, %v5224_v55  ;;  %vm5855_vm7 = vsmask.f32 256  ;;  %v5487_v3 = vpop.f32.mrb[121].mxu0  ;;  %v9249_v14 = vpop.f32.mrb[130].mxu1 }
 0x235   : > { %5614 = vst.msk [vmem:[#allocation2] sm:$0xff] %vm10277_vm2, %v5582_v35  ;;  %v5227_v61 = vld [vmem:[#allocation2 + $0x38] sm:$0xff]  ;;  %vm10288_vm2 = vmmov %vm10117_vm0  ;;  %v7153_v45 = vpop.f32.mrb[122].mxu0  ;;  %v9262_v49 = vpop.f32.mrb[131].mxu1 }
 0x236   : > { %5133 = vst.msk [vmem:[#allocation2 + $0x58] sm:$0xff] %vm10278_vm1, %v5101_v63  ;;  %v5589_v46 = vadd.f32 %v7149_v23, %v5227_v61  ;;  %vm5856_vm1 = vsmask.f32 4368  ;;  %v5490_v6 = vpop.f32.mrb[123].mxu0 }
 0x237   : > { %5617 = vst.msk [vmem:[#allocation2 + $0x18] sm:$0xff] %vm10279_vm10, %v5585_v43  ;;  %v5225_v11 = vld [vmem:[#allocation2 + $0x28] sm:$0xff]  ;;  %vm10289_vm10 = vmmov %vm10117_vm0 }
 0x238   : > { %5131 = vst.msk [vmem:[#allocation2 + $0x48] sm:$0xff] %vm10280_vm13, %v5099_v0  ;;  %v5587_v58 = vadd.f32 %v5474_v29, %v5225_v11  ;;  %vm9254_vm13 = vmand %vm5720_vm4, %vm6179_vm12 }
 0x239   : > { %5615 = vst.msk [vmem:[#allocation2 + $0x8] sm:$0xff] %vm10281_vm5, %v5583_v12  ;;  %v5230_v50 = vld [vmem:[#allocation2 + $0x50] sm:$0xff]  ;;  %vm10292_vm5 = vmmov %vm10117_vm0 }
 0x23a   : > { %v5651_v47 = vld [vmem:[#allocation2 + $0x10] sm:$0xff]  ;;  %5136 = vst.msk [vmem:[#allocation2 + $0x70] sm:$0xff] %vm10282_vm9, %v5104_v28  ;;  %v5592_v16 = vadd.f32 %v7152_v4, %v5230_v50  ;;  %vm9266_vm9 = vmor %vm5855_vm7, %vm5856_vm1 }
 0x23b   : > { %v5690_v2 = vadd.f32 %v9232_v15, %v5651_v47  ;;  %5620 = vst.msk [vmem:[#allocation2 + $0x30] sm:$0xff] %vm10283_vm3, %v5588_v32  ;;  %v5228_v62 = vld [vmem:[#allocation2 + $0x40] sm:$0xff]  ;;  %vm10295_vm3 = vmmov %vm10117_vm0 }
 0x23c   : > { %v5649_v54 = vld [vmem:[#allocation2] sm:$0xff]  ;;  %5134 = vst.msk [vmem:[#allocation2 + $0x60] sm:$0xff] %vm10284_vm8, %v5102_v52  ;;  %v5590_v8 = vadd.f32 %v5487_v3, %v5228_v62  ;;  %vm10296_vm8 = vmmov %vm10117_vm0 }
 0x23d   : > { %v5688_v39 = vadd.f32 %v9232_v15, %v5649_v54  ;;  %5618 = vst.msk [vmem:[#allocation2 + $0x20] sm:$0xff] %vm10285_vm11, %v5586_v1  ;;  %v6685_v22 = vpack.c.bf16 %v5690_v2, %v5690_v2  ;;  %v5231_v54 = vld [vmem:[#allocation2 + $0x58] sm:$0xff]  ;;  %vm10297_vm11 = vmmov %vm10117_vm0 }
 0x23e   : > { %v5652_v7 = vld [vmem:[#allocation2 + $0x18] sm:$0xff]  ;;  %5137 = vst.msk [vmem:[#allocation2 + $0x78] sm:$0xff] %vm10117_vm0, %v5105_v19  ;;  %v5593_v17 = vadd.f32 %v7153_v45, %v5231_v54  ;;  %vm10300_vm12 = vmmov %vm10117_vm0 }
 0x23f   : > { %v5691_v30 = vadd.f32 %v9232_v15, %v5652_v7  ;;  %5621 = vst.msk [vmem:[#allocation2 + $0x38] sm:$0xff] %vm10286_vm14, %v5589_v46  ;;  %v6683_v53 = vpack.c.bf16 %v5688_v39, %v5688_v39  ;;  %v5876_v41 = vshrl.u32 %v6685_v22, 16  ;;  %v5879_v5 = vshll.u32 %v6685_v22, 16  ;;  %v5229_v46 = vld [vmem:[#allocation2 + $0x48] sm:$0xff]  ;;  %v7156_v22 = vpop.f32.mrb[124].mxu0  ;;  %vm10298_vm14 = vmmov %vm10117_vm0 }
 0x240   : > { %v5650_v9 = vld [vmem:[#allocation2 + $0x8] sm:$0xff]  ;;  %5135 = vst.msk [vmem:[#allocation2 + $0x68] sm:$0xff] %vm10287_vm6, %v5103_v51  ;;  %v9282_v51 = vpop.f32.mrb[132].mxu1  ;;  %vm10299_vm6 = vmmov %vm10117_vm0 }
 0x241   : > { %v5689_v42 = vadd.f32 %v9232_v15, %v5650_v9  ;;  %5619 = vst.msk [vmem:[#allocation2 + $0x28] sm:$0xff] %vm10288_vm2, %v5587_v58  ;;  %v6686_v56 = vpack.c.bf16 %v5691_v30, %v5691_v30  ;;  %v5859_v59 = vshrl.u32 %v6683_v53, 16  ;;  %v5878_v10 = vrot.slane %v5876_v41, 7  ;;  %v5234_v29 = vld [vmem:[#allocation2 + $0x70] sm:$0xff]  ;;  %v9290_v30 = vpop.f32.mrb[133].mxu1  ;;  %v5503_v41 = vpop.f32.mrb[125].mxu0  ;;  %vm10301_vm2 = vmmov %vm10117_vm0 }
 0x242   : > { %v5862_v38 = vshll.u32 %v6683_v53, 16  ;;  %v5655_v63 = vld [vmem:[#allocation2 + $0x30] sm:$0xff]  ;;  %5140 = vst.msk [vmem:[#allocation2 + $0x90] sm:$0xff] %vm10289_vm10, %v5108_v33  ;;  %vm10302_vm1 = vmmov %vm10117_vm0 }
 0x243   : > { %v6684_v21 = vpack.c.bf16 %v5689_v42, %v5689_v42  ;;  %v5885_v13 = vshrl.u32 %v6686_v56, 16  ;;  %v5861_v48 = vrot.slane %v5859_v59, 7  ;;  %v5888_v35 = vshll.u32 %v6686_v56, 16  ;;  %5624 = vst.msk [vmem:[#allocation2 + $0x50] sm:$0xff] %vm10292_vm5, %v5592_v16  ;;  %v9297_v56 = vpop.f32.mrb[134].mxu1  ;;  %v5232_v16 = vld [vmem:[#allocation2 + $0x60] sm:$0xff]  ;;  %vm10303_vm10 = vmmov %vm10117_vm0 }
 0x244   : > { %v5881_v43 = vor.u32 %v5879_v5, %v5878_v10  ;;  %v5694_v34 = vadd.f32 %v9232_v15, %v5655_v63  ;;  %v5653_v55 = vld [vmem:[#allocation2 + $0x20] sm:$0xff]  ;;  %v5883_v44 = vrot.slane %v5878_v10, 4  ;;  %5622 = vst.msk [vmem:[#allocation2 + $0x40] sm:$0xff] %vm10295_vm3, %v5590_v8  ;;  %v5591_v5 = vadd.f32 %v5490_v6, %v5229_v46  ;;  %v9301_v4 = vpop.f32.mrb[135].mxu1  ;;  %v4646_v46 = vld [vmem:[#allocation2 + $0x88] sm:$0xff]  ;;  %vm10305_vm5 = vmmov %vm10117_vm0 }
 0x245   : > { %v5867_v36 = vshrl.u32 %v6684_v21, 16  ;;  %v9258_v0 = vrot.slane %v5885_v13, 7  ;;  %v5870_v12 = vshll.u32 %v6684_v21, 16  ;;  %v5864_v61 = vor.u32 %v5862_v38, %v5861_v48  ;;  %v7157_v21 = vpop.f32.mrb[126].mxu0  ;;  %5625 = vst.msk [vmem:[#allocation2 + $0x58] sm:$0xff] %vm10296_vm8, %v5593_v17  ;;  %v5235_v8 = vld [vmem:[#allocation2 + $0x78] sm:$0xff]  ;;  %vm10306_vm3 = vmmov %vm10117_vm0 }
 0x246   : > { %v5692_v20 = vadd.f32 %v9232_v15, %v5653_v55  ;;  %v5656_v32 = vld [vmem:[#allocation2 + $0x38] sm:$0xff]  ;;  %v5865_v25 = vrot.slane %v5861_v48, 4  ;;  %v9273_v52 = vpack.c.bf16 %v5694_v34, %v5694_v34  ;;  %v5596_v59 = vadd.f32 %v7156_v22, %v5234_v29  ;;  %v5506_v3 = vpop.f32.mrb[127].mxu0  ;;  %5623 = vst.msk [vmem:[#allocation2 + $0x48] sm:$0xff] %vm10297_vm11, %v5591_v5  ;;  %vm10307_vm8 = vmmov %vm10117_vm0 }
 0x247   : > { %v5869_v37 = vrot.slane %v5867_v36, 7  ;;  %v5890_v11 = vor.u32 %v5888_v35, %v9258_v0  ;;  %v5695_v60 = vadd.f32 %v9232_v15, %v5656_v32  ;;  %v6182_v26 = vsel %vm9254_vm13, %v5864_v61, %v6181_v31  ;;  %v5233_v61 = vld [vmem:[#allocation2 + $0x68] sm:$0xff]  ;;  %vm10304_vm13 = vmmov %vm10117_vm0 }
 0x248   : > { %v6687_v23 = vpack.c.bf16 %v5692_v20, %v5692_v20  ;;  %v5654_v19 = vld [vmem:[#allocation2 + $0x28] sm:$0xff]  ;;  %6183 = vst [vmem:[%s8996_s17 + $0x8] sm:$0xf] %v6182_v26  ;;  %v5912_v18 = vshrl.u32 %v9273_v52, 16  ;;  %v5892_v33 = vrot.slane %v9258_v0, 4  ;;  %v5915_v48 = vshll.u32 %v9273_v52, 16  ;;  %vm10308_vm11 = vmmov %vm10117_vm0 }
 0x249   : > { %v5872_v47 = vor.u32 %v5870_v12, %v5869_v37  ;;  %v5874_v1 = vrot.slane %v5869_v37, 4  ;;  %v5891_v40 = vsel %vm9266_vm9, %v5883_v44, %v5890_v11  ;;  %v6690_v2 = vpack.c.bf16 %v5695_v60, %v5695_v60  ;;  %5628 = vst.msk [vmem:[#allocation2 + $0x70] sm:$0xff] %vm10117_vm0, %v5596_v59  ;;  %v4645_v44 = vld [vmem:[#allocation2 + $0x80] sm:$0xff]  ;;  %v5238_v11 = vld [vmem:[#allocation2 + $0x90] sm:$0xff]  ;;  %v7134_v52 = vpop.f32.mrb[136].mxu1 }
 0x24a   : > { %6186 = vst.msk [vmem:[%s8996_s17 + $0x14] sm:$0xf] %vm5720_vm4, %v5891_v40  ;;  %v5894_v58 = vshrl.u32 %v6687_v23, 16  ;;  %v5914_v9 = vrot.slane %v5912_v18, 7  ;;  %v5897_v53 = vshll.u32 %v6687_v23, 16  ;;  %v5693_v50 = vadd.f32 %v9232_v15, %v5654_v19  ;;  %v5659_v57 = vld [vmem:[#allocation2 + $0x50] sm:$0xff] }
 0x24b   : > { %v5873_v39 = vsel %vm9266_vm9, %v5865_v25, %v5872_v47  ;;  %v5882_v7 = vsel %vm9266_vm9, %v5874_v1, %v5881_v43  ;;  %v5921_v42 = vshrl.u32 %v6690_v2, 16  ;;  %v5924_v38 = vshll.u32 %v6690_v2, 16  ;;  %v5657_v13 = vld [vmem:[#allocation2 + $0x40] sm:$0xff]  ;;  %v4648_v23 = vld [vmem:[#allocation2 + $0x98] sm:$0xff]  ;;  %v7160_v19 = vpop.f32.mrb[128].mxu0  ;;  %v5059_v40 = vpop.f32.mrb[137].mxu1 }
 0x24c   : > { %6184 = vst.msk [vmem:[%s8996_s17 + $0xc] sm:$0xf] %vm5720_vm4, %v5873_v39  ;;  %6185 = vst.msk [vmem:[%s8996_s17 + $0x10] sm:$0xf] %vm5720_vm4, %v5882_v7  ;;  %v9299_v62 = vrot.slane %v5894_v58, 7  ;;  %v6688_v31 = vpack.c.bf16 %v5693_v50, %v5693_v50  ;;  %v5698_v36 = vadd.f32 %v9232_v15, %v5659_v57  ;;  %v5696_v63 = vadd.f32 %v9232_v15, %v5657_v13  ;;  %v9331_v29 = vpop.f32.mrb[129].mxu0 }
 0x24d   : > { %v9304_v10 = vrot.slane %v5921_v42, 7  ;;  %v5919_v45 = vrot.slane %v5914_v9, 4  ;;  %v5594_v6 = vadd.f32 %v5503_v41, %v5232_v16  ;;  %v5106_v32 = vadd.f32 %v9246_v27, %v4645_v44  ;;  %v7135_v39 = vpop.f32.mrb[138].mxu1  ;;  %v4649_v42 = vld [vmem:[#allocation2 + $0xa0] sm:$0xff]  ;;  %v9336_v50 = vpop.f32.mrb[130].mxu0  ;;  %v5660_v57 = vld [vmem:[#allocation2 + $0x58] sm:$0xff] }
 0x24e   : > { %v5899_v35 = vor.u32 %v5897_v53, %v9299_v62  ;;  %v5903_v24 = vshrl.u32 %v6688_v31, 16  ;;  %v5906_v0 = vshll.u32 %v6688_v31, 16  ;;  %v9316_v34 = vpack.c.bf16 %v5698_v36, %v5698_v36  ;;  %v4651_v53 = vld [vmem:[#allocation2 + $0xb0] sm:$0xff]  ;;  %v5062_v41 = vpop.f32.mrb[139].mxu1  ;;  %v5658_v17 = vld [vmem:[#allocation2 + $0x48] sm:$0xff]  ;;  %v4653_v36 = vld [vmem:[#allocation2 + $0xc0] sm:$0xff] }
 0x24f   : > { %v5926_v43 = vor.u32 %v5924_v38, %v9304_v10  ;;  %v6691_v55 = vpack.c.bf16 %v5696_v63, %v5696_v63  ;;  %v5597_v25 = vadd.f32 %v7157_v21, %v5235_v8  ;;  %v5917_v60 = vor.u32 %v5915_v48, %v5914_v9  ;;  %5626 = vst.msk [vmem:[#allocation2 + $0x60] sm:$0xff] %vm10298_vm14, %v5594_v6  ;;  %v9346_v21 = vpop.f32.mrb[131].mxu0  ;;  %v4650_v48 = vld [vmem:[#allocation2 + $0xa8] sm:$0xff]  ;;  %v4659_v44 = vld [vmem:[#allocation2 + $0xf0] sm:$0xff]  ;;  %vm10309_vm14 = vmmov %vm10117_vm0 }
 0x250   : > { %v5900_v12 = vsel %vm9266_vm9, %v5892_v33, %v5899_v35  ;;  %v5905_v20 = vrot.slane %v5903_v24, 7  ;;  %v5901_v26 = vrot.slane %v9299_v62, 4  ;;  %v5948_v47 = vshrl.u32 %v9316_v34, 16  ;;  %5138 = vst.msk [vmem:[#allocation2 + $0x80] sm:$0xff] %vm10299_vm6, %v5106_v32  ;;  %v5663_v5 = vld [vmem:[#allocation2 + $0x70] sm:$0xff]  ;;  %v4656_v24 = vld [vmem:[#allocation2 + $0xd8] sm:$0xff]  ;;  %vm10310_vm6 = vmmov %vm10117_vm0 }
 0x251   : > { %6187 = vst.msk [vmem:[%s8996_s17 + $0x18] sm:$0xf] %vm5720_vm4, %v5900_v12  ;;  %v5927_v37 = vsel %vm9266_vm9, %v5919_v45, %v5926_v43  ;;  %v5930_v1 = vshrl.u32 %v6691_v55, 16  ;;  %v5109_v27 = vadd.f32 %v9249_v14, %v4648_v23  ;;  %v5595_v54 = vadd.f32 %v5506_v3, %v5233_v61  ;;  %v4655_v35 = vld [vmem:[#allocation2 + $0xd0] sm:$0xff]  ;;  %v4654_v6 = vld [vmem:[#allocation2 + $0xc8] sm:$0xff]  ;;  %v7138_v61 = vpop.f32.mrb[140].mxu1 }
 0x252   : > { %6190 = vst.msk [vmem:[%s8996_s17 + $0x24] sm:$0xf] %vm5720_vm4, %v5927_v37  ;;  %v5908_v18 = vor.u32 %v5906_v0, %v5905_v20  ;;  %v5910_v2 = vrot.slane %v5905_v20, 4  ;;  %v5933_v58 = vshll.u32 %v6691_v55, 16  ;;  %v5107_v22 = vadd.f32 %v9262_v49, %v4646_v46 }
 0x253   : > { %5629 = vst.msk [vmem:[#allocation2 + $0x78] sm:$0xff] %vm10300_vm12, %v5597_v25  ;;  %v9333_v7 = vrot.slane %v5930_v1, 7  ;;  %v5600_v9 = vadd.f32 %v7160_v19, %v5238_v11  ;;  %v5112_v49 = vadd.f32 %v9282_v51, %v4651_v53  ;;  %v5110_v59 = vadd.f32 %v9290_v30, %v4649_v42  ;;  %v4652_v51 = vld [vmem:[#allocation2 + $0xb8] sm:$0xff]  ;;  %v7164_v25 = vpop.f32.mrb[132].mxu0  ;;  %vm10311_vm12 = vmmov %vm10117_vm0 }
 0x254   : > { %v5909_v14 = vsel %vm9266_vm9, %v5901_v26, %v5908_v18  ;;  %v5918_v62 = vsel %vm9266_vm9, %v5910_v2, %v5917_v60  ;;  %5141 = vst.msk [vmem:[#allocation2 + $0x98] sm:$0xff] %vm10301_vm2, %v5109_v27  ;;  %v5928_v33 = vrot.slane %v9304_v10, 4  ;;  %v9353_v38 = vrot.slane %v5948_v47, 7  ;;  %v9376_v60 = vpop.f32.mrb[141].mxu1  ;;  %v9380_v19 = vpop.f32.mrb[133].mxu0  ;;  %vm10312_vm2 = vmmov %vm10117_vm0 }
 0x255   : > { %5627 = vst.msk [vmem:[#allocation2 + $0x68] sm:$0xff] %vm10302_vm1, %v5595_v54  ;;  %v5951_v31 = vshll.u32 %v9316_v34, 16  ;;  %v5935_v13 = vor.u32 %v5933_v58, %v9333_v7  ;;  %v5699_v30 = vadd.f32 %v9232_v15, %v5660_v57  ;;  %v5697_v10 = vadd.f32 %v9232_v15, %v5658_v17  ;;  %vm10313_vm1 = vmmov %vm10117_vm0 }
 0x256   : > { %6188 = vst.msk [vmem:[%s8996_s17 + $0x1c] sm:$0xf] %vm5720_vm4, %v5909_v14  ;;  %6189 = vst.msk [vmem:[%s8996_s17 + $0x20] sm:$0xf] %vm5720_vm4, %v5918_v62  ;;  %v5702_v16 = vadd.f32 %v9232_v15, %v5663_v5  ;;  %v5113_v3 = vadd.f32 %v9297_v56, %v4652_v51  ;;  %v5111_v8 = vadd.f32 %v9301_v4, %v4650_v48  ;;  %v5661_v55 = vld [vmem:[#allocation2 + $0x60] sm:$0xff]  ;;  %v5955_v26 = vrot.slane %v9353_v38, 4 }
 0x257   : > { %5139 = vst.msk [vmem:[#allocation2 + $0x88] sm:$0xff] %vm10303_vm10, %v5107_v22  ;;  %v5936_v63 = vsel %vm9266_vm9, %v5928_v33, %v5935_v13  ;;  %v5116_v45 = vadd.f32 %v7134_v52, %v4655_v35  ;;  %v5114_v43 = vadd.f32 %v5059_v40, %v4653_v36  ;;  %v6694_v0 = vpack.c.bf16 %v5699_v30, %v5699_v30  ;;  %v5236_v32 = vld [vmem:[#allocation2 + $0x80] sm:$0xff]  ;;  %v9383_v40 = vpop.f32.mrb[142].mxu1  ;;  %vm10314_vm10 = vmmov %vm10117_vm0 }
 0x258   : > { %5632 = vst.msk [vmem:[#allocation2 + $0x90] sm:$0xff] %vm10304_vm13, %v5600_v9  ;;  %v6692_v12 = vpack.c.bf16 %v5697_v10, %v5697_v10  ;;  %v6697_v34 = vpack.c.bf16 %v5702_v16, %v5702_v16  ;;  %v5117_v56 = vadd.f32 %v7135_v39, %v4656_v24  ;;  %v5953_v37 = vor.u32 %v5951_v31, %v9353_v38  ;;  %v7165_v39 = vpop.f32.mrb[134].mxu0  ;;  %vm10315_vm13 = vmmov %vm10117_vm0 }
 0x259   : > { %5144 = vst.msk [vmem:[#allocation2 + $0xb0] sm:$0xff] %vm10305_vm5, %v5112_v49  ;;  %v5700_v20 = vadd.f32 %v9232_v15, %v5661_v55  ;;  %v5115_v11 = vadd.f32 %v5062_v41, %v4654_v6  ;;  %v5120_v52 = vadd.f32 %v7138_v61, %v4659_v44  ;;  %v5937_v47 = vrot.slane %v9333_v7, 4  ;;  %v9388_v7 = vpop.f32.mrb[143].mxu1  ;;  %v5538_v42 = vpop.f32.mrb[135].mxu0  ;;  %vm10316_vm5 = vmmov %vm10117_vm0 }
 0x25a   : > { %5142 = vst.msk [vmem:[#allocation2 + $0xa0] sm:$0xff] %vm10306_vm3, %v5110_v59  ;;  %v5664_v4 = vld [vmem:[#allocation2 + $0x78] sm:$0xff]  ;;  %v5957_v1 = vshrl.u32 %v6694_v0, 16  ;;  %v5939_v23 = vshrl.u32 %v6692_v12, 16  ;;  %v5960_v18 = vshll.u32 %v6694_v0, 16  ;;  %v5984_v2 = vshrl.u32 %v6697_v34, 16  ;;  %vm10317_vm3 = vmmov %vm10117_vm0 }
 0x25b   : > { %6191 = vst.msk [vmem:[%s8996_s17 + $0x28] sm:$0xf] %vm5720_vm4, %v5936_v63  ;;  %v6695_v27 = vpack.c.bf16 %v5700_v20, %v5700_v20  ;;  %v5703_v54 = vadd.f32 %v9232_v15, %v5664_v4  ;;  %v5942_v9 = vshll.u32 %v6692_v12, 16  ;;  %v5598_v53 = vadd.f32 %v9331_v29, %v5236_v32  ;;  %v5239_v38 = vld [vmem:[#allocation2 + $0x98] sm:$0xff]  ;;  %v7168_v0 = vpop.f32.mrb[136].mxu0 }
 0x25c   : > { %5145 = vst.msk [vmem:[#allocation2 + $0xb8] sm:$0xff] %vm10307_vm8, %v5113_v3  ;;  %v5662_v46 = vld [vmem:[#allocation2 + $0x68] sm:$0xff]  ;;  %v5959_v58 = vrot.slane %v5957_v1, 7  ;;  %v5941_v22 = vrot.slane %v5939_v23, 7  ;;  %v5986_v41 = vrot.slane %v5984_v2, 7  ;;  %v5987_v59 = vshll.u32 %v6697_v34, 16  ;;  %vm10318_vm8 = vmmov %vm10117_vm0 }
 0x25d   : > { %5143 = vst.msk [vmem:[#allocation2 + $0xa8] sm:$0xff] %vm10308_vm11, %v5111_v8  ;;  %v5966_v14 = vshrl.u32 %v6695_v27, 16  ;;  %v6698_v62 = vpack.c.bf16 %v5703_v54, %v5703_v54  ;;  %v5701_v57 = vadd.f32 %v9232_v15, %v5662_v46  ;;  %v5969_v29 = vshll.u32 %v6695_v27, 16  ;;  %v5551_v61 = vpop.f32.mrb[137].mxu0  ;;  %vm10319_vm11 = vmmov %vm10117_vm0 }
 0x25e   : > { %5148 = vst.msk [vmem:[#allocation2 + $0xd0] sm:$0xff] %vm10117_vm0, %v5116_v45  ;;  %v5962_v17 = vor.u32 %v5960_v18, %v5959_v58  ;;  %v5944_v5 = vor.u32 %v5942_v9, %v5941_v22  ;;  %v5946_v49 = vrot.slane %v5941_v22, 4  ;;  %v5964_v31 = vrot.slane %v5959_v58, 4  ;;  %v5237_v30 = vld [vmem:[#allocation2 + $0x88] sm:$0xff] }
 0x25f   : > { %5146 = vst.msk [vmem:[#allocation2 + $0xc0] sm:$0xff] %vm10309_vm14, %v5114_v43  ;;  %v5667_v33 = vld [vmem:[#allocation2 + $0x90] sm:$0xff]  ;;  %v9393_v13 = vrot.slane %v5966_v14, 7  ;;  %v5993_v51 = vshrl.u32 %v6698_v62, 16  ;;  %v9401_v35 = vor.u32 %v5987_v59, %v5986_v41  ;;  %v5996_v8 = vshll.u32 %v6698_v62, 16  ;;  %v4660_v62 = vld [vmem:[#allocation2 + $0xf8] sm:$0xff]  ;;  %vm10320_vm14 = vmmov %vm10117_vm0 }
 0x260   : > { %5149 = vst.msk [vmem:[#allocation2 + $0xd8] sm:$0xff] %vm10310_vm6, %v5117_v56  ;;  %v5242_v10 = vld [vmem:[#allocation2 + $0xb0] sm:$0xff]  ;;  %v5963_v16 = vsel %vm9266_vm9, %v5955_v26, %v5962_v17  ;;  %v5945_v3 = vsel %vm9266_vm9, %v5937_v47, %v5944_v5  ;;  %v5954_v48 = vsel %vm9266_vm9, %v5946_v49, %v5953_v37  ;;  %v6696_v45 = vpack.c.bf16 %v5701_v57, %v5701_v57  ;;  %v4658_v49 = vld [vmem:[#allocation2 + $0xe8] sm:$0xff]  ;;  %vm10321_vm6 = vmmov %vm10117_vm0 }
 0x261   : > { %5147 = vst.msk [vmem:[#allocation2 + $0xc8] sm:$0xff] %vm10311_vm12, %v5115_v11  ;;  %v5971_v36 = vor.u32 %v5969_v29, %v9393_v13  ;;  %v9410_v63 = vrot.slane %v5993_v51, 7  ;;  %v5240_v43 = vld [vmem:[#allocation2 + $0xa0] sm:$0xff]  ;;  %v5706_v12 = vadd.f32 %v9232_v15, %v5667_v33  ;;  %v5601_v34 = vadd.f32 %v9336_v50, %v5239_v38  ;;  %vm10322_vm12 = vmmov %vm10117_vm0 }
 0x262   : > { %5152 = vst.msk [vmem:[#allocation2 + $0xf0] sm:$0xff] %vm10312_vm2, %v5120_v52  ;;  %v5599_v55 = vadd.f32 %v9346_v21, %v5237_v30  ;;  %v5604_v56 = vadd.f32 %v7164_v25, %v5242_v10  ;;  %v5991_v37 = vrot.slane %v5986_v41, 4  ;;  %v5975_v32 = vshrl.u32 %v6696_v45, 16  ;;  %v7169_v52 = vpop.f32.mrb[138].mxu0  ;;  %vm10323_vm2 = vmmov %vm10117_vm0 }
 0x263   : > { %5630 = vst.msk [vmem:[#allocation2 + $0x80] sm:$0xff] %vm10313_vm1, %v5598_v53  ;;  %v5243_v24 = vld [vmem:[#allocation2 + $0xb8] sm:$0xff]  ;;  %v5972_v20 = vsel %vm9266_vm9, %v5964_v31, %v5971_v36  ;;  %v5998_v4 = vor.u32 %v5996_v8, %v9410_v63  ;;  %v5978_v26 = vshll.u32 %v6696_v45, 16  ;;  %v9420_v50 = vpack.c.bf16 %v5706_v12, %v5706_v12  ;;  %v5554_v1 = vpop.f32.mrb[139].mxu0  ;;  %vm10324_vm1 = vmmov %vm10117_vm0 }
 0x264   : > { %6194 = vst.msk [vmem:[%s8996_s17 + $0x34] sm:$0xf] %vm5720_vm4, %v5963_v16  ;;  %6192 = vst.msk [vmem:[%s8996_s17 + $0x2c] sm:$0xf] %vm5720_vm4, %v5945_v3  ;;  %v5241_v6 = vld [vmem:[#allocation2 + $0xa8] sm:$0xff]  ;;  %v5602_v21 = vadd.f32 %v9380_v19, %v5240_v43  ;;  %v5605_v25 = vadd.f32 %v7165_v39, %v5243_v24  ;;  %v5977_v18 = vrot.slane %v5975_v32, 7  ;;  %v5121_v17 = vadd.f32 %v9383_v40, %v4660_v62 }
 0x265   : > { %6193 = vst.msk [vmem:[%s8996_s17 + $0x30] sm:$0xf] %vm5720_vm4, %v5954_v48  ;;  %v5246_v44 = vld [vmem:[#allocation2 + $0xd0] sm:$0xff]  ;;  %6195 = vst.msk [vmem:[%s8996_s17 + $0x38] sm:$0xf] %vm5720_vm4, %v5972_v20  ;;  %v5999_v23 = vsel %vm9266_vm9, %v5991_v37, %v5998_v4  ;;  %v5603_v27 = vadd.f32 %v5538_v42, %v5241_v6  ;;  %v5973_v58 = vrot.slane %v9393_v13, 4 }
 0x266   : > { %v5244_v11 = vld [vmem:[#allocation2 + $0xc0] sm:$0xff]  ;;  %5633 = vst.msk [vmem:[#allocation2 + $0x98] sm:$0xff] %vm10314_vm10, %v5601_v34  ;;  %v5608_v54 = vadd.f32 %v7168_v0, %v5246_v44  ;;  %v6020_v22 = vshrl.u32 %v9420_v50, 16  ;;  %v5980_v53 = vor.u32 %v5978_v26, %v5977_v18  ;;  %v5982_v41 = vrot.slane %v5977_v18, 4  ;;  %v7172_v31 = vpop.f32.mrb[140].mxu0  ;;  %vm10325_vm10 = vmmov %vm10117_vm0 }
 0x267   : > { %5631 = vst.msk [vmem:[#allocation2 + $0x88] sm:$0xff] %vm10315_vm13, %v5599_v55  ;;  %v5247_v47 = vld [vmem:[#allocation2 + $0xd8] sm:$0xff]  ;;  %v5606_v19 = vadd.f32 %v5551_v61, %v5244_v11  ;;  %v4657_v39 = vld [vmem:[#allocation2 + $0xe0] sm:$0xff]  ;;  %v9454_v29 = vpop.f32.mrb[141].mxu0  ;;  %v6023_v51 = vshll.u32 %v9420_v50, 16  ;;  %v6000_v24 = vrot.slane %v9410_v63, 4  ;;  %vm10326_vm13 = vmmov %vm10117_vm0 }
 0x268   : > { %5636 = vst.msk [vmem:[#allocation2 + $0xb0] sm:$0xff] %vm10316_vm5, %v5604_v56  ;;  %v5245_v46 = vld [vmem:[#allocation2 + $0xc8] sm:$0xff]  ;;  %v5118_v42 = vadd.f32 %v9376_v60, %v4657_v39  ;;  %v5609_v14 = vadd.f32 %v7169_v52, %v5247_v47  ;;  %v5981_v33 = vsel %vm9266_vm9, %v5973_v58, %v5980_v53  ;;  %v5990_v38 = vsel %vm9266_vm9, %v5982_v41, %v9401_v35  ;;  %v9458_v48 = vpop.f32.mrb[142].mxu0  ;;  %vm10327_vm5 = vmmov %vm10117_vm0 }
 0x269   : > { %6198 = vst.msk [vmem:[%s8996_s17 + $0x44] sm:$0xf] %vm5720_vm4, %v5999_v23  ;;  %v5607_v5 = vadd.f32 %v5554_v1, %v5245_v46  ;;  %v5250_v59 = vld [vmem:[#allocation2 + $0xf0] sm:$0xff]  ;;  %v5119_v60 = vadd.f32 %v9388_v7, %v4658_v49  ;;  %6196 = vst.msk [vmem:[%s8996_s17 + $0x3c] sm:$0xf] %vm5720_vm4, %v5981_v33  ;;  %v6022_v40 = vrot.slane %v6020_v22, 7 }
 0x26a   : > { %v5665_v2 = vld [vmem:[#allocation2 + $0x80] sm:$0xff]  ;;  %5634 = vst.msk [vmem:[#allocation2 + $0xa0] sm:$0xff] %vm10317_vm3, %v5602_v21  ;;  %v5612_v7 = vadd.f32 %v7172_v31, %v5250_v59  ;;  %v9463_v43 = vpop.f32.mrb[143].mxu0  ;;  %vm10328_vm3 = vmmov %vm10117_vm0 }
 0x26b   : > { %v5704_v9 = vadd.f32 %v9232_v15, %v5665_v2  ;;  %5637 = vst.msk [vmem:[#allocation2 + $0xb8] sm:$0xff] %vm10318_vm8, %v5605_v25  ;;  %v6025_v34 = vor.u32 %v6023_v51, %v6022_v40  ;;  %v6027_v32 = vrot.slane %v6022_v40, 4  ;;  %vm10329_vm8 = vmmov %vm10117_vm0 }
 0x26c   : > { %5635 = vst.msk [vmem:[#allocation2 + $0xa8] sm:$0xff] %vm10319_vm11, %v5603_v27  ;;  %vm6216_vm11 = vmand %vm5757_vm15, %vm5855_vm7 }
 0x26d   : > { %5640 = vst.msk [vmem:[#allocation2 + $0xd0] sm:$0xff] %vm10117_vm0, %v5608_v54  ;;  %v6699_v57 = vpack.c.bf16 %v5704_v9, %v5704_v9  ;;  %v5668_v10 = vld [vmem:[#allocation2 + $0x98] sm:$0xff] }
 0x26e   : > { %5638 = vst.msk [vmem:[#allocation2 + $0xc0] sm:$0xff] %vm10320_vm14, %v5606_v19  ;;  %v5666_v16 = vld [vmem:[#allocation2 + $0x88] sm:$0xff]  ;;  %v5707_v36 = vadd.f32 %v9232_v15, %v5668_v10 }
 0x26f   : > { %5150 = vst.msk [vmem:[#allocation2 + $0xe0] sm:$0xff] %vm10321_vm6, %v5118_v42  ;;  %v6002_v13 = vshrl.u32 %v6699_v57, 16  ;;  %v6005_v30 = vshll.u32 %v6699_v57, 16  ;;  %v5671_v3 = vld [vmem:[#allocation2 + $0xb0] sm:$0xff]  ;;  %v5705_v8 = vadd.f32 %v9232_v15, %v5666_v16 }
 0x270   : > { %5641 = vst.msk [vmem:[#allocation2 + $0xd8] sm:$0xff] %vm10322_vm12, %v5609_v14  ;;  %v5710_v45 = vadd.f32 %v9232_v15, %v5671_v3  ;;  %v6702_v56 = vpack.c.bf16 %v5707_v36, %v5707_v36 }
 0x271   : > { %6197 = vst.msk [vmem:[%s8996_s17 + $0x40] sm:$0xf] %vm5720_vm4, %v5990_v38  ;;  %v6004_v35 = vrot.slane %v6002_v13, 7  ;;  %v5669_v0 = vld [vmem:[#allocation2 + $0xa0] sm:$0xff]  ;;  %v6700_v6 = vpack.c.bf16 %v5705_v8, %v5705_v8 }
 0x272   : > { %5153 = vst.msk [vmem:[#allocation2 + $0xf8] sm:$0xff] %vm10323_vm2, %v5121_v17  ;;  %v5672_v12 = vld [vmem:[#allocation2 + $0xb8] sm:$0xff]  ;;  %v6705_v61 = vpack.c.bf16 %v5710_v45, %v5710_v45  ;;  %v5708_v37 = vadd.f32 %v9232_v15, %v5669_v0  ;;  %v6029_v11 = vshrl.u32 %v6702_v56, 16  ;;  %v6032_v50 = vshll.u32 %v6702_v56, 16 }
 0x273   : > { %5639 = vst.msk [vmem:[#allocation2 + $0xc8] sm:$0xff] %vm10324_vm1, %v5607_v5  ;;  %v6007_v55 = vor.u32 %v6005_v30, %v6004_v35  ;;  %v5670_v44 = vld [vmem:[#allocation2 + $0xa8] sm:$0xff]  ;;  %v5711_v20 = vadd.f32 %v9232_v15, %v5672_v12  ;;  %v6011_v52 = vshrl.u32 %v6700_v6, 16  ;;  %v6009_v26 = vrot.slane %v6004_v35, 4 }
 0x274   : > { %5151 = vst.msk [vmem:[#allocation2 + $0xe8] sm:$0xff] %vm10325_vm10, %v5119_v60  ;;  %v5709_v4 = vadd.f32 %v9232_v15, %v5670_v44  ;;  %v6056_v21 = vshrl.u32 %v6705_v61, 16  ;;  %v6703_v25 = vpack.c.bf16 %v5708_v37, %v5708_v37  ;;  %v5675_v47 = vld [vmem:[#allocation2 + $0xd0] sm:$0xff]  ;;  %v6031_v1 = vrot.slane %v6029_v11, 7 }
 0x275   : > { %5644 = vst.msk [vmem:[#allocation2 + $0xf0] sm:$0xff] %vm10326_vm13, %v5612_v7  ;;  %v6008_v63 = vsel %vm9266_vm9, %v6000_v24, %v6007_v55  ;;  %v6013_v23 = vrot.slane %v6011_v52, 7  ;;  %v6014_v18 = vshll.u32 %v6700_v6, 16  ;;  %v6706_v2 = vpack.c.bf16 %v5711_v20, %v5711_v20  ;;  %v5673_v62 = vld [vmem:[#allocation2 + $0xc0] sm:$0xff] }
 0x276   : > { %6199 = vst.msk [vmem:[%s8996_s17 + $0x48] sm:$0xf] %vm5720_vm4, %v6008_v63  ;;  %v6058_v27 = vrot.slane %v6056_v21, 7  ;;  %v6059_v54 = vshll.u32 %v6705_v61, 16  ;;  %v6038_v46 = vshrl.u32 %v6703_v25, 16  ;;  %v6704_v58 = vpack.c.bf16 %v5709_v4, %v5709_v4  ;;  %v5248_v61 = vld [vmem:[#allocation2 + $0xe0] sm:$0xff] }
 0x277   : > { %v6034_v22 = vor.u32 %v6032_v50, %v6031_v1  ;;  %v6016_v9 = vor.u32 %v6014_v18, %v6013_v23  ;;  %v6018_v19 = vrot.slane %v6013_v23, 4  ;;  %v5714_v39 = vadd.f32 %v9232_v15, %v5675_v47  ;;  %v5676_v57 = vld [vmem:[#allocation2 + $0xd8] sm:$0xff] }
 0x278   : > { %v6036_v53 = vrot.slane %v6031_v1, 4  ;;  %v6040_v41 = vrot.slane %v6038_v46, 7  ;;  %v6041_v42 = vshll.u32 %v6703_v25, 16  ;;  %v6065_v14 = vshrl.u32 %v6706_v2, 16 }
 0x279   : > { %v6035_v17 = vsel %vm9266_vm9, %v6027_v32, %v6034_v22  ;;  %v6017_v5 = vsel %vm9266_vm9, %v6009_v26, %v6016_v9  ;;  %v6026_v49 = vsel %vm9266_vm9, %v6018_v19, %v6025_v34  ;;  %v6061_v59 = vor.u32 %v6059_v54, %v6058_v27  ;;  %v5251_v26 = vld [vmem:[#allocation2 + $0xf8] sm:$0xff] }
 0x27a   : > { %6202 = vst.msk [vmem:[%s8996_s17 + $0x54] sm:$0xf] %vm5720_vm4, %v6035_v17  ;;  %6200 = vst.msk [vmem:[%s8996_s17 + $0x4c] sm:$0xf] %vm5720_vm4, %v6017_v5  ;;  %v6043_v33 = vor.u32 %v6041_v42, %v6040_v41  ;;  %v6067_v38 = vrot.slane %v6065_v14, 7  ;;  %v6068_v60 = vshll.u32 %v6706_v2, 16  ;;  %v6709_v13 = vpack.c.bf16 %v5714_v39, %v5714_v39 }
 0x27b   : > { %6201 = vst.msk [vmem:[%s8996_s17 + $0x50] sm:$0xf] %vm5720_vm4, %v6026_v49  ;;  %v6047_v31 = vshrl.u32 %v6704_v58, 16  ;;  %v6063_v40 = vrot.slane %v6058_v27, 4  ;;  %v5712_v51 = vadd.f32 %v9232_v15, %v5673_v62  ;;  %v5715_v30 = vadd.f32 %v9232_v15, %v5676_v57  ;;  %v5674_v10 = vld [vmem:[#allocation2 + $0xc8] sm:$0xff] }
 0x27c   : > { %v6044_v16 = vsel %vm9266_vm9, %v6036_v53, %v6043_v33  ;;  %v6070_v3 = vor.u32 %v6068_v60, %v6067_v38  ;;  %v6050_v35 = vshll.u32 %v6704_v58, 16  ;;  %v6045_v36 = vrot.slane %v6040_v41, 4  ;;  %v5249_v50 = vld [vmem:[#allocation2 + $0xe8] sm:$0xff]  ;;  %v5679_v47 = vld [vmem:[#allocation2 + $0xf0] sm:$0xff] }
 0x27d   : > { %v6049_v7 = vrot.slane %v6047_v31, 7  ;;  %6203 = vst.msk [vmem:[%s8996_s17 + $0x58] sm:$0xf] %vm5720_vm4, %v6044_v16  ;;  %v6092_v8 = vshrl.u32 %v6709_v13, 16  ;;  %v6707_v45 = vpack.c.bf16 %v5712_v51, %v5712_v51  ;;  %v6710_v24 = vpack.c.bf16 %v5715_v30, %v5715_v30 }
 0x27e   : > { %v6071_v0 = vsel %vm9266_vm9, %v6063_v40, %v6070_v3  ;;  %v5713_v55 = vadd.f32 %v9232_v15, %v5674_v10  ;;  %v6072_v21 = vrot.slane %v6067_v38, 4  ;;  %v5610_v1 = vadd.f32 %v9454_v29, %v5248_v61 }
 0x27f   : > { %v6052_v12 = vor.u32 %v6050_v35, %v6049_v7  ;;  %v6054_v34 = vrot.slane %v6049_v7, 4  ;;  %6206 = vst.msk [vmem:[%s8996_s17 + $0x64] sm:$0xf] %vm5720_vm4, %v6071_v0  ;;  %v6094_v56 = vrot.slane %v6092_v8, 7  ;;  %v6074_v6 = vshrl.u32 %v6707_v45, 16 }
 0x280   : > { %v6101_v44 = vshrl.u32 %v6710_v24, 16  ;;  %v6708_v4 = vpack.c.bf16 %v5713_v55, %v5713_v55  ;;  %v6077_v63 = vshll.u32 %v6707_v45, 16  ;;  %v6104_v52 = vshll.u32 %v6710_v24, 16  ;;  %5642 = vst.msk [vmem:[#allocation2 + $0xe0] sm:$0xff] %vm10327_vm5, %v5610_v1 }
 0x281   : > { %v6053_v37 = vsel %vm9266_vm9, %v6045_v36, %v6052_v12  ;;  %v6062_v20 = vsel %vm9266_vm9, %v6054_v34, %v6061_v59  ;;  %v6076_v32 = vrot.slane %v6074_v6, 7  ;;  %v6095_v23 = vshll.u32 %v6709_v13, 16  ;;  %v6217_v12 = vld [vmem:[%s8996_s17 + $0x88] sm:$0x1] }
 0x282   : > { %6204 = vst.msk [vmem:[%s8996_s17 + $0x5c] sm:$0xf] %vm5720_vm4, %v6053_v37  ;;  %6205 = vst.msk [vmem:[%s8996_s17 + $0x60] sm:$0xf] %vm5720_vm4, %v6062_v20  ;;  %v6103_v11 = vrot.slane %v6101_v44, 7  ;;  %v6083_v25 = vshrl.u32 %v6708_v4, 16  ;;  %v5613_v58 = vadd.f32 %v9458_v48, %v5251_v26  ;;  %v5611_v22 = vadd.f32 %v9463_v43, %v5249_v50 }
 0x283   : > { %v6099_v18 = vrot.slane %v6094_v56, 4  ;;  %v6079_v2 = vor.u32 %v6077_v63, %v6076_v32  ;;  %v6086_v46 = vshll.u32 %v6708_v4, 16  ;;  %v5718_v19 = vadd.f32 %v9232_v15, %v5679_v47 }
 0x284   : > { %v6106_v27 = vor.u32 %v6104_v52, %v6103_v11  ;;  %v6085_v54 = vrot.slane %v6083_v25, 7  ;;  %v6097_v39 = vor.u32 %v6095_v23, %v6094_v56  ;;  %v6081_v53 = vrot.slane %v6076_v32, 4  ;;  %5645 = vst.msk [vmem:[#allocation2 + $0xf8] sm:$0xff] %vm10328_vm3, %v5613_v58 }
 0x285   : > { %v6080_v9 = vsel %vm9266_vm9, %v6072_v21, %v6079_v2  ;;  %5643 = vst.msk [vmem:[#allocation2 + $0xe8] sm:$0xff] %vm10329_vm8, %v5611_v22  ;;  %v6713_v14 = vpack.c.bf16 %v5718_v19, %v5718_v19  ;;  %v6108_v3 = vrot.slane %v6103_v11, 4 }
 0x286   : > { %v6107_v29 = vsel %vm9266_vm9, %v6099_v18, %v6106_v27  ;;  %6207 = vst.msk [vmem:[%s8996_s17 + $0x68] sm:$0xf] %vm5720_vm4, %v6080_v9  ;;  %v6088_v41 = vor.u32 %v6086_v46, %v6085_v54  ;;  %v6090_v42 = vrot.slane %v6085_v54, 4 }
 0x287   : > { %6210 = vst.msk [vmem:[%s8996_s17 + $0x74] sm:$0xf] %vm5720_vm4, %v6107_v29  ;;  %v5677_v62 = vld [vmem:[#allocation2 + $0xe0] sm:$0xff]  ;;  %v6128_v17 = vshrl.u32 %v6713_v14, 16  ;;  %v6131_v24 = vshll.u32 %v6713_v14, 16 }
 0x288   : > { %v6089_v48 = vsel %vm9266_vm9, %v6081_v53, %v6088_v41  ;;  %v6098_v43 = vsel %vm9266_vm9, %v6090_v42, %v6097_v39  ;;  %v5716_v57 = vadd.f32 %v9232_v15, %v5677_v62 }
 0x289   : > { %6208 = vst.msk [vmem:[%s8996_s17 + $0x6c] sm:$0xf] %vm5720_vm4, %v6089_v48  ;;  %6209 = vst.msk [vmem:[%s8996_s17 + $0x70] sm:$0xf] %vm5720_vm4, %v6098_v43  ;;  %v6130_v13 = vrot.slane %v6128_v17, 7 }
 0x28a   : > { %v6711_v59 = vpack.c.bf16 %v5716_v57, %v5716_v57 }
 0x28b   : > { %v5680_v5 = vld [vmem:[#allocation2 + $0xf8] sm:$0xff]  ;;  %v6133_v44 = vor.u32 %v6131_v24, %v6130_v13 }
 0x28c   : > { %v5678_v49 = vld [vmem:[#allocation2 + $0xe8] sm:$0xff]  ;;  %v5719_v33 = vadd.f32 %v9232_v15, %v5680_v5  ;;  %v6110_v60 = vshrl.u32 %v6711_v59, 16  ;;  %v6113_v30 = vshll.u32 %v6711_v59, 16 }
 0x28d   : > { %v5717_v38 = vadd.f32 %v9232_v15, %v5678_v49  ;;  %v6135_v15 = vrot.slane %v6130_v13, 4 }
 0x28e   : > { %v6714_v31 = vpack.c.bf16 %v5719_v33, %v5719_v33  ;;  %v6112_v51 = vrot.slane %v6110_v60, 7 }
 0x28f   : > { %v6712_v40 = vpack.c.bf16 %v5717_v38, %v5717_v38 }
 0x290   : > { %v6137_v10 = vshrl.u32 %v6714_v31, 16  ;;  %v6140_v7 = vshll.u32 %v6714_v31, 16  ;;  %v6115_v35 = vor.u32 %v6113_v30, %v6112_v51  ;;  %v6117_v0 = vrot.slane %v6112_v51, 4 }
 0x291   : > { %v6119_v16 = vshrl.u32 %v6712_v40, 16  ;;  %v6122_v45 = vshll.u32 %v6712_v40, 16 }
 0x292   : > { %v6139_v36 = vrot.slane %v6137_v10, 7  ;;  %v6116_v34 = vsel %vm9266_vm9, %v6108_v3, %v6115_v35 }
 0x293   : > { %v6121_v8 = vrot.slane %v6119_v16, 7  ;;  %6211 = vst.msk [vmem:[%s8996_s17 + $0x78] sm:$0xf] %vm5720_vm4, %v6116_v34 }
 0x294   : > { %v6142_v55 = vor.u32 %v6140_v7, %v6139_v36  ;;  %v6144_v56 = vrot.slane %v6139_v36, 4 }
 0x295   : > { %v6124_v6 = vor.u32 %v6122_v45, %v6121_v8  ;;  %v6126_v61 = vrot.slane %v6121_v8, 4 }
 0x296   : > { %v6143_v37 = vsel %vm9266_vm9, %v6135_v15, %v6142_v55  ;;  %v6218_v20 = vsel %vm6216_vm11, %v6144_v56, %v6217_v12 }
 0x297   : > { %v6125_v4 = vsel %vm9266_vm9, %v6117_v0, %v6124_v6  ;;  %6214 = vst.msk [vmem:[%s8996_s17 + $0x84] sm:$0xf] %vm5720_vm4, %v6143_v37  ;;  %6219 = vst [vmem:[%s8996_s17 + $0x88] sm:$0x1] %v6218_v20  ;;  %v6134_v32 = vsel %vm9266_vm9, %v6126_v61, %v6133_v44 }
 0x298   : > { %6212 = vst.msk [vmem:[%s8996_s17 + $0x7c] sm:$0xf] %vm5720_vm4, %v6125_v4  ;;  %6213 = vst.msk [vmem:[%s8996_s17 + $0x80] sm:$0xf] %vm5720_vm4, %v6134_v32 }
 0x299 PF: > { %s13_s14 = sadd.s32 1, %s7278_s14   ;;  %s10330_s12 = smov %s7274_s13 }
 0x29a   : > { %p10_p5 = scmp.ge.s32.totalorder %s13_s14, 4   ;;  %s10331_s13 = smov %s10333_s15 }
 0x29c   :  { %12 = sbr.rel (!%p10_p5) target bundleno = 2 (0x2), region = 84 }

</bundles_post_ra>
